<compile_context>
chip_gen: v7x
topology: tpu7x:2x2x1
jax: 0.10.0
libtpu: 0.0.40
codegen_flags: <defaults>
</compile_context>

<pallas_src>
import functools

import jax
import jax.numpy as jnp
from jax.experimental import pallas as pl
from jax.experimental.pallas import tpu as pltpu

K = 5                      # conv kernel size
DILATIONS = (1, 2, 4, 8, 16)
NUM_BR = len(DILATIONS)


def _sdc_fused_kernel(x_ref, w_ref, b_ref, o_ref, col_ref,
                      *, H, W, Cin, Cout, pad_v):
    """One batch element per grid step; all 5 dilation branches inside.

    x_ref  : (1, Cin, (H + 2*pad_v) * W)  row-padded input, flattened spatially
    w_ref  : (5, Cout, K*K*Cin)           per-branch weights (kh,kw major, cin minor)
    b_ref  : (5, Cout, 1)
    o_ref  : (1, 5*Cout, H*W)             lane-dense output (== NCHW after reshape)
    col_ref: (K*K*Cin, H*W)               VMEM im2col scratch, reused per branch
    """
    HW = H * W

    # Output column (w) coordinate of each lane position; computed once.
    w_pos = jax.lax.broadcasted_iota(jnp.int32, (1, HW), 1) % W

    for bi, d in enumerate(DILATIONS):
        # Hoisted "same"-padding column masks: 4 distinct shifts per dilation,
        # shared by all kh rows of this branch.
        masks = {}
        for kw in range(K):
            dw = (kw - 2) * d
            if dw != 0:
                masks[dw] = (w_pos >= -dw) & (w_pos < W - dw)

        # im2col fill: one base load per kh row, shifted taps via XLU roll.
        for kh in range(K):
            dh = pad_v + (kh - 2) * d                    # static row offset
            base = x_ref[0, :, dh * W:dh * W + HW]       # (Cin, HW), dw == 0 tap
            for kw in range(K):
                dw = (kw - 2) * d
                if dw == 0:
                    patch = base
                else:
                    patch = pltpu.roll(base, shift=(-dw) % HW, axis=1)
                    patch = jnp.where(masks[dw], patch, 0.0)
                row0 = (kh * K + kw) * Cin
                col_ref[row0:row0 + Cin, :] = patch.astype(col_ref.dtype)

        # Single MXU contraction over K*K*Cin for this branch (lane-dense result).
        acc = jnp.dot(w_ref[bi], col_ref[...], preferred_element_type=jnp.float32)
        acc = acc + b_ref[bi]
        o_ref[0, bi * Cout:(bi + 1) * Cout, :] = acc.astype(o_ref.dtype)


@jax.jit
def sdc_forward(x_nchw, w_flat, b_flat):
    """SDC forward: 5 dilated 5x5 'same' convs, concatenated along channels.

    x_nchw : (N, Cin, H, W)
    w_flat : (5, Cout, K*K*Cin)   flattened per-branch weights (kh, kw, cin order)
    b_flat : (5, Cout, 1)
    returns: (N, 5*Cout, H, W)    branch order == DILATIONS (= torch.cat order)
    """
    N, Cin, H, W = x_nchw.shape
    NB, Cout, KKC = w_flat.shape
    assert NB == NUM_BR and KKC == K * K * Cin
    HW = H * W

    max_d = max(DILATIONS)
    # Row halo: >= 2*max_d (covers every kh offset) + >=1 row of slack,
    # rounded to a multiple of 8 so pad_v*W is lane-aligned for W % 16 == 0.
    pad_v = -(-(2 * max_d + 1) // 8) * 8
    Lp = (H + 2 * pad_v) * W
    # Every base window of the im2col fill must stay inside the padded buffer
    # (VMEM reads are not bounds-checked); keep nonzero slack.
    assert pad_v >= 2 * max_d
    assert (pad_v + 2 * max_d) * W + HW <= Lp

    # Pad rows once with the maximum halo and flatten spatially (free reshape).
    # For large images this halo should be zero-filled in VMEM instead of via
    # jnp.pad (which materializes a second HBM copy of the activation).
    x_pad = jnp.pad(x_nchw, ((0, 0), (0, 0), (pad_v, pad_v), (0, 0)))
    x_flat = x_pad.reshape(N, Cin, Lp)

    kern = functools.partial(_sdc_fused_kernel,
                             H=H, W=W, Cin=Cin, Cout=Cout, pad_v=pad_v)
    out = pl.pallas_call(
        kern,
        out_shape=jax.ShapeDtypeStruct((N, NB * Cout, HW), x_nchw.dtype),
        grid=(N,),
        in_specs=[
            pl.BlockSpec((1, Cin, Lp), lambda n: (n, 0, 0)),
            pl.BlockSpec((NB, Cout, KKC), lambda n: (0, 0, 0)),  # resident over n
            pl.BlockSpec((NB, Cout, 1), lambda n: (0, 0, 0)),    # resident over n
        ],
        out_specs=pl.BlockSpec((1, NB * Cout, HW), lambda n: (n, 0, 0)),
        scratch_shapes=[pltpu.VMEM((K * K * Cin, HW), jnp.float32)],
        compiler_params=pltpu.CompilerParams(
            dimension_semantics=("parallel",),
            vmem_limit_bytes=32 * 1024 * 1024),
    )(x_flat, w_flat, b_flat)

    # (N, 5*Cout, H*W) -> (N, 5*Cout, H, W): free reshape, already NCHW.
    return out.reshape(N, NB * Cout, H, W)


def init_sdc_params(key, inch, outc):
    """Deterministic synthetic parameters (PyTorch nn.Conv2d layout)."""
    params = {}
    scale = 1.0 / (inch * K * K) ** 0.5
    for i, d in enumerate(DILATIONS):
        kw_, kb_ = jax.random.split(jax.random.fold_in(key, i))
        w = jax.random.normal(kw_, (outc, inch, K, K), jnp.float32) * scale  # OIHW
        b = jax.random.normal(kb_, (outc,), jnp.float32) * scale
        params[d] = (w, b)
    return params


def pack_params(params):
    """OIHW weights -> fused kernel layout (5, Cout, K*K*Cin), (5, Cout, 1)."""
    w_flat, b_flat = [], []
    for d in DILATIONS:
        w, b = params[d]                                   # (Cout, Cin, K, K)
        w_flat.append(jnp.transpose(w, (0, 2, 3, 1)).reshape(w.shape[0], -1))
        b_flat.append(b[:, None])
    return jnp.stack(w_flat), jnp.stack(b_flat)


def _reference_forward(x_nchw, params):
    """Pure-JAX reference (lax.conv_general_dilated) for verification."""
    outs = []
    for d in DILATIONS:
        w, b = params[d]
        y = jax.lax.conv_general_dilated(
            x_nchw, w, window_strides=(1, 1),
            padding=((2 * d, 2 * d), (2 * d, 2 * d)),
            rhs_dilation=(d, d),
            dimension_numbers=("NCHW", "OIHW", "NCHW"))
        outs.append(y + b[None, :, None, None])
    return jnp.concatenate(outs, axis=1)


if __name__ == "__main__":
    # Small shapes consistent with the module: batch=2, inch=8, outc=8, 16x16.
    N, INCH, OUTC, HW = 2, 8, 8, 16
    key = jax.random.PRNGKey(0)
    kx, kp = jax.random.split(key)
    x = jax.random.normal(kx, (N, INCH, HW, HW), jnp.float32)
    params = init_sdc_params(kp, INCH, OUTC)
    w_flat, b_flat = pack_params(params)

    out = jax.block_until_ready(sdc_forward(x, w_flat, b_flat))
    assert out.shape == (N, NUM_BR * OUTC, HW, HW), out.shape

    ref = jax.block_until_ready(_reference_forward(x, params))
    err = float(jnp.max(jnp.abs(out - ref)))
    assert jnp.allclose(out, ref, atol=5e-4, rtol=5e-4), err

    print("KERNEL_OK")
</pallas_src>

<mosaic_0001>
module attributes {stable_mosaic.version = 11 : i64} {
  func.func @_sdc_fused_kernel(%arg0: i32, %arg1: memref<1x8x1536xf32, #tpu.memory_space<vmem>>, %arg2: memref<5x8x200xf32, #tpu.memory_space<vmem>>, %arg3: memref<5x8x1xf32, #tpu.memory_space<vmem>>, %arg4: memref<1x40x256xf32, #tpu.memory_space<vmem>>, %arg5: memref<200x256xf32, #tpu.memory_space<vmem>>) attributes {dimension_semantics = [#tpu.dimension_semantics<parallel>], iteration_bounds = array<i64: 2>, scalar_prefetch = 0 : i64, scratch_operands = 1 : i64, tpu.core_type = #tpu.core_type<tc>, window_params = [{transform_indices = @transform_0, window_bounds = array<i64: 1, 8, 1536>}, {pipeline_mode = #tpu.pipeline_mode<synchronous>, transform_indices = @transform_1, window_bounds = array<i64: 5, 8, 200>}, {pipeline_mode = #tpu.pipeline_mode<synchronous>, transform_indices = @transform_2, window_bounds = array<i64: 5, 8, 1>}, {transform_indices = @transform_3, window_bounds = array<i64: 1, 40, 256>}]} {
    %0 = tpu.iota {dimensions = array<i32: 1>} : vector<1x256xi32>
    %c16_i32 = arith.constant 16 : i32
    %c0_i32 = arith.constant 0 : i32
    %1 = arith.cmpi eq, %c16_i32, %c0_i32 : i32
    %c1_i32 = arith.constant 1 : i32
    %2 = arith.select %1, %c1_i32, %c16_i32 : i32
    %3 = vector.broadcast %2 : i32 to vector<1x256xi32>
    %4 = arith.remsi %0, %3 : vector<1x256xi32>
    %c0_i32_0 = arith.constant 0 : i32
    %5 = vector.broadcast %c0_i32_0 : i32 to vector<1x256xi32>
    %6 = arith.cmpi ne, %4, %5 : vector<1x256xi32>
    %c0_i32_1 = arith.constant 0 : i32
    %7 = vector.broadcast %c0_i32_1 : i32 to vector<1x256xi32>
    %8 = arith.cmpi slt, %4, %7 : vector<1x256xi32>
    %c0_i32_2 = arith.constant 0 : i32
    %9 = arith.cmpi slt, %2, %c0_i32_2 : i32
    %10 = vector.broadcast %9 : i1 to vector<1x256xi1>
    %11 = vector.broadcast %10 : vector<1x256xi1> to vector<1x256xi1>
    %12 = arith.xori %8, %11 : vector<1x256xi1>
    %13 = arith.andi %12, %6 : vector<1x256xi1>
    %14 = vector.broadcast %2 : i32 to vector<1x256xi32>
    %15 = arith.addi %4, %14 : vector<1x256xi32>
    %16 = arith.select %13, %15, %4 : vector<1x256xi1>, vector<1x256xi32>
    %c2_i32 = arith.constant 2 : i32
    %17 = vector.broadcast %c2_i32 : i32 to vector<1x256xi32>
    %18 = arith.cmpi sge, %16, %17 : vector<1x256xi32>
    %c18_i32 = arith.constant 18 : i32
    %19 = vector.broadcast %c18_i32 : i32 to vector<1x256xi32>
    %20 = arith.cmpi slt, %16, %19 : vector<1x256xi32>
    %21 = arith.andi %18, %20 : vector<1x256xi1>
    %c1_i32_3 = arith.constant 1 : i32
    %22 = vector.broadcast %c1_i32_3 : i32 to vector<1x256xi32>
    %23 = arith.cmpi sge, %16, %22 : vector<1x256xi32>
    %c17_i32 = arith.constant 17 : i32
    %24 = vector.broadcast %c17_i32 : i32 to vector<1x256xi32>
    %25 = arith.cmpi slt, %16, %24 : vector<1x256xi32>
    %26 = arith.andi %23, %25 : vector<1x256xi1>
    %c-1_i32 = arith.constant -1 : i32
    %27 = vector.broadcast %c-1_i32 : i32 to vector<1x256xi32>
    %28 = arith.cmpi sge, %16, %27 : vector<1x256xi32>
    %c15_i32 = arith.constant 15 : i32
    %29 = vector.broadcast %c15_i32 : i32 to vector<1x256xi32>
    %30 = arith.cmpi slt, %16, %29 : vector<1x256xi32>
    %31 = arith.andi %28, %30 : vector<1x256xi1>
    %c-2_i32 = arith.constant -2 : i32
    %32 = vector.broadcast %c-2_i32 : i32 to vector<1x256xi32>
    %33 = arith.cmpi sge, %16, %32 : vector<1x256xi32>
    %c14_i32 = arith.constant 14 : i32
    %34 = vector.broadcast %c14_i32 : i32 to vector<1x256xi32>
    %35 = arith.cmpi slt, %16, %34 : vector<1x256xi32>
    %36 = arith.andi %33, %35 : vector<1x256xi1>
    %c0 = arith.constant 0 : index
    %c0_4 = arith.constant 0 : index
    %c608 = arith.constant 608 : index
    %37 = vector.load %arg1[%c0, %c0_4, %c608] : memref<1x8x1536xf32, #tpu.memory_space<vmem>>, vector<1x8x256xf32>
    %38 = vector.shape_cast %37 : vector<1x8x256xf32> to vector<8x256xf32>
    %c2_i32_5 = arith.constant 2 : i32
    %39 = tpu.dynamic_rotate %38 by %c2_i32_5 dim 1 : vector<8x256xf32>, i32 -> vector<8x256xf32>
    %cst = arith.constant 0.000000e+00 : f32
    %40 = vector.shape_cast %21 : vector<1x256xi1> to vector<1x256xi1>
    %41 = vector.broadcast %40 : vector<1x256xi1> to vector<8x256xi1>
    %42 = vector.broadcast %cst : f32 to vector<8x256xf32>
    %43 = arith.select %41, %39, %42 : vector<8x256xi1>, vector<8x256xf32>
    %c0_6 = arith.constant 0 : index
    %c0_7 = arith.constant 0 : index
    %44 = vector.load %arg5[%c0_6, %c0_7] : memref<200x256xf32, #tpu.memory_space<vmem>>, vector<8x256xf32>
    tpu.vector_store %arg5[%c0_6, %c0_7], %43 {strides = array<i32>} : memref<200x256xf32, #tpu.memory_space<vmem>>, vector<8x256xf32>,
    %c1_i32_8 = arith.constant 1 : i32
    %45 = tpu.dynamic_rotate %38 by %c1_i32_8 dim 1 : vector<8x256xf32>, i32 -> vector<8x256xf32>
    %cst_9 = arith.constant 0.000000e+00 : f32
    %46 = vector.shape_cast %26 : vector<1x256xi1> to vector<1x256xi1>
    %47 = vector.broadcast %46 : vector<1x256xi1> to vector<8x256xi1>
    %48 = vector.broadcast %cst_9 : f32 to vector<8x256xf32>
    %49 = arith.select %47, %45, %48 : vector<8x256xi1>, vector<8x256xf32>
    %c8 = arith.constant 8 : index
    %c0_10 = arith.constant 0 : index
    %50 = vector.load %arg5[%c8, %c0_10] : memref<200x256xf32, #tpu.memory_space<vmem>>, vector<8x256xf32>
    tpu.vector_store %arg5[%c8, %c0_10], %49 {strides = array<i32>} : memref<200x256xf32, #tpu.memory_space<vmem>>, vector<8x256xf32>,
    %c16 = arith.constant 16 : index
    %c0_11 = arith.constant 0 : index
    %51 = vector.load %arg5[%c16, %c0_11] : memref<200x256xf32, #tpu.memory_space<vmem>>, vector<8x256xf32>
    tpu.vector_store %arg5[%c16, %c0_11], %38 {strides = array<i32>} : memref<200x256xf32, #tpu.memory_space<vmem>>, vector<8x256xf32>,
    %c255_i32 = arith.constant 255 : i32
    %52 = tpu.dynamic_rotate %38 by %c255_i32 dim 1 : vector<8x256xf32>, i32 -> vector<8x256xf32>
    %cst_12 = arith.constant 0.000000e+00 : f32
    %53 = vector.shape_cast %31 : vector<1x256xi1> to vector<1x256xi1>
    %54 = vector.broadcast %53 : vector<1x256xi1> to vector<8x256xi1>
    %55 = vector.broadcast %cst_12 : f32 to vector<8x256xf32>
    %56 = arith.select %54, %52, %55 : vector<8x256xi1>, vector<8x256xf32>
    %c24 = arith.constant 24 : index
    %c0_13 = arith.constant 0 : index
    %57 = vector.load %arg5[%c24, %c0_13] : memref<200x256xf32, #tpu.memory_space<vmem>>, vector<8x256xf32>
    tpu.vector_store %arg5[%c24, %c0_13], %56 {strides = array<i32>} : memref<200x256xf32, #tpu.memory_space<vmem>>, vector<8x256xf32>,
    %c254_i32 = arith.constant 254 : i32
    %58 = tpu.dynamic_rotate %38 by %c254_i32 dim 1 : vector<8x256xf32>, i32 -> vector<8x256xf32>
    %cst_14 = arith.constant 0.000000e+00 : f32
    %59 = vector.shape_cast %36 : vector<1x256xi1> to vector<1x256xi1>
    %60 = vector.broadcast %59 : vector<1x256xi1> to vector<8x256xi1>
    %61 = vector.broadcast %cst_14 : f32 to vector<8x256xf32>
    %62 = arith.select %60, %58, %61 : vector<8x256xi1>, vector<8x256xf32>
    %c32 = arith.constant 32 : index
    %c0_15 = arith.constant 0 : index
    %63 = vector.load %arg5[%c32, %c0_15] : memref<200x256xf32, #tpu.memory_space<vmem>>, vector<8x256xf32>
    tpu.vector_store %arg5[%c32, %c0_15], %62 {strides = array<i32>} : memref<200x256xf32, #tpu.memory_space<vmem>>, vector<8x256xf32>,
    %c0_16 = arith.constant 0 : index
    %c0_17 = arith.constant 0 : index
    %c624 = arith.constant 624 : index
    %64 = vector.load %arg1[%c0_16, %c0_17, %c624] : memref<1x8x1536xf32, #tpu.memory_space<vmem>>, vector<1x8x256xf32>
    %65 = vector.shape_cast %64 : vector<1x8x256xf32> to vector<8x256xf32>
    %c2_i32_18 = arith.constant 2 : i32
    %66 = tpu.dynamic_rotate %65 by %c2_i32_18 dim 1 : vector<8x256xf32>, i32 -> vector<8x256xf32>
    %cst_19 = arith.constant 0.000000e+00 : f32
    %67 = vector.shape_cast %21 : vector<1x256xi1> to vector<1x256xi1>
    %68 = vector.broadcast %67 : vector<1x256xi1> to vector<8x256xi1>
    %69 = vector.broadcast %cst_19 : f32 to vector<8x256xf32>
    %70 = arith.select %68, %66, %69 : vector<8x256xi1>, vector<8x256xf32>
    %c40 = arith.constant 40 : index
    %c0_20 = arith.constant 0 : index
    %71 = vector.load %arg5[%c40, %c0_20] : memref<200x256xf32, #tpu.memory_space<vmem>>, vector<8x256xf32>
    tpu.vector_store %arg5[%c40, %c0_20], %70 {strides = array<i32>} : memref<200x256xf32, #tpu.memory_space<vmem>>, vector<8x256xf32>,
    %c1_i32_21 = arith.constant 1 : i32
    %72 = tpu.dynamic_rotate %65 by %c1_i32_21 dim 1 : vector<8x256xf32>, i32 -> vector<8x256xf32>
    %cst_22 = arith.constant 0.000000e+00 : f32
    %73 = vector.shape_cast %26 : vector<1x256xi1> to vector<1x256xi1>
    %74 = vector.broadcast %73 : vector<1x256xi1> to vector<8x256xi1>
    %75 = vector.broadcast %cst_22 : f32 to vector<8x256xf32>
    %76 = arith.select %74, %72, %75 : vector<8x256xi1>, vector<8x256xf32>
    %c48 = arith.constant 48 : index
    %c0_23 = arith.constant 0 : index
    %77 = vector.load %arg5[%c48, %c0_23] : memref<200x256xf32, #tpu.memory_space<vmem>>, vector<8x256xf32>
    tpu.vector_store %arg5[%c48, %c0_23], %76 {strides = array<i32>} : memref<200x256xf32, #tpu.memory_space<vmem>>, vector<8x256xf32>,
    %c56 = arith.constant 56 : index
    %c0_24 = arith.constant 0 : index
    %78 = vector.load %arg5[%c56, %c0_24] : memref<200x256xf32, #tpu.memory_space<vmem>>, vector<8x256xf32>
    tpu.vector_store %arg5[%c56, %c0_24], %65 {strides = array<i32>} : memref<200x256xf32, #tpu.memory_space<vmem>>, vector<8x256xf32>,
    %c255_i32_25 = arith.constant 255 : i32
    %79 = tpu.dynamic_rotate %65 by %c255_i32_25 dim 1 : vector<8x256xf32>, i32 -> vector<8x256xf32>
    %cst_26 = arith.constant 0.000000e+00 : f32
    %80 = vector.shape_cast %31 : vector<1x256xi1> to vector<1x256xi1>
    %81 = vector.broadcast %80 : vector<1x256xi1> to vector<8x256xi1>
    %82 = vector.broadcast %cst_26 : f32 to vector<8x256xf32>
    %83 = arith.select %81, %79, %82 : vector<8x256xi1>, vector<8x256xf32>
    %c64 = arith.constant 64 : index
    %c0_27 = arith.constant 0 : index
    %84 = vector.load %arg5[%c64, %c0_27] : memref<200x256xf32, #tpu.memory_space<vmem>>, vector<8x256xf32>
    tpu.vector_store %arg5[%c64, %c0_27], %83 {strides = array<i32>} : memref<200x256xf32, #tpu.memory_space<vmem>>, vector<8x256xf32>,
    %c254_i32_28 = arith.constant 254 : i32
    %85 = tpu.dynamic_rotate %65 by %c254_i32_28 dim 1 : vector<8x256xf32>, i32 -> vector<8x256xf32>
    %cst_29 = arith.constant 0.000000e+00 : f32
    %86 = vector.shape_cast %36 : vector<1x256xi1> to vector<1x256xi1>
    %87 = vector.broadcast %86 : vector<1x256xi1> to vector<8x256xi1>
    %88 = vector.broadcast %cst_29 : f32 to vector<8x256xf32>
    %89 = arith.select %87, %85, %88 : vector<8x256xi1>, vector<8x256xf32>
    %c72 = arith.constant 72 : index
    %c0_30 = arith.constant 0 : index
    %90 = vector.load %arg5[%c72, %c0_30] : memref<200x256xf32, #tpu.memory_space<vmem>>, vector<8x256xf32>
    tpu.vector_store %arg5[%c72, %c0_30], %89 {strides = array<i32>} : memref<200x256xf32, #tpu.memory_space<vmem>>, vector<8x256xf32>,
    %c0_31 = arith.constant 0 : index
    %c0_32 = arith.constant 0 : index
    %c640 = arith.constant 640 : index
    %91 = vector.load %arg1[%c0_31, %c0_32, %c640] : memref<1x8x1536xf32, #tpu.memory_space<vmem>>, vector<1x8x256xf32>
    %92 = vector.shape_cast %91 : vector<1x8x256xf32> to vector<8x256xf32>
    %c2_i32_33 = arith.constant 2 : i32
    %93 = tpu.dynamic_rotate %92 by %c2_i32_33 dim 1 : vector<8x256xf32>, i32 -> vector<8x256xf32>
    %cst_34 = arith.constant 0.000000e+00 : f32
    %94 = vector.shape_cast %21 : vector<1x256xi1> to vector<1x256xi1>
    %95 = vector.broadcast %94 : vector<1x256xi1> to vector<8x256xi1>
    %96 = vector.broadcast %cst_34 : f32 to vector<8x256xf32>
    %97 = arith.select %95, %93, %96 : vector<8x256xi1>, vector<8x256xf32>
    %c80 = arith.constant 80 : index
    %c0_35 = arith.constant 0 : index
    %98 = vector.load %arg5[%c80, %c0_35] : memref<200x256xf32, #tpu.memory_space<vmem>>, vector<8x256xf32>
    tpu.vector_store %arg5[%c80, %c0_35], %97 {strides = array<i32>} : memref<200x256xf32, #tpu.memory_space<vmem>>, vector<8x256xf32>,
    %c1_i32_36 = arith.constant 1 : i32
    %99 = tpu.dynamic_rotate %92 by %c1_i32_36 dim 1 : vector<8x256xf32>, i32 -> vector<8x256xf32>
    %cst_37 = arith.constant 0.000000e+00 : f32
    %100 = vector.shape_cast %26 : vector<1x256xi1> to vector<1x256xi1>
    %101 = vector.broadcast %100 : vector<1x256xi1> to vector<8x256xi1>
    %102 = vector.broadcast %cst_37 : f32 to vector<8x256xf32>
    %103 = arith.select %101, %99, %102 : vector<8x256xi1>, vector<8x256xf32>
    %c88 = arith.constant 88 : index
    %c0_38 = arith.constant 0 : index
    %104 = vector.load %arg5[%c88, %c0_38] : memref<200x256xf32, #tpu.memory_space<vmem>>, vector<8x256xf32>
    tpu.vector_store %arg5[%c88, %c0_38], %103 {strides = array<i32>} : memref<200x256xf32, #tpu.memory_space<vmem>>, vector<8x256xf32>,
    %c96 = arith.constant 96 : index
    %c0_39 = arith.constant 0 : index
    %105 = vector.load %arg5[%c96, %c0_39] : memref<200x256xf32, #tpu.memory_space<vmem>>, vector<8x256xf32>
    tpu.vector_store %arg5[%c96, %c0_39], %92 {strides = array<i32>} : memref<200x256xf32, #tpu.memory_space<vmem>>, vector<8x256xf32>,
    %c255_i32_40 = arith.constant 255 : i32
    %106 = tpu.dynamic_rotate %92 by %c255_i32_40 dim 1 : vector<8x256xf32>, i32 -> vector<8x256xf32>
    %cst_41 = arith.constant 0.000000e+00 : f32
    %107 = vector.shape_cast %31 : vector<1x256xi1> to vector<1x256xi1>
    %108 = vector.broadcast %107 : vector<1x256xi1> to vector<8x256xi1>
    %109 = vector.broadcast %cst_41 : f32 to vector<8x256xf32>
    %110 = arith.select %108, %106, %109 : vector<8x256xi1>, vector<8x256xf32>
    %c104 = arith.constant 104 : index
    %c0_42 = arith.constant 0 : index
    %111 = vector.load %arg5[%c104, %c0_42] : memref<200x256xf32, #tpu.memory_space<vmem>>, vector<8x256xf32>
    tpu.vector_store %arg5[%c104, %c0_42], %110 {strides = array<i32>} : memref<200x256xf32, #tpu.memory_space<vmem>>, vector<8x256xf32>,
    %c254_i32_43 = arith.constant 254 : i32
    %112 = tpu.dynamic_rotate %92 by %c254_i32_43 dim 1 : vector<8x256xf32>, i32 -> vector<8x256xf32>
    %cst_44 = arith.constant 0.000000e+00 : f32
    %113 = vector.shape_cast %36 : vector<1x256xi1> to vector<1x256xi1>
    %114 = vector.broadcast %113 : vector<1x256xi1> to vector<8x256xi1>
    %115 = vector.broadcast %cst_44 : f32 to vector<8x256xf32>
    %116 = arith.select %114, %112, %115 : vector<8x256xi1>, vector<8x256xf32>
    %c112 = arith.constant 112 : index
    %c0_45 = arith.constant 0 : index
    %117 = vector.load %arg5[%c112, %c0_45] : memref<200x256xf32, #tpu.memory_space<vmem>>, vector<8x256xf32>
    tpu.vector_store %arg5[%c112, %c0_45], %116 {strides = array<i32>} : memref<200x256xf32, #tpu.memory_space<vmem>>, vector<8x256xf32>,
    %c0_46 = arith.constant 0 : index
    %c0_47 = arith.constant 0 : index
    %c656 = arith.constant 656 : index
    %118 = vector.load %arg1[%c0_46, %c0_47, %c656] : memref<1x8x1536xf32, #tpu.memory_space<vmem>>, vector<1x8x256xf32>
    %119 = vector.shape_cast %118 : vector<1x8x256xf32> to vector<8x256xf32>
    %c2_i32_48 = arith.constant 2 : i32
    %120 = tpu.dynamic_rotate %119 by %c2_i32_48 dim 1 : vector<8x256xf32>, i32 -> vector<8x256xf32>
    %cst_49 = arith.constant 0.000000e+00 : f32
    %121 = vector.shape_cast %21 : vector<1x256xi1> to vector<1x256xi1>
    %122 = vector.broadcast %121 : vector<1x256xi1> to vector<8x256xi1>
    %123 = vector.broadcast %cst_49 : f32 to vector<8x256xf32>
    %124 = arith.select %122, %120, %123 : vector<8x256xi1>, vector<8x256xf32>
    %c120 = arith.constant 120 : index
    %c0_50 = arith.constant 0 : index
    %125 = vector.load %arg5[%c120, %c0_50] : memref<200x256xf32, #tpu.memory_space<vmem>>, vector<8x256xf32>
    tpu.vector_store %arg5[%c120, %c0_50], %124 {strides = array<i32>} : memref<200x256xf32, #tpu.memory_space<vmem>>, vector<8x256xf32>,
    %c1_i32_51 = arith.constant 1 : i32
    %126 = tpu.dynamic_rotate %119 by %c1_i32_51 dim 1 : vector<8x256xf32>, i32 -> vector<8x256xf32>
    %cst_52 = arith.constant 0.000000e+00 : f32
    %127 = vector.shape_cast %26 : vector<1x256xi1> to vector<1x256xi1>
    %128 = vector.broadcast %127 : vector<1x256xi1> to vector<8x256xi1>
    %129 = vector.broadcast %cst_52 : f32 to vector<8x256xf32>
    %130 = arith.select %128, %126, %129 : vector<8x256xi1>, vector<8x256xf32>
    %c128 = arith.constant 128 : index
    %c0_53 = arith.constant 0 : index
    %131 = vector.load %arg5[%c128, %c0_53] : memref<200x256xf32, #tpu.memory_space<vmem>>, vector<8x256xf32>
    tpu.vector_store %arg5[%c128, %c0_53], %130 {strides = array<i32>} : memref<200x256xf32, #tpu.memory_space<vmem>>, vector<8x256xf32>,
    %c136 = arith.constant 136 : index
    %c0_54 = arith.constant 0 : index
    %132 = vector.load %arg5[%c136, %c0_54] : memref<200x256xf32, #tpu.memory_space<vmem>>, vector<8x256xf32>
    tpu.vector_store %arg5[%c136, %c0_54], %119 {strides = array<i32>} : memref<200x256xf32, #tpu.memory_space<vmem>>, vector<8x256xf32>,
    %c255_i32_55 = arith.constant 255 : i32
    %133 = tpu.dynamic_rotate %119 by %c255_i32_55 dim 1 : vector<8x256xf32>, i32 -> vector<8x256xf32>
    %cst_56 = arith.constant 0.000000e+00 : f32
    %134 = vector.shape_cast %31 : vector<1x256xi1> to vector<1x256xi1>
    %135 = vector.broadcast %134 : vector<1x256xi1> to vector<8x256xi1>
    %136 = vector.broadcast %cst_56 : f32 to vector<8x256xf32>
    %137 = arith.select %135, %133, %136 : vector<8x256xi1>, vector<8x256xf32>
    %c144 = arith.constant 144 : index
    %c0_57 = arith.constant 0 : index
    %138 = vector.load %arg5[%c144, %c0_57] : memref<200x256xf32, #tpu.memory_space<vmem>>, vector<8x256xf32>
    tpu.vector_store %arg5[%c144, %c0_57], %137 {strides = array<i32>} : memref<200x256xf32, #tpu.memory_space<vmem>>, vector<8x256xf32>,
    %c254_i32_58 = arith.constant 254 : i32
    %139 = tpu.dynamic_rotate %119 by %c254_i32_58 dim 1 : vector<8x256xf32>, i32 -> vector<8x256xf32>
    %cst_59 = arith.constant 0.000000e+00 : f32
    %140 = vector.shape_cast %36 : vector<1x256xi1> to vector<1x256xi1>
    %141 = vector.broadcast %140 : vector<1x256xi1> to vector<8x256xi1>
    %142 = vector.broadcast %cst_59 : f32 to vector<8x256xf32>
    %143 = arith.select %141, %139, %142 : vector<8x256xi1>, vector<8x256xf32>
    %c152 = arith.constant 152 : index
    %c0_60 = arith.constant 0 : index
    %144 = vector.load %arg5[%c152, %c0_60] : memref<200x256xf32, #tpu.memory_space<vmem>>, vector<8x256xf32>
    tpu.vector_store %arg5[%c152, %c0_60], %143 {strides = array<i32>} : memref<200x256xf32, #tpu.memory_space<vmem>>, vector<8x256xf32>,
    %c0_61 = arith.constant 0 : index
    %c0_62 = arith.constant 0 : index
    %c672 = arith.constant 672 : index
    %145 = vector.load %arg1[%c0_61, %c0_62, %c672] : memref<1x8x1536xf32, #tpu.memory_space<vmem>>, vector<1x8x256xf32>
    %146 = vector.shape_cast %145 : vector<1x8x256xf32> to vector<8x256xf32>
    %c2_i32_63 = arith.constant 2 : i32
    %147 = tpu.dynamic_rotate %146 by %c2_i32_63 dim 1 : vector<8x256xf32>, i32 -> vector<8x256xf32>
    %cst_64 = arith.constant 0.000000e+00 : f32
    %148 = vector.shape_cast %21 : vector<1x256xi1> to vector<1x256xi1>
    %149 = vector.broadcast %148 : vector<1x256xi1> to vector<8x256xi1>
    %150 = vector.broadcast %cst_64 : f32 to vector<8x256xf32>
    %151 = arith.select %149, %147, %150 : vector<8x256xi1>, vector<8x256xf32>
    %c160 = arith.constant 160 : index
    %c0_65 = arith.constant 0 : index
    %152 = vector.load %arg5[%c160, %c0_65] : memref<200x256xf32, #tpu.memory_space<vmem>>, vector<8x256xf32>
    tpu.vector_store %arg5[%c160, %c0_65], %151 {strides = array<i32>} : memref<200x256xf32, #tpu.memory_space<vmem>>, vector<8x256xf32>,
    %c1_i32_66 = arith.constant 1 : i32
    %153 = tpu.dynamic_rotate %146 by %c1_i32_66 dim 1 : vector<8x256xf32>, i32 -> vector<8x256xf32>
    %cst_67 = arith.constant 0.000000e+00 : f32
    %154 = vector.shape_cast %26 : vector<1x256xi1> to vector<1x256xi1>
    %155 = vector.broadcast %154 : vector<1x256xi1> to vector<8x256xi1>
    %156 = vector.broadcast %cst_67 : f32 to vector<8x256xf32>
    %157 = arith.select %155, %153, %156 : vector<8x256xi1>, vector<8x256xf32>
    %c168 = arith.constant 168 : index
    %c0_68 = arith.constant 0 : index
    %158 = vector.load %arg5[%c168, %c0_68] : memref<200x256xf32, #tpu.memory_space<vmem>>, vector<8x256xf32>
    tpu.vector_store %arg5[%c168, %c0_68], %157 {strides = array<i32>} : memref<200x256xf32, #tpu.memory_space<vmem>>, vector<8x256xf32>,
    %c176 = arith.constant 176 : index
    %c0_69 = arith.constant 0 : index
    %159 = vector.load %arg5[%c176, %c0_69] : memref<200x256xf32, #tpu.memory_space<vmem>>, vector<8x256xf32>
    tpu.vector_store %arg5[%c176, %c0_69], %146 {strides = array<i32>} : memref<200x256xf32, #tpu.memory_space<vmem>>, vector<8x256xf32>,
    %c255_i32_70 = arith.constant 255 : i32
    %160 = tpu.dynamic_rotate %146 by %c255_i32_70 dim 1 : vector<8x256xf32>, i32 -> vector<8x256xf32>
    %cst_71 = arith.constant 0.000000e+00 : f32
    %161 = vector.shape_cast %31 : vector<1x256xi1> to vector<1x256xi1>
    %162 = vector.broadcast %161 : vector<1x256xi1> to vector<8x256xi1>
    %163 = vector.broadcast %cst_71 : f32 to vector<8x256xf32>
    %164 = arith.select %162, %160, %163 : vector<8x256xi1>, vector<8x256xf32>
    %c184 = arith.constant 184 : index
    %c0_72 = arith.constant 0 : index
    %165 = vector.load %arg5[%c184, %c0_72] : memref<200x256xf32, #tpu.memory_space<vmem>>, vector<8x256xf32>
    tpu.vector_store %arg5[%c184, %c0_72], %164 {strides = array<i32>} : memref<200x256xf32, #tpu.memory_space<vmem>>, vector<8x256xf32>,
    %c254_i32_73 = arith.constant 254 : i32
    %166 = tpu.dynamic_rotate %146 by %c254_i32_73 dim 1 : vector<8x256xf32>, i32 -> vector<8x256xf32>
    %cst_74 = arith.constant 0.000000e+00 : f32
    %167 = vector.shape_cast %36 : vector<1x256xi1> to vector<1x256xi1>
    %168 = vector.broadcast %167 : vector<1x256xi1> to vector<8x256xi1>
    %169 = vector.broadcast %cst_74 : f32 to vector<8x256xf32>
    %170 = arith.select %168, %166, %169 : vector<8x256xi1>, vector<8x256xf32>
    %c192 = arith.constant 192 : index
    %c0_75 = arith.constant 0 : index
    %171 = vector.load %arg5[%c192, %c0_75] : memref<200x256xf32, #tpu.memory_space<vmem>>, vector<8x256xf32>
    tpu.vector_store %arg5[%c192, %c0_75], %170 {strides = array<i32>} : memref<200x256xf32, #tpu.memory_space<vmem>>, vector<8x256xf32>,
    %c0_76 = arith.constant 0 : index
    %c0_77 = arith.constant 0 : index
    %c0_78 = arith.constant 0 : index
    %172 = vector.load %arg2[%c0_76, %c0_77, %c0_78] : memref<5x8x200xf32, #tpu.memory_space<vmem>>, vector<1x8x200xf32>
    %173 = vector.shape_cast %172 : vector<1x8x200xf32> to vector<8x200xf32>
    %c0_79 = arith.constant 0 : index
    %c0_80 = arith.constant 0 : index
    %174 = vector.load %arg5[%c0_79, %c0_80] : memref<200x256xf32, #tpu.memory_space<vmem>>, vector<200x256xf32>
    %cst_81 = arith.constant dense<0.000000e+00> : vector<8x256xf32>
    %175 = tpu.matmul %173, %174, %cst_81 {dimension_numbers = #tpu.dot_dimension_numbers<[1], [0], [0], [1], [0, 0, 1, 1], [], []>} : vector<8x200xf32>, vector<200x256xf32>, vector<8x256xf32> -> vector<8x256xf32>
    %c0_82 = arith.constant 0 : index
    %c0_83 = arith.constant 0 : index
    %c0_84 = arith.constant 0 : index
    %176 = vector.load %arg3[%c0_82, %c0_83, %c0_84] : memref<5x8x1xf32, #tpu.memory_space<vmem>>, vector<1x8x1xf32>
    %177 = vector.shape_cast %176 : vector<1x8x1xf32> to vector<8x1xf32>
    %178 = vector.broadcast %177 : vector<8x1xf32> to vector<8x256xf32>
    %179 = arith.addf %175, %178 : vector<8x256xf32>
    %c0_85 = arith.constant 0 : index
    %c0_86 = arith.constant 0 : index
    %c0_87 = arith.constant 0 : index
    %180 = vector.load %arg4[%c0_85, %c0_86, %c0_87] : memref<1x40x256xf32, #tpu.memory_space<vmem>>, vector<1x8x256xf32>
    %181 = vector.shape_cast %180 : vector<1x8x256xf32> to vector<8x256xf32>
    %182 = vector.shape_cast %179 : vector<8x256xf32> to vector<1x8x256xf32>
    tpu.vector_store %arg4[%c0_85, %c0_86, %c0_87], %182 {strides = array<i32>} : memref<1x40x256xf32, #tpu.memory_space<vmem>>, vector<1x8x256xf32>,
    %c4_i32 = arith.constant 4 : i32
    %183 = vector.broadcast %c4_i32 : i32 to vector<1x256xi32>
    %184 = arith.cmpi sge, %16, %183 : vector<1x256xi32>
    %c20_i32 = arith.constant 20 : i32
    %185 = vector.broadcast %c20_i32 : i32 to vector<1x256xi32>
    %186 = arith.cmpi slt, %16, %185 : vector<1x256xi32>
    %187 = arith.andi %184, %186 : vector<1x256xi1>
    %c2_i32_88 = arith.constant 2 : i32
    %188 = vector.broadcast %c2_i32_88 : i32 to vector<1x256xi32>
    %189 = arith.cmpi sge, %16, %188 : vector<1x256xi32>
    %c18_i32_89 = arith.constant 18 : i32
    %190 = vector.broadcast %c18_i32_89 : i32 to vector<1x256xi32>
    %191 = arith.cmpi slt, %16, %190 : vector<1x256xi32>
    %192 = arith.andi %189, %191 : vector<1x256xi1>
    %c-2_i32_90 = arith.constant -2 : i32
    %193 = vector.broadcast %c-2_i32_90 : i32 to vector<1x256xi32>
    %194 = arith.cmpi sge, %16, %193 : vector<1x256xi32>
    %c14_i32_91 = arith.constant 14 : i32
    %195 = vector.broadcast %c14_i32_91 : i32 to vector<1x256xi32>
    %196 = arith.cmpi slt, %16, %195 : vector<1x256xi32>
    %197 = arith.andi %194, %196 : vector<1x256xi1>
    %c-4_i32 = arith.constant -4 : i32
    %198 = vector.broadcast %c-4_i32 : i32 to vector<1x256xi32>
    %199 = arith.cmpi sge, %16, %198 : vector<1x256xi32>
    %c12_i32 = arith.constant 12 : i32
    %200 = vector.broadcast %c12_i32 : i32 to vector<1x256xi32>
    %201 = arith.cmpi slt, %16, %200 : vector<1x256xi32>
    %202 = arith.andi %199, %201 : vector<1x256xi1>
    %c0_92 = arith.constant 0 : index
    %c0_93 = arith.constant 0 : index
    %c576 = arith.constant 576 : index
    %203 = vector.load %arg1[%c0_92, %c0_93, %c576] : memref<1x8x1536xf32, #tpu.memory_space<vmem>>, vector<1x8x256xf32>
    %204 = vector.shape_cast %203 : vector<1x8x256xf32> to vector<8x256xf32>
    %c4_i32_94 = arith.constant 4 : i32
    %205 = tpu.dynamic_rotate %204 by %c4_i32_94 dim 1 : vector<8x256xf32>, i32 -> vector<8x256xf32>
    %cst_95 = arith.constant 0.000000e+00 : f32
    %206 = vector.shape_cast %187 : vector<1x256xi1> to vector<1x256xi1>
    %207 = vector.broadcast %206 : vector<1x256xi1> to vector<8x256xi1>
    %208 = vector.broadcast %cst_95 : f32 to vector<8x256xf32>
    %209 = arith.select %207, %205, %208 : vector<8x256xi1>, vector<8x256xf32>
    %c0_96 = arith.constant 0 : index
    %c0_97 = arith.constant 0 : index
    %210 = vector.load %arg5[%c0_96, %c0_97] : memref<200x256xf32, #tpu.memory_space<vmem>>, vector<8x256xf32>
    tpu.vector_store %arg5[%c0_96, %c0_97], %209 {strides = array<i32>} : memref<200x256xf32, #tpu.memory_space<vmem>>, vector<8x256xf32>,
    %c2_i32_98 = arith.constant 2 : i32
    %211 = tpu.dynamic_rotate %204 by %c2_i32_98 dim 1 : vector<8x256xf32>, i32 -> vector<8x256xf32>
    %cst_99 = arith.constant 0.000000e+00 : f32
    %212 = vector.shape_cast %192 : vector<1x256xi1> to vector<1x256xi1>
    %213 = vector.broadcast %212 : vector<1x256xi1> to vector<8x256xi1>
    %214 = vector.broadcast %cst_99 : f32 to vector<8x256xf32>
    %215 = arith.select %213, %211, %214 : vector<8x256xi1>, vector<8x256xf32>
    %c8_100 = arith.constant 8 : index
    %c0_101 = arith.constant 0 : index
    %216 = vector.load %arg5[%c8_100, %c0_101] : memref<200x256xf32, #tpu.memory_space<vmem>>, vector<8x256xf32>
    tpu.vector_store %arg5[%c8_100, %c0_101], %215 {strides = array<i32>} : memref<200x256xf32, #tpu.memory_space<vmem>>, vector<8x256xf32>,
    %c16_102 = arith.constant 16 : index
    %c0_103 = arith.constant 0 : index
    %217 = vector.load %arg5[%c16_102, %c0_103] : memref<200x256xf32, #tpu.memory_space<vmem>>, vector<8x256xf32>
    tpu.vector_store %arg5[%c16_102, %c0_103], %204 {strides = array<i32>} : memref<200x256xf32, #tpu.memory_space<vmem>>, vector<8x256xf32>,
    %c254_i32_104 = arith.constant 254 : i32
    %218 = tpu.dynamic_rotate %204 by %c254_i32_104 dim 1 : vector<8x256xf32>, i32 -> vector<8x256xf32>
    %cst_105 = arith.constant 0.000000e+00 : f32
    %219 = vector.shape_cast %197 : vector<1x256xi1> to vector<1x256xi1>
    %220 = vector.broadcast %219 : vector<1x256xi1> to vector<8x256xi1>
    %221 = vector.broadcast %cst_105 : f32 to vector<8x256xf32>
    %222 = arith.select %220, %218, %221 : vector<8x256xi1>, vector<8x256xf32>
    %c24_106 = arith.constant 24 : index
    %c0_107 = arith.constant 0 : index
    %223 = vector.load %arg5[%c24_106, %c0_107] : memref<200x256xf32, #tpu.memory_space<vmem>>, vector<8x256xf32>
    tpu.vector_store %arg5[%c24_106, %c0_107], %222 {strides = array<i32>} : memref<200x256xf32, #tpu.memory_space<vmem>>, vector<8x256xf32>,
    %c252_i32 = arith.constant 252 : i32
    %224 = tpu.dynamic_rotate %204 by %c252_i32 dim 1 : vector<8x256xf32>, i32 -> vector<8x256xf32>
    %cst_108 = arith.constant 0.000000e+00 : f32
    %225 = vector.shape_cast %202 : vector<1x256xi1> to vector<1x256xi1>
    %226 = vector.broadcast %225 : vector<1x256xi1> to vector<8x256xi1>
    %227 = vector.broadcast %cst_108 : f32 to vector<8x256xf32>
    %228 = arith.select %226, %224, %227 : vector<8x256xi1>, vector<8x256xf32>
    %c32_109 = arith.constant 32 : index
    %c0_110 = arith.constant 0 : index
    %229 = vector.load %arg5[%c32_109, %c0_110] : memref<200x256xf32, #tpu.memory_space<vmem>>, vector<8x256xf32>
    tpu.vector_store %arg5[%c32_109, %c0_110], %228 {strides = array<i32>} : memref<200x256xf32, #tpu.memory_space<vmem>>, vector<8x256xf32>,
    %c0_111 = arith.constant 0 : index
    %c0_112 = arith.constant 0 : index
    %c608_113 = arith.constant 608 : index
    %230 = vector.load %arg1[%c0_111, %c0_112, %c608_113] : memref<1x8x1536xf32, #tpu.memory_space<vmem>>, vector<1x8x256xf32>
    %231 = vector.shape_cast %230 : vector<1x8x256xf32> to vector<8x256xf32>
    %c4_i32_114 = arith.constant 4 : i32
    %232 = tpu.dynamic_rotate %231 by %c4_i32_114 dim 1 : vector<8x256xf32>, i32 -> vector<8x256xf32>
    %cst_115 = arith.constant 0.000000e+00 : f32
    %233 = vector.shape_cast %187 : vector<1x256xi1> to vector<1x256xi1>
    %234 = vector.broadcast %233 : vector<1x256xi1> to vector<8x256xi1>
    %235 = vector.broadcast %cst_115 : f32 to vector<8x256xf32>
    %236 = arith.select %234, %232, %235 : vector<8x256xi1>, vector<8x256xf32>
    %c40_116 = arith.constant 40 : index
    %c0_117 = arith.constant 0 : index
    %237 = vector.load %arg5[%c40_116, %c0_117] : memref<200x256xf32, #tpu.memory_space<vmem>>, vector<8x256xf32>
    tpu.vector_store %arg5[%c40_116, %c0_117], %236 {strides = array<i32>} : memref<200x256xf32, #tpu.memory_space<vmem>>, vector<8x256xf32>,
    %c2_i32_118 = arith.constant 2 : i32
    %238 = tpu.dynamic_rotate %231 by %c2_i32_118 dim 1 : vector<8x256xf32>, i32 -> vector<8x256xf32>
    %cst_119 = arith.constant 0.000000e+00 : f32
    %239 = vector.shape_cast %192 : vector<1x256xi1> to vector<1x256xi1>
    %240 = vector.broadcast %239 : vector<1x256xi1> to vector<8x256xi1>
    %241 = vector.broadcast %cst_119 : f32 to vector<8x256xf32>
    %242 = arith.select %240, %238, %241 : vector<8x256xi1>, vector<8x256xf32>
    %c48_120 = arith.constant 48 : index
    %c0_121 = arith.constant 0 : index
    %243 = vector.load %arg5[%c48_120, %c0_121] : memref<200x256xf32, #tpu.memory_space<vmem>>, vector<8x256xf32>
    tpu.vector_store %arg5[%c48_120, %c0_121], %242 {strides = array<i32>} : memref<200x256xf32, #tpu.memory_space<vmem>>, vector<8x256xf32>,
    %c56_122 = arith.constant 56 : index
    %c0_123 = arith.constant 0 : index
    %244 = vector.load %arg5[%c56_122, %c0_123] : memref<200x256xf32, #tpu.memory_space<vmem>>, vector<8x256xf32>
    tpu.vector_store %arg5[%c56_122, %c0_123], %231 {strides = array<i32>} : memref<200x256xf32, #tpu.memory_space<vmem>>, vector<8x256xf32>,
    %c254_i32_124 = arith.constant 254 : i32
    %245 = tpu.dynamic_rotate %231 by %c254_i32_124 dim 1 : vector<8x256xf32>, i32 -> vector<8x256xf32>
    %cst_125 = arith.constant 0.000000e+00 : f32
    %246 = vector.shape_cast %197 : vector<1x256xi1> to vector<1x256xi1>
    %247 = vector.broadcast %246 : vector<1x256xi1> to vector<8x256xi1>
    %248 = vector.broadcast %cst_125 : f32 to vector<8x256xf32>
    %249 = arith.select %247, %245, %248 : vector<8x256xi1>, vector<8x256xf32>
    %c64_126 = arith.constant 64 : index
    %c0_127 = arith.constant 0 : index
    %250 = vector.load %arg5[%c64_126, %c0_127] : memref<200x256xf32, #tpu.memory_space<vmem>>, vector<8x256xf32>
    tpu.vector_store %arg5[%c64_126, %c0_127], %249 {strides = array<i32>} : memref<200x256xf32, #tpu.memory_space<vmem>>, vector<8x256xf32>,
    %c252_i32_128 = arith.constant 252 : i32
    %251 = tpu.dynamic_rotate %231 by %c252_i32_128 dim 1 : vector<8x256xf32>, i32 -> vector<8x256xf32>
    %cst_129 = arith.constant 0.000000e+00 : f32
    %252 = vector.shape_cast %202 : vector<1x256xi1> to vector<1x256xi1>
    %253 = vector.broadcast %252 : vector<1x256xi1> to vector<8x256xi1>
    %254 = vector.broadcast %cst_129 : f32 to vector<8x256xf32>
    %255 = arith.select %253, %251, %254 : vector<8x256xi1>, vector<8x256xf32>
    %c72_130 = arith.constant 72 : index
    %c0_131 = arith.constant 0 : index
    %256 = vector.load %arg5[%c72_130, %c0_131] : memref<200x256xf32, #tpu.memory_space<vmem>>, vector<8x256xf32>
    tpu.vector_store %arg5[%c72_130, %c0_131], %255 {strides = array<i32>} : memref<200x256xf32, #tpu.memory_space<vmem>>, vector<8x256xf32>,
    %c0_132 = arith.constant 0 : index
    %c0_133 = arith.constant 0 : index
    %c640_134 = arith.constant 640 : index
    %257 = vector.load %arg1[%c0_132, %c0_133, %c640_134] : memref<1x8x1536xf32, #tpu.memory_space<vmem>>, vector<1x8x256xf32>
    %258 = vector.shape_cast %257 : vector<1x8x256xf32> to vector<8x256xf32>
    %c4_i32_135 = arith.constant 4 : i32
    %259 = tpu.dynamic_rotate %258 by %c4_i32_135 dim 1 : vector<8x256xf32>, i32 -> vector<8x256xf32>
    %cst_136 = arith.constant 0.000000e+00 : f32
    %260 = vector.shape_cast %187 : vector<1x256xi1> to vector<1x256xi1>
    %261 = vector.broadcast %260 : vector<1x256xi1> to vector<8x256xi1>
    %262 = vector.broadcast %cst_136 : f32 to vector<8x256xf32>
    %263 = arith.select %261, %259, %262 : vector<8x256xi1>, vector<8x256xf32>
    %c80_137 = arith.constant 80 : index
    %c0_138 = arith.constant 0 : index
    %264 = vector.load %arg5[%c80_137, %c0_138] : memref<200x256xf32, #tpu.memory_space<vmem>>, vector<8x256xf32>
    tpu.vector_store %arg5[%c80_137, %c0_138], %263 {strides = array<i32>} : memref<200x256xf32, #tpu.memory_space<vmem>>, vector<8x256xf32>,
    %c2_i32_139 = arith.constant 2 : i32
    %265 = tpu.dynamic_rotate %258 by %c2_i32_139 dim 1 : vector<8x256xf32>, i32 -> vector<8x256xf32>
    %cst_140 = arith.constant 0.000000e+00 : f32
    %266 = vector.shape_cast %192 : vector<1x256xi1> to vector<1x256xi1>
    %267 = vector.broadcast %266 : vector<1x256xi1> to vector<8x256xi1>
    %268 = vector.broadcast %cst_140 : f32 to vector<8x256xf32>
    %269 = arith.select %267, %265, %268 : vector<8x256xi1>, vector<8x256xf32>
    %c88_141 = arith.constant 88 : index
    %c0_142 = arith.constant 0 : index
    %270 = vector.load %arg5[%c88_141, %c0_142] : memref<200x256xf32, #tpu.memory_space<vmem>>, vector<8x256xf32>
    tpu.vector_store %arg5[%c88_141, %c0_142], %269 {strides = array<i32>} : memref<200x256xf32, #tpu.memory_space<vmem>>, vector<8x256xf32>,
    %c96_143 = arith.constant 96 : index
    %c0_144 = arith.constant 0 : index
    %271 = vector.load %arg5[%c96_143, %c0_144] : memref<200x256xf32, #tpu.memory_space<vmem>>, vector<8x256xf32>
    tpu.vector_store %arg5[%c96_143, %c0_144], %258 {strides = array<i32>} : memref<200x256xf32, #tpu.memory_space<vmem>>, vector<8x256xf32>,
    %c254_i32_145 = arith.constant 254 : i32
    %272 = tpu.dynamic_rotate %258 by %c254_i32_145 dim 1 : vector<8x256xf32>, i32 -> vector<8x256xf32>
    %cst_146 = arith.constant 0.000000e+00 : f32
    %273 = vector.shape_cast %197 : vector<1x256xi1> to vector<1x256xi1>
    %274 = vector.broadcast %273 : vector<1x256xi1> to vector<8x256xi1>
    %275 = vector.broadcast %cst_146 : f32 to vector<8x256xf32>
    %276 = arith.select %274, %272, %275 : vector<8x256xi1>, vector<8x256xf32>
    %c104_147 = arith.constant 104 : index
    %c0_148 = arith.constant 0 : index
    %277 = vector.load %arg5[%c104_147, %c0_148] : memref<200x256xf32, #tpu.memory_space<vmem>>, vector<8x256xf32>
    tpu.vector_store %arg5[%c104_147, %c0_148], %276 {strides = array<i32>} : memref<200x256xf32, #tpu.memory_space<vmem>>, vector<8x256xf32>,
    %c252_i32_149 = arith.constant 252 : i32
    %278 = tpu.dynamic_rotate %258 by %c252_i32_149 dim 1 : vector<8x256xf32>, i32 -> vector<8x256xf32>
    %cst_150 = arith.constant 0.000000e+00 : f32
    %279 = vector.shape_cast %202 : vector<1x256xi1> to vector<1x256xi1>
    %280 = vector.broadcast %279 : vector<1x256xi1> to vector<8x256xi1>
    %281 = vector.broadcast %cst_150 : f32 to vector<8x256xf32>
    %282 = arith.select %280, %278, %281 : vector<8x256xi1>, vector<8x256xf32>
    %c112_151 = arith.constant 112 : index
    %c0_152 = arith.constant 0 : index
    %283 = vector.load %arg5[%c112_151, %c0_152] : memref<200x256xf32, #tpu.memory_space<vmem>>, vector<8x256xf32>
    tpu.vector_store %arg5[%c112_151, %c0_152], %282 {strides = array<i32>} : memref<200x256xf32, #tpu.memory_space<vmem>>, vector<8x256xf32>,
    %c0_153 = arith.constant 0 : index
    %c0_154 = arith.constant 0 : index
    %c672_155 = arith.constant 672 : index
    %284 = vector.load %arg1[%c0_153, %c0_154, %c672_155] : memref<1x8x1536xf32, #tpu.memory_space<vmem>>, vector<1x8x256xf32>
    %285 = vector.shape_cast %284 : vector<1x8x256xf32> to vector<8x256xf32>
    %c4_i32_156 = arith.constant 4 : i32
    %286 = tpu.dynamic_rotate %285 by %c4_i32_156 dim 1 : vector<8x256xf32>, i32 -> vector<8x256xf32>
    %cst_157 = arith.constant 0.000000e+00 : f32
    %287 = vector.shape_cast %187 : vector<1x256xi1> to vector<1x256xi1>
    %288 = vector.broadcast %287 : vector<1x256xi1> to vector<8x256xi1>
    %289 = vector.broadcast %cst_157 : f32 to vector<8x256xf32>
    %290 = arith.select %288, %286, %289 : vector<8x256xi1>, vector<8x256xf32>
    %c120_158 = arith.constant 120 : index
    %c0_159 = arith.constant 0 : index
    %291 = vector.load %arg5[%c120_158, %c0_159] : memref<200x256xf32, #tpu.memory_space<vmem>>, vector<8x256xf32>
    tpu.vector_store %arg5[%c120_158, %c0_159], %290 {strides = array<i32>} : memref<200x256xf32, #tpu.memory_space<vmem>>, vector<8x256xf32>,
    %c2_i32_160 = arith.constant 2 : i32
    %292 = tpu.dynamic_rotate %285 by %c2_i32_160 dim 1 : vector<8x256xf32>, i32 -> vector<8x256xf32>
    %cst_161 = arith.constant 0.000000e+00 : f32
    %293 = vector.shape_cast %192 : vector<1x256xi1> to vector<1x256xi1>
    %294 = vector.broadcast %293 : vector<1x256xi1> to vector<8x256xi1>
    %295 = vector.broadcast %cst_161 : f32 to vector<8x256xf32>
    %296 = arith.select %294, %292, %295 : vector<8x256xi1>, vector<8x256xf32>
    %c128_162 = arith.constant 128 : index
    %c0_163 = arith.constant 0 : index
    %297 = vector.load %arg5[%c128_162, %c0_163] : memref<200x256xf32, #tpu.memory_space<vmem>>, vector<8x256xf32>
    tpu.vector_store %arg5[%c128_162, %c0_163], %296 {strides = array<i32>} : memref<200x256xf32, #tpu.memory_space<vmem>>, vector<8x256xf32>,
    %c136_164 = arith.constant 136 : index
    %c0_165 = arith.constant 0 : index
    %298 = vector.load %arg5[%c136_164, %c0_165] : memref<200x256xf32, #tpu.memory_space<vmem>>, vector<8x256xf32>
    tpu.vector_store %arg5[%c136_164, %c0_165], %285 {strides = array<i32>} : memref<200x256xf32, #tpu.memory_space<vmem>>, vector<8x256xf32>,
    %c254_i32_166 = arith.constant 254 : i32
    %299 = tpu.dynamic_rotate %285 by %c254_i32_166 dim 1 : vector<8x256xf32>, i32 -> vector<8x256xf32>
    %cst_167 = arith.constant 0.000000e+00 : f32
    %300 = vector.shape_cast %197 : vector<1x256xi1> to vector<1x256xi1>
    %301 = vector.broadcast %300 : vector<1x256xi1> to vector<8x256xi1>
    %302 = vector.broadcast %cst_167 : f32 to vector<8x256xf32>
    %303 = arith.select %301, %299, %302 : vector<8x256xi1>, vector<8x256xf32>
    %c144_168 = arith.constant 144 : index
    %c0_169 = arith.constant 0 : index
    %304 = vector.load %arg5[%c144_168, %c0_169] : memref<200x256xf32, #tpu.memory_space<vmem>>, vector<8x256xf32>
    tpu.vector_store %arg5[%c144_168, %c0_169], %303 {strides = array<i32>} : memref<200x256xf32, #tpu.memory_space<vmem>>, vector<8x256xf32>,
    %c252_i32_170 = arith.constant 252 : i32
    %305 = tpu.dynamic_rotate %285 by %c252_i32_170 dim 1 : vector<8x256xf32>, i32 -> vector<8x256xf32>
    %cst_171 = arith.constant 0.000000e+00 : f32
    %306 = vector.shape_cast %202 : vector<1x256xi1> to vector<1x256xi1>
    %307 = vector.broadcast %306 : vector<1x256xi1> to vector<8x256xi1>
    %308 = vector.broadcast %cst_171 : f32 to vector<8x256xf32>
    %309 = arith.select %307, %305, %308 : vector<8x256xi1>, vector<8x256xf32>
    %c152_172 = arith.constant 152 : index
    %c0_173 = arith.constant 0 : index
    %310 = vector.load %arg5[%c152_172, %c0_173] : memref<200x256xf32, #tpu.memory_space<vmem>>, vector<8x256xf32>
    tpu.vector_store %arg5[%c152_172, %c0_173], %309 {strides = array<i32>} : memref<200x256xf32, #tpu.memory_space<vmem>>, vector<8x256xf32>,
    %c0_174 = arith.constant 0 : index
    %c0_175 = arith.constant 0 : index
    %c704 = arith.constant 704 : index
    %311 = vector.load %arg1[%c0_174, %c0_175, %c704] : memref<1x8x1536xf32, #tpu.memory_space<vmem>>, vector<1x8x256xf32>
    %312 = vector.shape_cast %311 : vector<1x8x256xf32> to vector<8x256xf32>
    %c4_i32_176 = arith.constant 4 : i32
    %313 = tpu.dynamic_rotate %312 by %c4_i32_176 dim 1 : vector<8x256xf32>, i32 -> vector<8x256xf32>
    %cst_177 = arith.constant 0.000000e+00 : f32
    %314 = vector.shape_cast %187 : vector<1x256xi1> to vector<1x256xi1>
    %315 = vector.broadcast %314 : vector<1x256xi1> to vector<8x256xi1>
    %316 = vector.broadcast %cst_177 : f32 to vector<8x256xf32>
    %317 = arith.select %315, %313, %316 : vector<8x256xi1>, vector<8x256xf32>
    %c160_178 = arith.constant 160 : index
    %c0_179 = arith.constant 0 : index
    %318 = vector.load %arg5[%c160_178, %c0_179] : memref<200x256xf32, #tpu.memory_space<vmem>>, vector<8x256xf32>
    tpu.vector_store %arg5[%c160_178, %c0_179], %317 {strides = array<i32>} : memref<200x256xf32, #tpu.memory_space<vmem>>, vector<8x256xf32>,
    %c2_i32_180 = arith.constant 2 : i32
    %319 = tpu.dynamic_rotate %312 by %c2_i32_180 dim 1 : vector<8x256xf32>, i32 -> vector<8x256xf32>
    %cst_181 = arith.constant 0.000000e+00 : f32
    %320 = vector.shape_cast %192 : vector<1x256xi1> to vector<1x256xi1>
    %321 = vector.broadcast %320 : vector<1x256xi1> to vector<8x256xi1>
    %322 = vector.broadcast %cst_181 : f32 to vector<8x256xf32>
    %323 = arith.select %321, %319, %322 : vector<8x256xi1>, vector<8x256xf32>
    %c168_182 = arith.constant 168 : index
    %c0_183 = arith.constant 0 : index
    %324 = vector.load %arg5[%c168_182, %c0_183] : memref<200x256xf32, #tpu.memory_space<vmem>>, vector<8x256xf32>
    tpu.vector_store %arg5[%c168_182, %c0_183], %323 {strides = array<i32>} : memref<200x256xf32, #tpu.memory_space<vmem>>, vector<8x256xf32>,
    %c176_184 = arith.constant 176 : index
    %c0_185 = arith.constant 0 : index
    %325 = vector.load %arg5[%c176_184, %c0_185] : memref<200x256xf32, #tpu.memory_space<vmem>>, vector<8x256xf32>
    tpu.vector_store %arg5[%c176_184, %c0_185], %312 {strides = array<i32>} : memref<200x256xf32, #tpu.memory_space<vmem>>, vector<8x256xf32>,
    %c254_i32_186 = arith.constant 254 : i32
    %326 = tpu.dynamic_rotate %312 by %c254_i32_186 dim 1 : vector<8x256xf32>, i32 -> vector<8x256xf32>
    %cst_187 = arith.constant 0.000000e+00 : f32
    %327 = vector.shape_cast %197 : vector<1x256xi1> to vector<1x256xi1>
    %328 = vector.broadcast %327 : vector<1x256xi1> to vector<8x256xi1>
    %329 = vector.broadcast %cst_187 : f32 to vector<8x256xf32>
    %330 = arith.select %328, %326, %329 : vector<8x256xi1>, vector<8x256xf32>
    %c184_188 = arith.constant 184 : index
    %c0_189 = arith.constant 0 : index
    %331 = vector.load %arg5[%c184_188, %c0_189] : memref<200x256xf32, #tpu.memory_space<vmem>>, vector<8x256xf32>
    tpu.vector_store %arg5[%c184_188, %c0_189], %330 {strides = array<i32>} : memref<200x256xf32, #tpu.memory_space<vmem>>, vector<8x256xf32>,
    %c252_i32_190 = arith.constant 252 : i32
    %332 = tpu.dynamic_rotate %312 by %c252_i32_190 dim 1 : vector<8x256xf32>, i32 -> vector<8x256xf32>
    %cst_191 = arith.constant 0.000000e+00 : f32
    %333 = vector.shape_cast %202 : vector<1x256xi1> to vector<1x256xi1>
    %334 = vector.broadcast %333 : vector<1x256xi1> to vector<8x256xi1>
    %335 = vector.broadcast %cst_191 : f32 to vector<8x256xf32>
    %336 = arith.select %334, %332, %335 : vector<8x256xi1>, vector<8x256xf32>
    %c192_192 = arith.constant 192 : index
    %c0_193 = arith.constant 0 : index
    %337 = vector.load %arg5[%c192_192, %c0_193] : memref<200x256xf32, #tpu.memory_space<vmem>>, vector<8x256xf32>
    tpu.vector_store %arg5[%c192_192, %c0_193], %336 {strides = array<i32>} : memref<200x256xf32, #tpu.memory_space<vmem>>, vector<8x256xf32>,
    %c1 = arith.constant 1 : index
    %c0_194 = arith.constant 0 : index
    %c0_195 = arith.constant 0 : index
    %338 = vector.load %arg2[%c1, %c0_194, %c0_195] : memref<5x8x200xf32, #tpu.memory_space<vmem>>, vector<1x8x200xf32>
    %339 = vector.shape_cast %338 : vector<1x8x200xf32> to vector<8x200xf32>
    %c0_196 = arith.constant 0 : index
    %c0_197 = arith.constant 0 : index
    %340 = vector.load %arg5[%c0_196, %c0_197] : memref<200x256xf32, #tpu.memory_space<vmem>>, vector<200x256xf32>
    %cst_198 = arith.constant dense<0.000000e+00> : vector<8x256xf32>
    %341 = tpu.matmul %339, %340, %cst_198 {dimension_numbers = #tpu.dot_dimension_numbers<[1], [0], [0], [1], [0, 0, 1, 1], [], []>} : vector<8x200xf32>, vector<200x256xf32>, vector<8x256xf32> -> vector<8x256xf32>
    %c1_199 = arith.constant 1 : index
    %c0_200 = arith.constant 0 : index
    %c0_201 = arith.constant 0 : index
    %342 = vector.load %arg3[%c1_199, %c0_200, %c0_201] : memref<5x8x1xf32, #tpu.memory_space<vmem>>, vector<1x8x1xf32>
    %343 = vector.shape_cast %342 : vector<1x8x1xf32> to vector<8x1xf32>
    %344 = vector.broadcast %343 : vector<8x1xf32> to vector<8x256xf32>
    %345 = arith.addf %341, %344 : vector<8x256xf32>
    %c0_202 = arith.constant 0 : index
    %c8_203 = arith.constant 8 : index
    %c0_204 = arith.constant 0 : index
    %346 = vector.load %arg4[%c0_202, %c8_203, %c0_204] : memref<1x40x256xf32, #tpu.memory_space<vmem>>, vector<1x8x256xf32>
    %347 = vector.shape_cast %346 : vector<1x8x256xf32> to vector<8x256xf32>
    %348 = vector.shape_cast %345 : vector<8x256xf32> to vector<1x8x256xf32>
    tpu.vector_store %arg4[%c0_202, %c8_203, %c0_204], %348 {strides = array<i32>} : memref<1x40x256xf32, #tpu.memory_space<vmem>>, vector<1x8x256xf32>,
    %c8_i32 = arith.constant 8 : i32
    %349 = vector.broadcast %c8_i32 : i32 to vector<1x256xi32>
    %350 = arith.cmpi sge, %16, %349 : vector<1x256xi32>
    %c24_i32 = arith.constant 24 : i32
    %351 = vector.broadcast %c24_i32 : i32 to vector<1x256xi32>
    %352 = arith.cmpi slt, %16, %351 : vector<1x256xi32>
    %353 = arith.andi %350, %352 : vector<1x256xi1>
    %c4_i32_205 = arith.constant 4 : i32
    %354 = vector.broadcast %c4_i32_205 : i32 to vector<1x256xi32>
    %355 = arith.cmpi sge, %16, %354 : vector<1x256xi32>
    %c20_i32_206 = arith.constant 20 : i32
    %356 = vector.broadcast %c20_i32_206 : i32 to vector<1x256xi32>
    %357 = arith.cmpi slt, %16, %356 : vector<1x256xi32>
    %358 = arith.andi %355, %357 : vector<1x256xi1>
    %c-4_i32_207 = arith.constant -4 : i32
    %359 = vector.broadcast %c-4_i32_207 : i32 to vector<1x256xi32>
    %360 = arith.cmpi sge, %16, %359 : vector<1x256xi32>
    %c12_i32_208 = arith.constant 12 : i32
    %361 = vector.broadcast %c12_i32_208 : i32 to vector<1x256xi32>
    %362 = arith.cmpi slt, %16, %361 : vector<1x256xi32>
    %363 = arith.andi %360, %362 : vector<1x256xi1>
    %c-8_i32 = arith.constant -8 : i32
    %364 = vector.broadcast %c-8_i32 : i32 to vector<1x256xi32>
    %365 = arith.cmpi sge, %16, %364 : vector<1x256xi32>
    %c8_i32_209 = arith.constant 8 : i32
    %366 = vector.broadcast %c8_i32_209 : i32 to vector<1x256xi32>
    %367 = arith.cmpi slt, %16, %366 : vector<1x256xi32>
    %368 = arith.andi %365, %367 : vector<1x256xi1>
    %c0_210 = arith.constant 0 : index
    %c0_211 = arith.constant 0 : index
    %c512 = arith.constant 512 : index
    %369 = vector.load %arg1[%c0_210, %c0_211, %c512] : memref<1x8x1536xf32, #tpu.memory_space<vmem>>, vector<1x8x256xf32>
    %370 = vector.shape_cast %369 : vector<1x8x256xf32> to vector<8x256xf32>
    %c8_i32_212 = arith.constant 8 : i32
    %371 = tpu.dynamic_rotate %370 by %c8_i32_212 dim 1 : vector<8x256xf32>, i32 -> vector<8x256xf32>
    %cst_213 = arith.constant 0.000000e+00 : f32
    %372 = vector.shape_cast %353 : vector<1x256xi1> to vector<1x256xi1>
    %373 = vector.broadcast %372 : vector<1x256xi1> to vector<8x256xi1>
    %374 = vector.broadcast %cst_213 : f32 to vector<8x256xf32>
    %375 = arith.select %373, %371, %374 : vector<8x256xi1>, vector<8x256xf32>
    %c0_214 = arith.constant 0 : index
    %c0_215 = arith.constant 0 : index
    %376 = vector.load %arg5[%c0_214, %c0_215] : memref<200x256xf32, #tpu.memory_space<vmem>>, vector<8x256xf32>
    tpu.vector_store %arg5[%c0_214, %c0_215], %375 {strides = array<i32>} : memref<200x256xf32, #tpu.memory_space<vmem>>, vector<8x256xf32>,
    %c4_i32_216 = arith.constant 4 : i32
    %377 = tpu.dynamic_rotate %370 by %c4_i32_216 dim 1 : vector<8x256xf32>, i32 -> vector<8x256xf32>
    %cst_217 = arith.constant 0.000000e+00 : f32
    %378 = vector.shape_cast %358 : vector<1x256xi1> to vector<1x256xi1>
    %379 = vector.broadcast %378 : vector<1x256xi1> to vector<8x256xi1>
    %380 = vector.broadcast %cst_217 : f32 to vector<8x256xf32>
    %381 = arith.select %379, %377, %380 : vector<8x256xi1>, vector<8x256xf32>
    %c8_218 = arith.constant 8 : index
    %c0_219 = arith.constant 0 : index
    %382 = vector.load %arg5[%c8_218, %c0_219] : memref<200x256xf32, #tpu.memory_space<vmem>>, vector<8x256xf32>
    tpu.vector_store %arg5[%c8_218, %c0_219], %381 {strides = array<i32>} : memref<200x256xf32, #tpu.memory_space<vmem>>, vector<8x256xf32>,
    %c16_220 = arith.constant 16 : index
    %c0_221 = arith.constant 0 : index
    %383 = vector.load %arg5[%c16_220, %c0_221] : memref<200x256xf32, #tpu.memory_space<vmem>>, vector<8x256xf32>
    tpu.vector_store %arg5[%c16_220, %c0_221], %370 {strides = array<i32>} : memref<200x256xf32, #tpu.memory_space<vmem>>, vector<8x256xf32>,
    %c252_i32_222 = arith.constant 252 : i32
    %384 = tpu.dynamic_rotate %370 by %c252_i32_222 dim 1 : vector<8x256xf32>, i32 -> vector<8x256xf32>
    %cst_223 = arith.constant 0.000000e+00 : f32
    %385 = vector.shape_cast %363 : vector<1x256xi1> to vector<1x256xi1>
    %386 = vector.broadcast %385 : vector<1x256xi1> to vector<8x256xi1>
    %387 = vector.broadcast %cst_223 : f32 to vector<8x256xf32>
    %388 = arith.select %386, %384, %387 : vector<8x256xi1>, vector<8x256xf32>
    %c24_224 = arith.constant 24 : index
    %c0_225 = arith.constant 0 : index
    %389 = vector.load %arg5[%c24_224, %c0_225] : memref<200x256xf32, #tpu.memory_space<vmem>>, vector<8x256xf32>
    tpu.vector_store %arg5[%c24_224, %c0_225], %388 {strides = array<i32>} : memref<200x256xf32, #tpu.memory_space<vmem>>, vector<8x256xf32>,
    %c248_i32 = arith.constant 248 : i32
    %390 = tpu.dynamic_rotate %370 by %c248_i32 dim 1 : vector<8x256xf32>, i32 -> vector<8x256xf32>
    %cst_226 = arith.constant 0.000000e+00 : f32
    %391 = vector.shape_cast %368 : vector<1x256xi1> to vector<1x256xi1>
    %392 = vector.broadcast %391 : vector<1x256xi1> to vector<8x256xi1>
    %393 = vector.broadcast %cst_226 : f32 to vector<8x256xf32>
    %394 = arith.select %392, %390, %393 : vector<8x256xi1>, vector<8x256xf32>
    %c32_227 = arith.constant 32 : index
    %c0_228 = arith.constant 0 : index
    %395 = vector.load %arg5[%c32_227, %c0_228] : memref<200x256xf32, #tpu.memory_space<vmem>>, vector<8x256xf32>
    tpu.vector_store %arg5[%c32_227, %c0_228], %394 {strides = array<i32>} : memref<200x256xf32, #tpu.memory_space<vmem>>, vector<8x256xf32>,
    %c0_229 = arith.constant 0 : index
    %c0_230 = arith.constant 0 : index
    %c576_231 = arith.constant 576 : index
    %396 = vector.load %arg1[%c0_229, %c0_230, %c576_231] : memref<1x8x1536xf32, #tpu.memory_space<vmem>>, vector<1x8x256xf32>
    %397 = vector.shape_cast %396 : vector<1x8x256xf32> to vector<8x256xf32>
    %c8_i32_232 = arith.constant 8 : i32
    %398 = tpu.dynamic_rotate %397 by %c8_i32_232 dim 1 : vector<8x256xf32>, i32 -> vector<8x256xf32>
    %cst_233 = arith.constant 0.000000e+00 : f32
    %399 = vector.shape_cast %353 : vector<1x256xi1> to vector<1x256xi1>
    %400 = vector.broadcast %399 : vector<1x256xi1> to vector<8x256xi1>
    %401 = vector.broadcast %cst_233 : f32 to vector<8x256xf32>
    %402 = arith.select %400, %398, %401 : vector<8x256xi1>, vector<8x256xf32>
    %c40_234 = arith.constant 40 : index
    %c0_235 = arith.constant 0 : index
    %403 = vector.load %arg5[%c40_234, %c0_235] : memref<200x256xf32, #tpu.memory_space<vmem>>, vector<8x256xf32>
    tpu.vector_store %arg5[%c40_234, %c0_235], %402 {strides = array<i32>} : memref<200x256xf32, #tpu.memory_space<vmem>>, vector<8x256xf32>,
    %c4_i32_236 = arith.constant 4 : i32
    %404 = tpu.dynamic_rotate %397 by %c4_i32_236 dim 1 : vector<8x256xf32>, i32 -> vector<8x256xf32>
    %cst_237 = arith.constant 0.000000e+00 : f32
    %405 = vector.shape_cast %358 : vector<1x256xi1> to vector<1x256xi1>
    %406 = vector.broadcast %405 : vector<1x256xi1> to vector<8x256xi1>
    %407 = vector.broadcast %cst_237 : f32 to vector<8x256xf32>
    %408 = arith.select %406, %404, %407 : vector<8x256xi1>, vector<8x256xf32>
    %c48_238 = arith.constant 48 : index
    %c0_239 = arith.constant 0 : index
    %409 = vector.load %arg5[%c48_238, %c0_239] : memref<200x256xf32, #tpu.memory_space<vmem>>, vector<8x256xf32>
    tpu.vector_store %arg5[%c48_238, %c0_239], %408 {strides = array<i32>} : memref<200x256xf32, #tpu.memory_space<vmem>>, vector<8x256xf32>,
    %c56_240 = arith.constant 56 : index
    %c0_241 = arith.constant 0 : index
    %410 = vector.load %arg5[%c56_240, %c0_241] : memref<200x256xf32, #tpu.memory_space<vmem>>, vector<8x256xf32>
    tpu.vector_store %arg5[%c56_240, %c0_241], %397 {strides = array<i32>} : memref<200x256xf32, #tpu.memory_space<vmem>>, vector<8x256xf32>,
    %c252_i32_242 = arith.constant 252 : i32
    %411 = tpu.dynamic_rotate %397 by %c252_i32_242 dim 1 : vector<8x256xf32>, i32 -> vector<8x256xf32>
    %cst_243 = arith.constant 0.000000e+00 : f32
    %412 = vector.shape_cast %363 : vector<1x256xi1> to vector<1x256xi1>
    %413 = vector.broadcast %412 : vector<1x256xi1> to vector<8x256xi1>
    %414 = vector.broadcast %cst_243 : f32 to vector<8x256xf32>
    %415 = arith.select %413, %411, %414 : vector<8x256xi1>, vector<8x256xf32>
    %c64_244 = arith.constant 64 : index
    %c0_245 = arith.constant 0 : index
    %416 = vector.load %arg5[%c64_244, %c0_245] : memref<200x256xf32, #tpu.memory_space<vmem>>, vector<8x256xf32>
    tpu.vector_store %arg5[%c64_244, %c0_245], %415 {strides = array<i32>} : memref<200x256xf32, #tpu.memory_space<vmem>>, vector<8x256xf32>,
    %c248_i32_246 = arith.constant 248 : i32
    %417 = tpu.dynamic_rotate %397 by %c248_i32_246 dim 1 : vector<8x256xf32>, i32 -> vector<8x256xf32>
    %cst_247 = arith.constant 0.000000e+00 : f32
    %418 = vector.shape_cast %368 : vector<1x256xi1> to vector<1x256xi1>
    %419 = vector.broadcast %418 : vector<1x256xi1> to vector<8x256xi1>
    %420 = vector.broadcast %cst_247 : f32 to vector<8x256xf32>
    %421 = arith.select %419, %417, %420 : vector<8x256xi1>, vector<8x256xf32>
    %c72_248 = arith.constant 72 : index
    %c0_249 = arith.constant 0 : index
    %422 = vector.load %arg5[%c72_248, %c0_249] : memref<200x256xf32, #tpu.memory_space<vmem>>, vector<8x256xf32>
    tpu.vector_store %arg5[%c72_248, %c0_249], %421 {strides = array<i32>} : memref<200x256xf32, #tpu.memory_space<vmem>>, vector<8x256xf32>,
    %c0_250 = arith.constant 0 : index
    %c0_251 = arith.constant 0 : index
    %c640_252 = arith.constant 640 : index
    %423 = vector.load %arg1[%c0_250, %c0_251, %c640_252] : memref<1x8x1536xf32, #tpu.memory_space<vmem>>, vector<1x8x256xf32>
    %424 = vector.shape_cast %423 : vector<1x8x256xf32> to vector<8x256xf32>
    %c8_i32_253 = arith.constant 8 : i32
    %425 = tpu.dynamic_rotate %424 by %c8_i32_253 dim 1 : vector<8x256xf32>, i32 -> vector<8x256xf32>
    %cst_254 = arith.constant 0.000000e+00 : f32
    %426 = vector.shape_cast %353 : vector<1x256xi1> to vector<1x256xi1>
    %427 = vector.broadcast %426 : vector<1x256xi1> to vector<8x256xi1>
    %428 = vector.broadcast %cst_254 : f32 to vector<8x256xf32>
    %429 = arith.select %427, %425, %428 : vector<8x256xi1>, vector<8x256xf32>
    %c80_255 = arith.constant 80 : index
    %c0_256 = arith.constant 0 : index
    %430 = vector.load %arg5[%c80_255, %c0_256] : memref<200x256xf32, #tpu.memory_space<vmem>>, vector<8x256xf32>
    tpu.vector_store %arg5[%c80_255, %c0_256], %429 {strides = array<i32>} : memref<200x256xf32, #tpu.memory_space<vmem>>, vector<8x256xf32>,
    %c4_i32_257 = arith.constant 4 : i32
    %431 = tpu.dynamic_rotate %424 by %c4_i32_257 dim 1 : vector<8x256xf32>, i32 -> vector<8x256xf32>
    %cst_258 = arith.constant 0.000000e+00 : f32
    %432 = vector.shape_cast %358 : vector<1x256xi1> to vector<1x256xi1>
    %433 = vector.broadcast %432 : vector<1x256xi1> to vector<8x256xi1>
    %434 = vector.broadcast %cst_258 : f32 to vector<8x256xf32>
    %435 = arith.select %433, %431, %434 : vector<8x256xi1>, vector<8x256xf32>
    %c88_259 = arith.constant 88 : index
    %c0_260 = arith.constant 0 : index
    %436 = vector.load %arg5[%c88_259, %c0_260] : memref<200x256xf32, #tpu.memory_space<vmem>>, vector<8x256xf32>
    tpu.vector_store %arg5[%c88_259, %c0_260], %435 {strides = array<i32>} : memref<200x256xf32, #tpu.memory_space<vmem>>, vector<8x256xf32>,
    %c96_261 = arith.constant 96 : index
    %c0_262 = arith.constant 0 : index
    %437 = vector.load %arg5[%c96_261, %c0_262] : memref<200x256xf32, #tpu.memory_space<vmem>>, vector<8x256xf32>
    tpu.vector_store %arg5[%c96_261, %c0_262], %424 {strides = array<i32>} : memref<200x256xf32, #tpu.memory_space<vmem>>, vector<8x256xf32>,
    %c252_i32_263 = arith.constant 252 : i32
    %438 = tpu.dynamic_rotate %424 by %c252_i32_263 dim 1 : vector<8x256xf32>, i32 -> vector<8x256xf32>
    %cst_264 = arith.constant 0.000000e+00 : f32
    %439 = vector.shape_cast %363 : vector<1x256xi1> to vector<1x256xi1>
    %440 = vector.broadcast %439 : vector<1x256xi1> to vector<8x256xi1>
    %441 = vector.broadcast %cst_264 : f32 to vector<8x256xf32>
    %442 = arith.select %440, %438, %441 : vector<8x256xi1>, vector<8x256xf32>
    %c104_265 = arith.constant 104 : index
    %c0_266 = arith.constant 0 : index
    %443 = vector.load %arg5[%c104_265, %c0_266] : memref<200x256xf32, #tpu.memory_space<vmem>>, vector<8x256xf32>
    tpu.vector_store %arg5[%c104_265, %c0_266], %442 {strides = array<i32>} : memref<200x256xf32, #tpu.memory_space<vmem>>, vector<8x256xf32>,
    %c248_i32_267 = arith.constant 248 : i32
    %444 = tpu.dynamic_rotate %424 by %c248_i32_267 dim 1 : vector<8x256xf32>, i32 -> vector<8x256xf32>
    %cst_268 = arith.constant 0.000000e+00 : f32
    %445 = vector.shape_cast %368 : vector<1x256xi1> to vector<1x256xi1>
    %446 = vector.broadcast %445 : vector<1x256xi1> to vector<8x256xi1>
    %447 = vector.broadcast %cst_268 : f32 to vector<8x256xf32>
    %448 = arith.select %446, %444, %447 : vector<8x256xi1>, vector<8x256xf32>
    %c112_269 = arith.constant 112 : index
    %c0_270 = arith.constant 0 : index
    %449 = vector.load %arg5[%c112_269, %c0_270] : memref<200x256xf32, #tpu.memory_space<vmem>>, vector<8x256xf32>
    tpu.vector_store %arg5[%c112_269, %c0_270], %448 {strides = array<i32>} : memref<200x256xf32, #tpu.memory_space<vmem>>, vector<8x256xf32>,
    %c0_271 = arith.constant 0 : index
    %c0_272 = arith.constant 0 : index
    %c704_273 = arith.constant 704 : index
    %450 = vector.load %arg1[%c0_271, %c0_272, %c704_273] : memref<1x8x1536xf32, #tpu.memory_space<vmem>>, vector<1x8x256xf32>
    %451 = vector.shape_cast %450 : vector<1x8x256xf32> to vector<8x256xf32>
    %c8_i32_274 = arith.constant 8 : i32
    %452 = tpu.dynamic_rotate %451 by %c8_i32_274 dim 1 : vector<8x256xf32>, i32 -> vector<8x256xf32>
    %cst_275 = arith.constant 0.000000e+00 : f32
    %453 = vector.shape_cast %353 : vector<1x256xi1> to vector<1x256xi1>
    %454 = vector.broadcast %453 : vector<1x256xi1> to vector<8x256xi1>
    %455 = vector.broadcast %cst_275 : f32 to vector<8x256xf32>
    %456 = arith.select %454, %452, %455 : vector<8x256xi1>, vector<8x256xf32>
    %c120_276 = arith.constant 120 : index
    %c0_277 = arith.constant 0 : index
    %457 = vector.load %arg5[%c120_276, %c0_277] : memref<200x256xf32, #tpu.memory_space<vmem>>, vector<8x256xf32>
    tpu.vector_store %arg5[%c120_276, %c0_277], %456 {strides = array<i32>} : memref<200x256xf32, #tpu.memory_space<vmem>>, vector<8x256xf32>,
    %c4_i32_278 = arith.constant 4 : i32
    %458 = tpu.dynamic_rotate %451 by %c4_i32_278 dim 1 : vector<8x256xf32>, i32 -> vector<8x256xf32>
    %cst_279 = arith.constant 0.000000e+00 : f32
    %459 = vector.shape_cast %358 : vector<1x256xi1> to vector<1x256xi1>
    %460 = vector.broadcast %459 : vector<1x256xi1> to vector<8x256xi1>
    %461 = vector.broadcast %cst_279 : f32 to vector<8x256xf32>
    %462 = arith.select %460, %458, %461 : vector<8x256xi1>, vector<8x256xf32>
    %c128_280 = arith.constant 128 : index
    %c0_281 = arith.constant 0 : index
    %463 = vector.load %arg5[%c128_280, %c0_281] : memref<200x256xf32, #tpu.memory_space<vmem>>, vector<8x256xf32>
    tpu.vector_store %arg5[%c128_280, %c0_281], %462 {strides = array<i32>} : memref<200x256xf32, #tpu.memory_space<vmem>>, vector<8x256xf32>,
    %c136_282 = arith.constant 136 : index
    %c0_283 = arith.constant 0 : index
    %464 = vector.load %arg5[%c136_282, %c0_283] : memref<200x256xf32, #tpu.memory_space<vmem>>, vector<8x256xf32>
    tpu.vector_store %arg5[%c136_282, %c0_283], %451 {strides = array<i32>} : memref<200x256xf32, #tpu.memory_space<vmem>>, vector<8x256xf32>,
    %c252_i32_284 = arith.constant 252 : i32
    %465 = tpu.dynamic_rotate %451 by %c252_i32_284 dim 1 : vector<8x256xf32>, i32 -> vector<8x256xf32>
    %cst_285 = arith.constant 0.000000e+00 : f32
    %466 = vector.shape_cast %363 : vector<1x256xi1> to vector<1x256xi1>
    %467 = vector.broadcast %466 : vector<1x256xi1> to vector<8x256xi1>
    %468 = vector.broadcast %cst_285 : f32 to vector<8x256xf32>
    %469 = arith.select %467, %465, %468 : vector<8x256xi1>, vector<8x256xf32>
    %c144_286 = arith.constant 144 : index
    %c0_287 = arith.constant 0 : index
    %470 = vector.load %arg5[%c144_286, %c0_287] : memref<200x256xf32, #tpu.memory_space<vmem>>, vector<8x256xf32>
    tpu.vector_store %arg5[%c144_286, %c0_287], %469 {strides = array<i32>} : memref<200x256xf32, #tpu.memory_space<vmem>>, vector<8x256xf32>,
    %c248_i32_288 = arith.constant 248 : i32
    %471 = tpu.dynamic_rotate %451 by %c248_i32_288 dim 1 : vector<8x256xf32>, i32 -> vector<8x256xf32>
    %cst_289 = arith.constant 0.000000e+00 : f32
    %472 = vector.shape_cast %368 : vector<1x256xi1> to vector<1x256xi1>
    %473 = vector.broadcast %472 : vector<1x256xi1> to vector<8x256xi1>
    %474 = vector.broadcast %cst_289 : f32 to vector<8x256xf32>
    %475 = arith.select %473, %471, %474 : vector<8x256xi1>, vector<8x256xf32>
    %c152_290 = arith.constant 152 : index
    %c0_291 = arith.constant 0 : index
    %476 = vector.load %arg5[%c152_290, %c0_291] : memref<200x256xf32, #tpu.memory_space<vmem>>, vector<8x256xf32>
    tpu.vector_store %arg5[%c152_290, %c0_291], %475 {strides = array<i32>} : memref<200x256xf32, #tpu.memory_space<vmem>>, vector<8x256xf32>,
    %c0_292 = arith.constant 0 : index
    %c0_293 = arith.constant 0 : index
    %c768 = arith.constant 768 : index
    %477 = vector.load %arg1[%c0_292, %c0_293, %c768] : memref<1x8x1536xf32, #tpu.memory_space<vmem>>, vector<1x8x256xf32>
    %478 = vector.shape_cast %477 : vector<1x8x256xf32> to vector<8x256xf32>
    %c8_i32_294 = arith.constant 8 : i32
    %479 = tpu.dynamic_rotate %478 by %c8_i32_294 dim 1 : vector<8x256xf32>, i32 -> vector<8x256xf32>
    %cst_295 = arith.constant 0.000000e+00 : f32
    %480 = vector.shape_cast %353 : vector<1x256xi1> to vector<1x256xi1>
    %481 = vector.broadcast %480 : vector<1x256xi1> to vector<8x256xi1>
    %482 = vector.broadcast %cst_295 : f32 to vector<8x256xf32>
    %483 = arith.select %481, %479, %482 : vector<8x256xi1>, vector<8x256xf32>
    %c160_296 = arith.constant 160 : index
    %c0_297 = arith.constant 0 : index
    %484 = vector.load %arg5[%c160_296, %c0_297] : memref<200x256xf32, #tpu.memory_space<vmem>>, vector<8x256xf32>
    tpu.vector_store %arg5[%c160_296, %c0_297], %483 {strides = array<i32>} : memref<200x256xf32, #tpu.memory_space<vmem>>, vector<8x256xf32>,
    %c4_i32_298 = arith.constant 4 : i32
    %485 = tpu.dynamic_rotate %478 by %c4_i32_298 dim 1 : vector<8x256xf32>, i32 -> vector<8x256xf32>
    %cst_299 = arith.constant 0.000000e+00 : f32
    %486 = vector.shape_cast %358 : vector<1x256xi1> to vector<1x256xi1>
    %487 = vector.broadcast %486 : vector<1x256xi1> to vector<8x256xi1>
    %488 = vector.broadcast %cst_299 : f32 to vector<8x256xf32>
    %489 = arith.select %487, %485, %488 : vector<8x256xi1>, vector<8x256xf32>
    %c168_300 = arith.constant 168 : index
    %c0_301 = arith.constant 0 : index
    %490 = vector.load %arg5[%c168_300, %c0_301] : memref<200x256xf32, #tpu.memory_space<vmem>>, vector<8x256xf32>
    tpu.vector_store %arg5[%c168_300, %c0_301], %489 {strides = array<i32>} : memref<200x256xf32, #tpu.memory_space<vmem>>, vector<8x256xf32>,
    %c176_302 = arith.constant 176 : index
    %c0_303 = arith.constant 0 : index
    %491 = vector.load %arg5[%c176_302, %c0_303] : memref<200x256xf32, #tpu.memory_space<vmem>>, vector<8x256xf32>
    tpu.vector_store %arg5[%c176_302, %c0_303], %478 {strides = array<i32>} : memref<200x256xf32, #tpu.memory_space<vmem>>, vector<8x256xf32>,
    %c252_i32_304 = arith.constant 252 : i32
    %492 = tpu.dynamic_rotate %478 by %c252_i32_304 dim 1 : vector<8x256xf32>, i32 -> vector<8x256xf32>
    %cst_305 = arith.constant 0.000000e+00 : f32
    %493 = vector.shape_cast %363 : vector<1x256xi1> to vector<1x256xi1>
    %494 = vector.broadcast %493 : vector<1x256xi1> to vector<8x256xi1>
    %495 = vector.broadcast %cst_305 : f32 to vector<8x256xf32>
    %496 = arith.select %494, %492, %495 : vector<8x256xi1>, vector<8x256xf32>
    %c184_306 = arith.constant 184 : index
    %c0_307 = arith.constant 0 : index
    %497 = vector.load %arg5[%c184_306, %c0_307] : memref<200x256xf32, #tpu.memory_space<vmem>>, vector<8x256xf32>
    tpu.vector_store %arg5[%c184_306, %c0_307], %496 {strides = array<i32>} : memref<200x256xf32, #tpu.memory_space<vmem>>, vector<8x256xf32>,
    %c248_i32_308 = arith.constant 248 : i32
    %498 = tpu.dynamic_rotate %478 by %c248_i32_308 dim 1 : vector<8x256xf32>, i32 -> vector<8x256xf32>
    %cst_309 = arith.constant 0.000000e+00 : f32
    %499 = vector.shape_cast %368 : vector<1x256xi1> to vector<1x256xi1>
    %500 = vector.broadcast %499 : vector<1x256xi1> to vector<8x256xi1>
    %501 = vector.broadcast %cst_309 : f32 to vector<8x256xf32>
    %502 = arith.select %500, %498, %501 : vector<8x256xi1>, vector<8x256xf32>
    %c192_310 = arith.constant 192 : index
    %c0_311 = arith.constant 0 : index
    %503 = vector.load %arg5[%c192_310, %c0_311] : memref<200x256xf32, #tpu.memory_space<vmem>>, vector<8x256xf32>
    tpu.vector_store %arg5[%c192_310, %c0_311], %502 {strides = array<i32>} : memref<200x256xf32, #tpu.memory_space<vmem>>, vector<8x256xf32>,
    %c2 = arith.constant 2 : index
    %c0_312 = arith.constant 0 : index
    %c0_313 = arith.constant 0 : index
    %504 = vector.load %arg2[%c2, %c0_312, %c0_313] : memref<5x8x200xf32, #tpu.memory_space<vmem>>, vector<1x8x200xf32>
    %505 = vector.shape_cast %504 : vector<1x8x200xf32> to vector<8x200xf32>
    %c0_314 = arith.constant 0 : index
    %c0_315 = arith.constant 0 : index
    %506 = vector.load %arg5[%c0_314, %c0_315] : memref<200x256xf32, #tpu.memory_space<vmem>>, vector<200x256xf32>
    %cst_316 = arith.constant dense<0.000000e+00> : vector<8x256xf32>
    %507 = tpu.matmul %505, %506, %cst_316 {dimension_numbers = #tpu.dot_dimension_numbers<[1], [0], [0], [1], [0, 0, 1, 1], [], []>} : vector<8x200xf32>, vector<200x256xf32>, vector<8x256xf32> -> vector<8x256xf32>
    %c2_317 = arith.constant 2 : index
    %c0_318 = arith.constant 0 : index
    %c0_319 = arith.constant 0 : index
    %508 = vector.load %arg3[%c2_317, %c0_318, %c0_319] : memref<5x8x1xf32, #tpu.memory_space<vmem>>, vector<1x8x1xf32>
    %509 = vector.shape_cast %508 : vector<1x8x1xf32> to vector<8x1xf32>
    %510 = vector.broadcast %509 : vector<8x1xf32> to vector<8x256xf32>
    %511 = arith.addf %507, %510 : vector<8x256xf32>
    %c0_320 = arith.constant 0 : index
    %c16_321 = arith.constant 16 : index
    %c0_322 = arith.constant 0 : index
    %512 = vector.load %arg4[%c0_320, %c16_321, %c0_322] : memref<1x40x256xf32, #tpu.memory_space<vmem>>, vector<1x8x256xf32>
    %513 = vector.shape_cast %512 : vector<1x8x256xf32> to vector<8x256xf32>
    %514 = vector.shape_cast %511 : vector<8x256xf32> to vector<1x8x256xf32>
    tpu.vector_store %arg4[%c0_320, %c16_321, %c0_322], %514 {strides = array<i32>} : memref<1x40x256xf32, #tpu.memory_space<vmem>>, vector<1x8x256xf32>,
    %c16_i32_323 = arith.constant 16 : i32
    %515 = vector.broadcast %c16_i32_323 : i32 to vector<1x256xi32>
    %516 = arith.cmpi sge, %16, %515 : vector<1x256xi32>
    %c32_i32 = arith.constant 32 : i32
    %517 = vector.broadcast %c32_i32 : i32 to vector<1x256xi32>
    %518 = arith.cmpi slt, %16, %517 : vector<1x256xi32>
    %519 = arith.andi %516, %518 : vector<1x256xi1>
    %c8_i32_324 = arith.constant 8 : i32
    %520 = vector.broadcast %c8_i32_324 : i32 to vector<1x256xi32>
    %521 = arith.cmpi sge, %16, %520 : vector<1x256xi32>
    %c24_i32_325 = arith.constant 24 : i32
    %522 = vector.broadcast %c24_i32_325 : i32 to vector<1x256xi32>
    %523 = arith.cmpi slt, %16, %522 : vector<1x256xi32>
    %524 = arith.andi %521, %523 : vector<1x256xi1>
    %c-8_i32_326 = arith.constant -8 : i32
    %525 = vector.broadcast %c-8_i32_326 : i32 to vector<1x256xi32>
    %526 = arith.cmpi sge, %16, %525 : vector<1x256xi32>
    %c8_i32_327 = arith.constant 8 : i32
    %527 = vector.broadcast %c8_i32_327 : i32 to vector<1x256xi32>
    %528 = arith.cmpi slt, %16, %527 : vector<1x256xi32>
    %529 = arith.andi %526, %528 : vector<1x256xi1>
    %c-16_i32 = arith.constant -16 : i32
    %530 = vector.broadcast %c-16_i32 : i32 to vector<1x256xi32>
    %531 = arith.cmpi sge, %16, %530 : vector<1x256xi32>
    %c0_i32_328 = arith.constant 0 : i32
    %532 = vector.broadcast %c0_i32_328 : i32 to vector<1x256xi32>
    %533 = arith.cmpi slt, %16, %532 : vector<1x256xi32>
    %534 = arith.andi %531, %533 : vector<1x256xi1>
    %c0_329 = arith.constant 0 : index
    %c0_330 = arith.constant 0 : index
    %c384 = arith.constant 384 : index
    %535 = vector.load %arg1[%c0_329, %c0_330, %c384] : memref<1x8x1536xf32, #tpu.memory_space<vmem>>, vector<1x8x256xf32>
    %536 = vector.shape_cast %535 : vector<1x8x256xf32> to vector<8x256xf32>
    %c16_i32_331 = arith.constant 16 : i32
    %537 = tpu.dynamic_rotate %536 by %c16_i32_331 dim 1 : vector<8x256xf32>, i32 -> vector<8x256xf32>
    %cst_332 = arith.constant 0.000000e+00 : f32
    %538 = vector.shape_cast %519 : vector<1x256xi1> to vector<1x256xi1>
    %539 = vector.broadcast %538 : vector<1x256xi1> to vector<8x256xi1>
    %540 = vector.broadcast %cst_332 : f32 to vector<8x256xf32>
    %541 = arith.select %539, %537, %540 : vector<8x256xi1>, vector<8x256xf32>
    %c0_333 = arith.constant 0 : index
    %c0_334 = arith.constant 0 : index
    %542 = vector.load %arg5[%c0_333, %c0_334] : memref<200x256xf32, #tpu.memory_space<vmem>>, vector<8x256xf32>
    tpu.vector_store %arg5[%c0_333, %c0_334], %541 {strides = array<i32>} : memref<200x256xf32, #tpu.memory_space<vmem>>, vector<8x256xf32>,
    %c8_i32_335 = arith.constant 8 : i32
    %543 = tpu.dynamic_rotate %536 by %c8_i32_335 dim 1 : vector<8x256xf32>, i32 -> vector<8x256xf32>
    %cst_336 = arith.constant 0.000000e+00 : f32
    %544 = vector.shape_cast %524 : vector<1x256xi1> to vector<1x256xi1>
    %545 = vector.broadcast %544 : vector<1x256xi1> to vector<8x256xi1>
    %546 = vector.broadcast %cst_336 : f32 to vector<8x256xf32>
    %547 = arith.select %545, %543, %546 : vector<8x256xi1>, vector<8x256xf32>
    %c8_337 = arith.constant 8 : index
    %c0_338 = arith.constant 0 : index
    %548 = vector.load %arg5[%c8_337, %c0_338] : memref<200x256xf32, #tpu.memory_space<vmem>>, vector<8x256xf32>
    tpu.vector_store %arg5[%c8_337, %c0_338], %547 {strides = array<i32>} : memref<200x256xf32, #tpu.memory_space<vmem>>, vector<8x256xf32>,
    %c16_339 = arith.constant 16 : index
    %c0_340 = arith.constant 0 : index
    %549 = vector.load %arg5[%c16_339, %c0_340] : memref<200x256xf32, #tpu.memory_space<vmem>>, vector<8x256xf32>
    tpu.vector_store %arg5[%c16_339, %c0_340], %536 {strides = array<i32>} : memref<200x256xf32, #tpu.memory_space<vmem>>, vector<8x256xf32>,
    %c248_i32_341 = arith.constant 248 : i32
    %550 = tpu.dynamic_rotate %536 by %c248_i32_341 dim 1 : vector<8x256xf32>, i32 -> vector<8x256xf32>
    %cst_342 = arith.constant 0.000000e+00 : f32
    %551 = vector.shape_cast %529 : vector<1x256xi1> to vector<1x256xi1>
    %552 = vector.broadcast %551 : vector<1x256xi1> to vector<8x256xi1>
    %553 = vector.broadcast %cst_342 : f32 to vector<8x256xf32>
    %554 = arith.select %552, %550, %553 : vector<8x256xi1>, vector<8x256xf32>
    %c24_343 = arith.constant 24 : index
    %c0_344 = arith.constant 0 : index
    %555 = vector.load %arg5[%c24_343, %c0_344] : memref<200x256xf32, #tpu.memory_space<vmem>>, vector<8x256xf32>
    tpu.vector_store %arg5[%c24_343, %c0_344], %554 {strides = array<i32>} : memref<200x256xf32, #tpu.memory_space<vmem>>, vector<8x256xf32>,
    %c240_i32 = arith.constant 240 : i32
    %556 = tpu.dynamic_rotate %536 by %c240_i32 dim 1 : vector<8x256xf32>, i32 -> vector<8x256xf32>
    %cst_345 = arith.constant 0.000000e+00 : f32
    %557 = vector.shape_cast %534 : vector<1x256xi1> to vector<1x256xi1>
    %558 = vector.broadcast %557 : vector<1x256xi1> to vector<8x256xi1>
    %559 = vector.broadcast %cst_345 : f32 to vector<8x256xf32>
    %560 = arith.select %558, %556, %559 : vector<8x256xi1>, vector<8x256xf32>
    %c32_346 = arith.constant 32 : index
    %c0_347 = arith.constant 0 : index
    %561 = vector.load %arg5[%c32_346, %c0_347] : memref<200x256xf32, #tpu.memory_space<vmem>>, vector<8x256xf32>
    tpu.vector_store %arg5[%c32_346, %c0_347], %560 {strides = array<i32>} : memref<200x256xf32, #tpu.memory_space<vmem>>, vector<8x256xf32>,
    %c0_348 = arith.constant 0 : index
    %c0_349 = arith.constant 0 : index
    %c512_350 = arith.constant 512 : index
    %562 = vector.load %arg1[%c0_348, %c0_349, %c512_350] : memref<1x8x1536xf32, #tpu.memory_space<vmem>>, vector<1x8x256xf32>
    %563 = vector.shape_cast %562 : vector<1x8x256xf32> to vector<8x256xf32>
    %c16_i32_351 = arith.constant 16 : i32
    %564 = tpu.dynamic_rotate %563 by %c16_i32_351 dim 1 : vector<8x256xf32>, i32 -> vector<8x256xf32>
    %cst_352 = arith.constant 0.000000e+00 : f32
    %565 = vector.shape_cast %519 : vector<1x256xi1> to vector<1x256xi1>
    %566 = vector.broadcast %565 : vector<1x256xi1> to vector<8x256xi1>
    %567 = vector.broadcast %cst_352 : f32 to vector<8x256xf32>
    %568 = arith.select %566, %564, %567 : vector<8x256xi1>, vector<8x256xf32>
    %c40_353 = arith.constant 40 : index
    %c0_354 = arith.constant 0 : index
    %569 = vector.load %arg5[%c40_353, %c0_354] : memref<200x256xf32, #tpu.memory_space<vmem>>, vector<8x256xf32>
    tpu.vector_store %arg5[%c40_353, %c0_354], %568 {strides = array<i32>} : memref<200x256xf32, #tpu.memory_space<vmem>>, vector<8x256xf32>,
    %c8_i32_355 = arith.constant 8 : i32
    %570 = tpu.dynamic_rotate %563 by %c8_i32_355 dim 1 : vector<8x256xf32>, i32 -> vector<8x256xf32>
    %cst_356 = arith.constant 0.000000e+00 : f32
    %571 = vector.shape_cast %524 : vector<1x256xi1> to vector<1x256xi1>
    %572 = vector.broadcast %571 : vector<1x256xi1> to vector<8x256xi1>
    %573 = vector.broadcast %cst_356 : f32 to vector<8x256xf32>
    %574 = arith.select %572, %570, %573 : vector<8x256xi1>, vector<8x256xf32>
    %c48_357 = arith.constant 48 : index
    %c0_358 = arith.constant 0 : index
    %575 = vector.load %arg5[%c48_357, %c0_358] : memref<200x256xf32, #tpu.memory_space<vmem>>, vector<8x256xf32>
    tpu.vector_store %arg5[%c48_357, %c0_358], %574 {strides = array<i32>} : memref<200x256xf32, #tpu.memory_space<vmem>>, vector<8x256xf32>,
    %c56_359 = arith.constant 56 : index
    %c0_360 = arith.constant 0 : index
    %576 = vector.load %arg5[%c56_359, %c0_360] : memref<200x256xf32, #tpu.memory_space<vmem>>, vector<8x256xf32>
    tpu.vector_store %arg5[%c56_359, %c0_360], %563 {strides = array<i32>} : memref<200x256xf32, #tpu.memory_space<vmem>>, vector<8x256xf32>,
    %c248_i32_361 = arith.constant 248 : i32
    %577 = tpu.dynamic_rotate %563 by %c248_i32_361 dim 1 : vector<8x256xf32>, i32 -> vector<8x256xf32>
    %cst_362 = arith.constant 0.000000e+00 : f32
    %578 = vector.shape_cast %529 : vector<1x256xi1> to vector<1x256xi1>
    %579 = vector.broadcast %578 : vector<1x256xi1> to vector<8x256xi1>
    %580 = vector.broadcast %cst_362 : f32 to vector<8x256xf32>
    %581 = arith.select %579, %577, %580 : vector<8x256xi1>, vector<8x256xf32>
    %c64_363 = arith.constant 64 : index
    %c0_364 = arith.constant 0 : index
    %582 = vector.load %arg5[%c64_363, %c0_364] : memref<200x256xf32, #tpu.memory_space<vmem>>, vector<8x256xf32>
    tpu.vector_store %arg5[%c64_363, %c0_364], %581 {strides = array<i32>} : memref<200x256xf32, #tpu.memory_space<vmem>>, vector<8x256xf32>,
    %c240_i32_365 = arith.constant 240 : i32
    %583 = tpu.dynamic_rotate %563 by %c240_i32_365 dim 1 : vector<8x256xf32>, i32 -> vector<8x256xf32>
    %cst_366 = arith.constant 0.000000e+00 : f32
    %584 = vector.shape_cast %534 : vector<1x256xi1> to vector<1x256xi1>
    %585 = vector.broadcast %584 : vector<1x256xi1> to vector<8x256xi1>
    %586 = vector.broadcast %cst_366 : f32 to vector<8x256xf32>
    %587 = arith.select %585, %583, %586 : vector<8x256xi1>, vector<8x256xf32>
    %c72_367 = arith.constant 72 : index
    %c0_368 = arith.constant 0 : index
    %588 = vector.load %arg5[%c72_367, %c0_368] : memref<200x256xf32, #tpu.memory_space<vmem>>, vector<8x256xf32>
    tpu.vector_store %arg5[%c72_367, %c0_368], %587 {strides = array<i32>} : memref<200x256xf32, #tpu.memory_space<vmem>>, vector<8x256xf32>,
    %c0_369 = arith.constant 0 : index
    %c0_370 = arith.constant 0 : index
    %c640_371 = arith.constant 640 : index
    %589 = vector.load %arg1[%c0_369, %c0_370, %c640_371] : memref<1x8x1536xf32, #tpu.memory_space<vmem>>, vector<1x8x256xf32>
    %590 = vector.shape_cast %589 : vector<1x8x256xf32> to vector<8x256xf32>
    %c16_i32_372 = arith.constant 16 : i32
    %591 = tpu.dynamic_rotate %590 by %c16_i32_372 dim 1 : vector<8x256xf32>, i32 -> vector<8x256xf32>
    %cst_373 = arith.constant 0.000000e+00 : f32
    %592 = vector.shape_cast %519 : vector<1x256xi1> to vector<1x256xi1>
    %593 = vector.broadcast %592 : vector<1x256xi1> to vector<8x256xi1>
    %594 = vector.broadcast %cst_373 : f32 to vector<8x256xf32>
    %595 = arith.select %593, %591, %594 : vector<8x256xi1>, vector<8x256xf32>
    %c80_374 = arith.constant 80 : index
    %c0_375 = arith.constant 0 : index
    %596 = vector.load %arg5[%c80_374, %c0_375] : memref<200x256xf32, #tpu.memory_space<vmem>>, vector<8x256xf32>
    tpu.vector_store %arg5[%c80_374, %c0_375], %595 {strides = array<i32>} : memref<200x256xf32, #tpu.memory_space<vmem>>, vector<8x256xf32>,
    %c8_i32_376 = arith.constant 8 : i32
    %597 = tpu.dynamic_rotate %590 by %c8_i32_376 dim 1 : vector<8x256xf32>, i32 -> vector<8x256xf32>
    %cst_377 = arith.constant 0.000000e+00 : f32
    %598 = vector.shape_cast %524 : vector<1x256xi1> to vector<1x256xi1>
    %599 = vector.broadcast %598 : vector<1x256xi1> to vector<8x256xi1>
    %600 = vector.broadcast %cst_377 : f32 to vector<8x256xf32>
    %601 = arith.select %599, %597, %600 : vector<8x256xi1>, vector<8x256xf32>
    %c88_378 = arith.constant 88 : index
    %c0_379 = arith.constant 0 : index
    %602 = vector.load %arg5[%c88_378, %c0_379] : memref<200x256xf32, #tpu.memory_space<vmem>>, vector<8x256xf32>
    tpu.vector_store %arg5[%c88_378, %c0_379], %601 {strides = array<i32>} : memref<200x256xf32, #tpu.memory_space<vmem>>, vector<8x256xf32>,
    %c96_380 = arith.constant 96 : index
    %c0_381 = arith.constant 0 : index
    %603 = vector.load %arg5[%c96_380, %c0_381] : memref<200x256xf32, #tpu.memory_space<vmem>>, vector<8x256xf32>
    tpu.vector_store %arg5[%c96_380, %c0_381], %590 {strides = array<i32>} : memref<200x256xf32, #tpu.memory_space<vmem>>, vector<8x256xf32>,
    %c248_i32_382 = arith.constant 248 : i32
    %604 = tpu.dynamic_rotate %590 by %c248_i32_382 dim 1 : vector<8x256xf32>, i32 -> vector<8x256xf32>
    %cst_383 = arith.constant 0.000000e+00 : f32
    %605 = vector.shape_cast %529 : vector<1x256xi1> to vector<1x256xi1>
    %606 = vector.broadcast %605 : vector<1x256xi1> to vector<8x256xi1>
    %607 = vector.broadcast %cst_383 : f32 to vector<8x256xf32>
    %608 = arith.select %606, %604, %607 : vector<8x256xi1>, vector<8x256xf32>
    %c104_384 = arith.constant 104 : index
    %c0_385 = arith.constant 0 : index
    %609 = vector.load %arg5[%c104_384, %c0_385] : memref<200x256xf32, #tpu.memory_space<vmem>>, vector<8x256xf32>
    tpu.vector_store %arg5[%c104_384, %c0_385], %608 {strides = array<i32>} : memref<200x256xf32, #tpu.memory_space<vmem>>, vector<8x256xf32>,
    %c240_i32_386 = arith.constant 240 : i32
    %610 = tpu.dynamic_rotate %590 by %c240_i32_386 dim 1 : vector<8x256xf32>, i32 -> vector<8x256xf32>
    %cst_387 = arith.constant 0.000000e+00 : f32
    %611 = vector.shape_cast %534 : vector<1x256xi1> to vector<1x256xi1>
    %612 = vector.broadcast %611 : vector<1x256xi1> to vector<8x256xi1>
    %613 = vector.broadcast %cst_387 : f32 to vector<8x256xf32>
    %614 = arith.select %612, %610, %613 : vector<8x256xi1>, vector<8x256xf32>
    %c112_388 = arith.constant 112 : index
    %c0_389 = arith.constant 0 : index
    %615 = vector.load %arg5[%c112_388, %c0_389] : memref<200x256xf32, #tpu.memory_space<vmem>>, vector<8x256xf32>
    tpu.vector_store %arg5[%c112_388, %c0_389], %614 {strides = array<i32>} : memref<200x256xf32, #tpu.memory_space<vmem>>, vector<8x256xf32>,
    %c0_390 = arith.constant 0 : index
    %c0_391 = arith.constant 0 : index
    %c768_392 = arith.constant 768 : index
    %616 = vector.load %arg1[%c0_390, %c0_391, %c768_392] : memref<1x8x1536xf32, #tpu.memory_space<vmem>>, vector<1x8x256xf32>
    %617 = vector.shape_cast %616 : vector<1x8x256xf32> to vector<8x256xf32>
    %c16_i32_393 = arith.constant 16 : i32
    %618 = tpu.dynamic_rotate %617 by %c16_i32_393 dim 1 : vector<8x256xf32>, i32 -> vector<8x256xf32>
    %cst_394 = arith.constant 0.000000e+00 : f32
    %619 = vector.shape_cast %519 : vector<1x256xi1> to vector<1x256xi1>
    %620 = vector.broadcast %619 : vector<1x256xi1> to vector<8x256xi1>
    %621 = vector.broadcast %cst_394 : f32 to vector<8x256xf32>
    %622 = arith.select %620, %618, %621 : vector<8x256xi1>, vector<8x256xf32>
    %c120_395 = arith.constant 120 : index
    %c0_396 = arith.constant 0 : index
    %623 = vector.load %arg5[%c120_395, %c0_396] : memref<200x256xf32, #tpu.memory_space<vmem>>, vector<8x256xf32>
    tpu.vector_store %arg5[%c120_395, %c0_396], %622 {strides = array<i32>} : memref<200x256xf32, #tpu.memory_space<vmem>>, vector<8x256xf32>,
    %c8_i32_397 = arith.constant 8 : i32
    %624 = tpu.dynamic_rotate %617 by %c8_i32_397 dim 1 : vector<8x256xf32>, i32 -> vector<8x256xf32>
    %cst_398 = arith.constant 0.000000e+00 : f32
    %625 = vector.shape_cast %524 : vector<1x256xi1> to vector<1x256xi1>
    %626 = vector.broadcast %625 : vector<1x256xi1> to vector<8x256xi1>
    %627 = vector.broadcast %cst_398 : f32 to vector<8x256xf32>
    %628 = arith.select %626, %624, %627 : vector<8x256xi1>, vector<8x256xf32>
    %c128_399 = arith.constant 128 : index
    %c0_400 = arith.constant 0 : index
    %629 = vector.load %arg5[%c128_399, %c0_400] : memref<200x256xf32, #tpu.memory_space<vmem>>, vector<8x256xf32>
    tpu.vector_store %arg5[%c128_399, %c0_400], %628 {strides = array<i32>} : memref<200x256xf32, #tpu.memory_space<vmem>>, vector<8x256xf32>,
    %c136_401 = arith.constant 136 : index
    %c0_402 = arith.constant 0 : index
    %630 = vector.load %arg5[%c136_401, %c0_402] : memref<200x256xf32, #tpu.memory_space<vmem>>, vector<8x256xf32>
    tpu.vector_store %arg5[%c136_401, %c0_402], %617 {strides = array<i32>} : memref<200x256xf32, #tpu.memory_space<vmem>>, vector<8x256xf32>,
    %c248_i32_403 = arith.constant 248 : i32
    %631 = tpu.dynamic_rotate %617 by %c248_i32_403 dim 1 : vector<8x256xf32>, i32 -> vector<8x256xf32>
    %cst_404 = arith.constant 0.000000e+00 : f32
    %632 = vector.shape_cast %529 : vector<1x256xi1> to vector<1x256xi1>
    %633 = vector.broadcast %632 : vector<1x256xi1> to vector<8x256xi1>
    %634 = vector.broadcast %cst_404 : f32 to vector<8x256xf32>
    %635 = arith.select %633, %631, %634 : vector<8x256xi1>, vector<8x256xf32>
    %c144_405 = arith.constant 144 : index
    %c0_406 = arith.constant 0 : index
    %636 = vector.load %arg5[%c144_405, %c0_406] : memref<200x256xf32, #tpu.memory_space<vmem>>, vector<8x256xf32>
    tpu.vector_store %arg5[%c144_405, %c0_406], %635 {strides = array<i32>} : memref<200x256xf32, #tpu.memory_space<vmem>>, vector<8x256xf32>,
    %c240_i32_407 = arith.constant 240 : i32
    %637 = tpu.dynamic_rotate %617 by %c240_i32_407 dim 1 : vector<8x256xf32>, i32 -> vector<8x256xf32>
    %cst_408 = arith.constant 0.000000e+00 : f32
    %638 = vector.shape_cast %534 : vector<1x256xi1> to vector<1x256xi1>
    %639 = vector.broadcast %638 : vector<1x256xi1> to vector<8x256xi1>
    %640 = vector.broadcast %cst_408 : f32 to vector<8x256xf32>
    %641 = arith.select %639, %637, %640 : vector<8x256xi1>, vector<8x256xf32>
    %c152_409 = arith.constant 152 : index
    %c0_410 = arith.constant 0 : index
    %642 = vector.load %arg5[%c152_409, %c0_410] : memref<200x256xf32, #tpu.memory_space<vmem>>, vector<8x256xf32>
    tpu.vector_store %arg5[%c152_409, %c0_410], %641 {strides = array<i32>} : memref<200x256xf32, #tpu.memory_space<vmem>>, vector<8x256xf32>,
    %c0_411 = arith.constant 0 : index
    %c0_412 = arith.constant 0 : index
    %c896 = arith.constant 896 : index
    %643 = vector.load %arg1[%c0_411, %c0_412, %c896] : memref<1x8x1536xf32, #tpu.memory_space<vmem>>, vector<1x8x256xf32>
    %644 = vector.shape_cast %643 : vector<1x8x256xf32> to vector<8x256xf32>
    %c16_i32_413 = arith.constant 16 : i32
    %645 = tpu.dynamic_rotate %644 by %c16_i32_413 dim 1 : vector<8x256xf32>, i32 -> vector<8x256xf32>
    %cst_414 = arith.constant 0.000000e+00 : f32
    %646 = vector.shape_cast %519 : vector<1x256xi1> to vector<1x256xi1>
    %647 = vector.broadcast %646 : vector<1x256xi1> to vector<8x256xi1>
    %648 = vector.broadcast %cst_414 : f32 to vector<8x256xf32>
    %649 = arith.select %647, %645, %648 : vector<8x256xi1>, vector<8x256xf32>
    %c160_415 = arith.constant 160 : index
    %c0_416 = arith.constant 0 : index
    %650 = vector.load %arg5[%c160_415, %c0_416] : memref<200x256xf32, #tpu.memory_space<vmem>>, vector<8x256xf32>
    tpu.vector_store %arg5[%c160_415, %c0_416], %649 {strides = array<i32>} : memref<200x256xf32, #tpu.memory_space<vmem>>, vector<8x256xf32>,
    %c8_i32_417 = arith.constant 8 : i32
    %651 = tpu.dynamic_rotate %644 by %c8_i32_417 dim 1 : vector<8x256xf32>, i32 -> vector<8x256xf32>
    %cst_418 = arith.constant 0.000000e+00 : f32
    %652 = vector.shape_cast %524 : vector<1x256xi1> to vector<1x256xi1>
    %653 = vector.broadcast %652 : vector<1x256xi1> to vector<8x256xi1>
    %654 = vector.broadcast %cst_418 : f32 to vector<8x256xf32>
    %655 = arith.select %653, %651, %654 : vector<8x256xi1>, vector<8x256xf32>
    %c168_419 = arith.constant 168 : index
    %c0_420 = arith.constant 0 : index
    %656 = vector.load %arg5[%c168_419, %c0_420] : memref<200x256xf32, #tpu.memory_space<vmem>>, vector<8x256xf32>
    tpu.vector_store %arg5[%c168_419, %c0_420], %655 {strides = array<i32>} : memref<200x256xf32, #tpu.memory_space<vmem>>, vector<8x256xf32>,
    %c176_421 = arith.constant 176 : index
    %c0_422 = arith.constant 0 : index
    %657 = vector.load %arg5[%c176_421, %c0_422] : memref<200x256xf32, #tpu.memory_space<vmem>>, vector<8x256xf32>
    tpu.vector_store %arg5[%c176_421, %c0_422], %644 {strides = array<i32>} : memref<200x256xf32, #tpu.memory_space<vmem>>, vector<8x256xf32>,
    %c248_i32_423 = arith.constant 248 : i32
    %658 = tpu.dynamic_rotate %644 by %c248_i32_423 dim 1 : vector<8x256xf32>, i32 -> vector<8x256xf32>
    %cst_424 = arith.constant 0.000000e+00 : f32
    %659 = vector.shape_cast %529 : vector<1x256xi1> to vector<1x256xi1>
    %660 = vector.broadcast %659 : vector<1x256xi1> to vector<8x256xi1>
    %661 = vector.broadcast %cst_424 : f32 to vector<8x256xf32>
    %662 = arith.select %660, %658, %661 : vector<8x256xi1>, vector<8x256xf32>
    %c184_425 = arith.constant 184 : index
    %c0_426 = arith.constant 0 : index
    %663 = vector.load %arg5[%c184_425, %c0_426] : memref<200x256xf32, #tpu.memory_space<vmem>>, vector<8x256xf32>
    tpu.vector_store %arg5[%c184_425, %c0_426], %662 {strides = array<i32>} : memref<200x256xf32, #tpu.memory_space<vmem>>, vector<8x256xf32>,
    %c240_i32_427 = arith.constant 240 : i32
    %664 = tpu.dynamic_rotate %644 by %c240_i32_427 dim 1 : vector<8x256xf32>, i32 -> vector<8x256xf32>
    %cst_428 = arith.constant 0.000000e+00 : f32
    %665 = vector.shape_cast %534 : vector<1x256xi1> to vector<1x256xi1>
    %666 = vector.broadcast %665 : vector<1x256xi1> to vector<8x256xi1>
    %667 = vector.broadcast %cst_428 : f32 to vector<8x256xf32>
    %668 = arith.select %666, %664, %667 : vector<8x256xi1>, vector<8x256xf32>
    %c192_429 = arith.constant 192 : index
    %c0_430 = arith.constant 0 : index
    %669 = vector.load %arg5[%c192_429, %c0_430] : memref<200x256xf32, #tpu.memory_space<vmem>>, vector<8x256xf32>
    tpu.vector_store %arg5[%c192_429, %c0_430], %668 {strides = array<i32>} : memref<200x256xf32, #tpu.memory_space<vmem>>, vector<8x256xf32>,
    %c3 = arith.constant 3 : index
    %c0_431 = arith.constant 0 : index
    %c0_432 = arith.constant 0 : index
    %670 = vector.load %arg2[%c3, %c0_431, %c0_432] : memref<5x8x200xf32, #tpu.memory_space<vmem>>, vector<1x8x200xf32>
    %671 = vector.shape_cast %670 : vector<1x8x200xf32> to vector<8x200xf32>
    %c0_433 = arith.constant 0 : index
    %c0_434 = arith.constant 0 : index
    %672 = vector.load %arg5[%c0_433, %c0_434] : memref<200x256xf32, #tpu.memory_space<vmem>>, vector<200x256xf32>
    %cst_435 = arith.constant dense<0.000000e+00> : vector<8x256xf32>
    %673 = tpu.matmul %671, %672, %cst_435 {dimension_numbers = #tpu.dot_dimension_numbers<[1], [0], [0], [1], [0, 0, 1, 1], [], []>} : vector<8x200xf32>, vector<200x256xf32>, vector<8x256xf32> -> vector<8x256xf32>
    %c3_436 = arith.constant 3 : index
    %c0_437 = arith.constant 0 : index
    %c0_438 = arith.constant 0 : index
    %674 = vector.load %arg3[%c3_436, %c0_437, %c0_438] : memref<5x8x1xf32, #tpu.memory_space<vmem>>, vector<1x8x1xf32>
    %675 = vector.shape_cast %674 : vector<1x8x1xf32> to vector<8x1xf32>
    %676 = vector.broadcast %675 : vector<8x1xf32> to vector<8x256xf32>
    %677 = arith.addf %673, %676 : vector<8x256xf32>
    %c0_439 = arith.constant 0 : index
    %c24_440 = arith.constant 24 : index
    %c0_441 = arith.constant 0 : index
    %678 = vector.load %arg4[%c0_439, %c24_440, %c0_441] : memref<1x40x256xf32, #tpu.memory_space<vmem>>, vector<1x8x256xf32>
    %679 = vector.shape_cast %678 : vector<1x8x256xf32> to vector<8x256xf32>
    %680 = vector.shape_cast %677 : vector<8x256xf32> to vector<1x8x256xf32>
    tpu.vector_store %arg4[%c0_439, %c24_440, %c0_441], %680 {strides = array<i32>} : memref<1x40x256xf32, #tpu.memory_space<vmem>>, vector<1x8x256xf32>,
    %c32_i32_442 = arith.constant 32 : i32
    %681 = vector.broadcast %c32_i32_442 : i32 to vector<1x256xi32>
    %682 = arith.cmpi sge, %16, %681 : vector<1x256xi32>
    %c48_i32 = arith.constant 48 : i32
    %683 = vector.broadcast %c48_i32 : i32 to vector<1x256xi32>
    %684 = arith.cmpi slt, %16, %683 : vector<1x256xi32>
    %685 = arith.andi %682, %684 : vector<1x256xi1>
    %c16_i32_443 = arith.constant 16 : i32
    %686 = vector.broadcast %c16_i32_443 : i32 to vector<1x256xi32>
    %687 = arith.cmpi sge, %16, %686 : vector<1x256xi32>
    %c32_i32_444 = arith.constant 32 : i32
    %688 = vector.broadcast %c32_i32_444 : i32 to vector<1x256xi32>
    %689 = arith.cmpi slt, %16, %688 : vector<1x256xi32>
    %690 = arith.andi %687, %689 : vector<1x256xi1>
    %c-16_i32_445 = arith.constant -16 : i32
    %691 = vector.broadcast %c-16_i32_445 : i32 to vector<1x256xi32>
    %692 = arith.cmpi sge, %16, %691 : vector<1x256xi32>
    %c0_i32_446 = arith.constant 0 : i32
    %693 = vector.broadcast %c0_i32_446 : i32 to vector<1x256xi32>
    %694 = arith.cmpi slt, %16, %693 : vector<1x256xi32>
    %695 = arith.andi %692, %694 : vector<1x256xi1>
    %c-32_i32 = arith.constant -32 : i32
    %696 = vector.broadcast %c-32_i32 : i32 to vector<1x256xi32>
    %697 = arith.cmpi sge, %16, %696 : vector<1x256xi32>
    %c-16_i32_447 = arith.constant -16 : i32
    %698 = vector.broadcast %c-16_i32_447 : i32 to vector<1x256xi32>
    %699 = arith.cmpi slt, %16, %698 : vector<1x256xi32>
    %700 = arith.andi %697, %699 : vector<1x256xi1>
    %c0_448 = arith.constant 0 : index
    %c0_449 = arith.constant 0 : index
    %c128_450 = arith.constant 128 : index
    %701 = vector.load %arg1[%c0_448, %c0_449, %c128_450] : memref<1x8x1536xf32, #tpu.memory_space<vmem>>, vector<1x8x256xf32>
    %702 = vector.shape_cast %701 : vector<1x8x256xf32> to vector<8x256xf32>
    %c32_i32_451 = arith.constant 32 : i32
    %703 = tpu.dynamic_rotate %702 by %c32_i32_451 dim 1 : vector<8x256xf32>, i32 -> vector<8x256xf32>
    %cst_452 = arith.constant 0.000000e+00 : f32
    %704 = vector.shape_cast %685 : vector<1x256xi1> to vector<1x256xi1>
    %705 = vector.broadcast %704 : vector<1x256xi1> to vector<8x256xi1>
    %706 = vector.broadcast %cst_452 : f32 to vector<8x256xf32>
    %707 = arith.select %705, %703, %706 : vector<8x256xi1>, vector<8x256xf32>
    %c0_453 = arith.constant 0 : index
    %c0_454 = arith.constant 0 : index
    %708 = vector.load %arg5[%c0_453, %c0_454] : memref<200x256xf32, #tpu.memory_space<vmem>>, vector<8x256xf32>
    tpu.vector_store %arg5[%c0_453, %c0_454], %707 {strides = array<i32>} : memref<200x256xf32, #tpu.memory_space<vmem>>, vector<8x256xf32>,
    %c16_i32_455 = arith.constant 16 : i32
    %709 = tpu.dynamic_rotate %702 by %c16_i32_455 dim 1 : vector<8x256xf32>, i32 -> vector<8x256xf32>
    %cst_456 = arith.constant 0.000000e+00 : f32
    %710 = vector.shape_cast %690 : vector<1x256xi1> to vector<1x256xi1>
    %711 = vector.broadcast %710 : vector<1x256xi1> to vector<8x256xi1>
    %712 = vector.broadcast %cst_456 : f32 to vector<8x256xf32>
    %713 = arith.select %711, %709, %712 : vector<8x256xi1>, vector<8x256xf32>
    %c8_457 = arith.constant 8 : index
    %c0_458 = arith.constant 0 : index
    %714 = vector.load %arg5[%c8_457, %c0_458] : memref<200x256xf32, #tpu.memory_space<vmem>>, vector<8x256xf32>
    tpu.vector_store %arg5[%c8_457, %c0_458], %713 {strides = array<i32>} : memref<200x256xf32, #tpu.memory_space<vmem>>, vector<8x256xf32>,
    %c16_459 = arith.constant 16 : index
    %c0_460 = arith.constant 0 : index
    %715 = vector.load %arg5[%c16_459, %c0_460] : memref<200x256xf32, #tpu.memory_space<vmem>>, vector<8x256xf32>
    tpu.vector_store %arg5[%c16_459, %c0_460], %702 {strides = array<i32>} : memref<200x256xf32, #tpu.memory_space<vmem>>, vector<8x256xf32>,
    %c240_i32_461 = arith.constant 240 : i32
    %716 = tpu.dynamic_rotate %702 by %c240_i32_461 dim 1 : vector<8x256xf32>, i32 -> vector<8x256xf32>
    %cst_462 = arith.constant 0.000000e+00 : f32
    %717 = vector.shape_cast %695 : vector<1x256xi1> to vector<1x256xi1>
    %718 = vector.broadcast %717 : vector<1x256xi1> to vector<8x256xi1>
    %719 = vector.broadcast %cst_462 : f32 to vector<8x256xf32>
    %720 = arith.select %718, %716, %719 : vector<8x256xi1>, vector<8x256xf32>
    %c24_463 = arith.constant 24 : index
    %c0_464 = arith.constant 0 : index
    %721 = vector.load %arg5[%c24_463, %c0_464] : memref<200x256xf32, #tpu.memory_space<vmem>>, vector<8x256xf32>
    tpu.vector_store %arg5[%c24_463, %c0_464], %720 {strides = array<i32>} : memref<200x256xf32, #tpu.memory_space<vmem>>, vector<8x256xf32>,
    %c224_i32 = arith.constant 224 : i32
    %722 = tpu.dynamic_rotate %702 by %c224_i32 dim 1 : vector<8x256xf32>, i32 -> vector<8x256xf32>
    %cst_465 = arith.constant 0.000000e+00 : f32
    %723 = vector.shape_cast %700 : vector<1x256xi1> to vector<1x256xi1>
    %724 = vector.broadcast %723 : vector<1x256xi1> to vector<8x256xi1>
    %725 = vector.broadcast %cst_465 : f32 to vector<8x256xf32>
    %726 = arith.select %724, %722, %725 : vector<8x256xi1>, vector<8x256xf32>
    %c32_466 = arith.constant 32 : index
    %c0_467 = arith.constant 0 : index
    %727 = vector.load %arg5[%c32_466, %c0_467] : memref<200x256xf32, #tpu.memory_space<vmem>>, vector<8x256xf32>
    tpu.vector_store %arg5[%c32_466, %c0_467], %726 {strides = array<i32>} : memref<200x256xf32, #tpu.memory_space<vmem>>, vector<8x256xf32>,
    %c0_468 = arith.constant 0 : index
    %c0_469 = arith.constant 0 : index
    %c384_470 = arith.constant 384 : index
    %728 = vector.load %arg1[%c0_468, %c0_469, %c384_470] : memref<1x8x1536xf32, #tpu.memory_space<vmem>>, vector<1x8x256xf32>
    %729 = vector.shape_cast %728 : vector<1x8x256xf32> to vector<8x256xf32>
    %c32_i32_471 = arith.constant 32 : i32
    %730 = tpu.dynamic_rotate %729 by %c32_i32_471 dim 1 : vector<8x256xf32>, i32 -> vector<8x256xf32>
    %cst_472 = arith.constant 0.000000e+00 : f32
    %731 = vector.shape_cast %685 : vector<1x256xi1> to vector<1x256xi1>
    %732 = vector.broadcast %731 : vector<1x256xi1> to vector<8x256xi1>
    %733 = vector.broadcast %cst_472 : f32 to vector<8x256xf32>
    %734 = arith.select %732, %730, %733 : vector<8x256xi1>, vector<8x256xf32>
    %c40_473 = arith.constant 40 : index
    %c0_474 = arith.constant 0 : index
    %735 = vector.load %arg5[%c40_473, %c0_474] : memref<200x256xf32, #tpu.memory_space<vmem>>, vector<8x256xf32>
    tpu.vector_store %arg5[%c40_473, %c0_474], %734 {strides = array<i32>} : memref<200x256xf32, #tpu.memory_space<vmem>>, vector<8x256xf32>,
    %c16_i32_475 = arith.constant 16 : i32
    %736 = tpu.dynamic_rotate %729 by %c16_i32_475 dim 1 : vector<8x256xf32>, i32 -> vector<8x256xf32>
    %cst_476 = arith.constant 0.000000e+00 : f32
    %737 = vector.shape_cast %690 : vector<1x256xi1> to vector<1x256xi1>
    %738 = vector.broadcast %737 : vector<1x256xi1> to vector<8x256xi1>
    %739 = vector.broadcast %cst_476 : f32 to vector<8x256xf32>
    %740 = arith.select %738, %736, %739 : vector<8x256xi1>, vector<8x256xf32>
    %c48_477 = arith.constant 48 : index
    %c0_478 = arith.constant 0 : index
    %741 = vector.load %arg5[%c48_477, %c0_478] : memref<200x256xf32, #tpu.memory_space<vmem>>, vector<8x256xf32>
    tpu.vector_store %arg5[%c48_477, %c0_478], %740 {strides = array<i32>} : memref<200x256xf32, #tpu.memory_space<vmem>>, vector<8x256xf32>,
    %c56_479 = arith.constant 56 : index
    %c0_480 = arith.constant 0 : index
    %742 = vector.load %arg5[%c56_479, %c0_480] : memref<200x256xf32, #tpu.memory_space<vmem>>, vector<8x256xf32>
    tpu.vector_store %arg5[%c56_479, %c0_480], %729 {strides = array<i32>} : memref<200x256xf32, #tpu.memory_space<vmem>>, vector<8x256xf32>,
    %c240_i32_481 = arith.constant 240 : i32
    %743 = tpu.dynamic_rotate %729 by %c240_i32_481 dim 1 : vector<8x256xf32>, i32 -> vector<8x256xf32>
    %cst_482 = arith.constant 0.000000e+00 : f32
    %744 = vector.shape_cast %695 : vector<1x256xi1> to vector<1x256xi1>
    %745 = vector.broadcast %744 : vector<1x256xi1> to vector<8x256xi1>
    %746 = vector.broadcast %cst_482 : f32 to vector<8x256xf32>
    %747 = arith.select %745, %743, %746 : vector<8x256xi1>, vector<8x256xf32>
    %c64_483 = arith.constant 64 : index
    %c0_484 = arith.constant 0 : index
    %748 = vector.load %arg5[%c64_483, %c0_484] : memref<200x256xf32, #tpu.memory_space<vmem>>, vector<8x256xf32>
    tpu.vector_store %arg5[%c64_483, %c0_484], %747 {strides = array<i32>} : memref<200x256xf32, #tpu.memory_space<vmem>>, vector<8x256xf32>,
    %c224_i32_485 = arith.constant 224 : i32
    %749 = tpu.dynamic_rotate %729 by %c224_i32_485 dim 1 : vector<8x256xf32>, i32 -> vector<8x256xf32>
    %cst_486 = arith.constant 0.000000e+00 : f32
    %750 = vector.shape_cast %700 : vector<1x256xi1> to vector<1x256xi1>
    %751 = vector.broadcast %750 : vector<1x256xi1> to vector<8x256xi1>
    %752 = vector.broadcast %cst_486 : f32 to vector<8x256xf32>
    %753 = arith.select %751, %749, %752 : vector<8x256xi1>, vector<8x256xf32>
    %c72_487 = arith.constant 72 : index
    %c0_488 = arith.constant 0 : index
    %754 = vector.load %arg5[%c72_487, %c0_488] : memref<200x256xf32, #tpu.memory_space<vmem>>, vector<8x256xf32>
    tpu.vector_store %arg5[%c72_487, %c0_488], %753 {strides = array<i32>} : memref<200x256xf32, #tpu.memory_space<vmem>>, vector<8x256xf32>,
    %c0_489 = arith.constant 0 : index
    %c0_490 = arith.constant 0 : index
    %c640_491 = arith.constant 640 : index
    %755 = vector.load %arg1[%c0_489, %c0_490, %c640_491] : memref<1x8x1536xf32, #tpu.memory_space<vmem>>, vector<1x8x256xf32>
    %756 = vector.shape_cast %755 : vector<1x8x256xf32> to vector<8x256xf32>
    %c32_i32_492 = arith.constant 32 : i32
    %757 = tpu.dynamic_rotate %756 by %c32_i32_492 dim 1 : vector<8x256xf32>, i32 -> vector<8x256xf32>
    %cst_493 = arith.constant 0.000000e+00 : f32
    %758 = vector.shape_cast %685 : vector<1x256xi1> to vector<1x256xi1>
    %759 = vector.broadcast %758 : vector<1x256xi1> to vector<8x256xi1>
    %760 = vector.broadcast %cst_493 : f32 to vector<8x256xf32>
    %761 = arith.select %759, %757, %760 : vector<8x256xi1>, vector<8x256xf32>
    %c80_494 = arith.constant 80 : index
    %c0_495 = arith.constant 0 : index
    %762 = vector.load %arg5[%c80_494, %c0_495] : memref<200x256xf32, #tpu.memory_space<vmem>>, vector<8x256xf32>
    tpu.vector_store %arg5[%c80_494, %c0_495], %761 {strides = array<i32>} : memref<200x256xf32, #tpu.memory_space<vmem>>, vector<8x256xf32>,
    %c16_i32_496 = arith.constant 16 : i32
    %763 = tpu.dynamic_rotate %756 by %c16_i32_496 dim 1 : vector<8x256xf32>, i32 -> vector<8x256xf32>
    %cst_497 = arith.constant 0.000000e+00 : f32
    %764 = vector.shape_cast %690 : vector<1x256xi1> to vector<1x256xi1>
    %765 = vector.broadcast %764 : vector<1x256xi1> to vector<8x256xi1>
    %766 = vector.broadcast %cst_497 : f32 to vector<8x256xf32>
    %767 = arith.select %765, %763, %766 : vector<8x256xi1>, vector<8x256xf32>
    %c88_498 = arith.constant 88 : index
    %c0_499 = arith.constant 0 : index
    %768 = vector.load %arg5[%c88_498, %c0_499] : memref<200x256xf32, #tpu.memory_space<vmem>>, vector<8x256xf32>
    tpu.vector_store %arg5[%c88_498, %c0_499], %767 {strides = array<i32>} : memref<200x256xf32, #tpu.memory_space<vmem>>, vector<8x256xf32>,
    %c96_500 = arith.constant 96 : index
    %c0_501 = arith.constant 0 : index
    %769 = vector.load %arg5[%c96_500, %c0_501] : memref<200x256xf32, #tpu.memory_space<vmem>>, vector<8x256xf32>
    tpu.vector_store %arg5[%c96_500, %c0_501], %756 {strides = array<i32>} : memref<200x256xf32, #tpu.memory_space<vmem>>, vector<8x256xf32>,
    %c240_i32_502 = arith.constant 240 : i32
    %770 = tpu.dynamic_rotate %756 by %c240_i32_502 dim 1 : vector<8x256xf32>, i32 -> vector<8x256xf32>
    %cst_503 = arith.constant 0.000000e+00 : f32
    %771 = vector.shape_cast %695 : vector<1x256xi1> to vector<1x256xi1>
    %772 = vector.broadcast %771 : vector<1x256xi1> to vector<8x256xi1>
    %773 = vector.broadcast %cst_503 : f32 to vector<8x256xf32>
    %774 = arith.select %772, %770, %773 : vector<8x256xi1>, vector<8x256xf32>
    %c104_504 = arith.constant 104 : index
    %c0_505 = arith.constant 0 : index
    %775 = vector.load %arg5[%c104_504, %c0_505] : memref<200x256xf32, #tpu.memory_space<vmem>>, vector<8x256xf32>
    tpu.vector_store %arg5[%c104_504, %c0_505], %774 {strides = array<i32>} : memref<200x256xf32, #tpu.memory_space<vmem>>, vector<8x256xf32>,
    %c224_i32_506 = arith.constant 224 : i32
    %776 = tpu.dynamic_rotate %756 by %c224_i32_506 dim 1 : vector<8x256xf32>, i32 -> vector<8x256xf32>
    %cst_507 = arith.constant 0.000000e+00 : f32
    %777 = vector.shape_cast %700 : vector<1x256xi1> to vector<1x256xi1>
    %778 = vector.broadcast %777 : vector<1x256xi1> to vector<8x256xi1>
    %779 = vector.broadcast %cst_507 : f32 to vector<8x256xf32>
    %780 = arith.select %778, %776, %779 : vector<8x256xi1>, vector<8x256xf32>
    %c112_508 = arith.constant 112 : index
    %c0_509 = arith.constant 0 : index
    %781 = vector.load %arg5[%c112_508, %c0_509] : memref<200x256xf32, #tpu.memory_space<vmem>>, vector<8x256xf32>
    tpu.vector_store %arg5[%c112_508, %c0_509], %780 {strides = array<i32>} : memref<200x256xf32, #tpu.memory_space<vmem>>, vector<8x256xf32>,
    %c0_510 = arith.constant 0 : index
    %c0_511 = arith.constant 0 : index
    %c896_512 = arith.constant 896 : index
    %782 = vector.load %arg1[%c0_510, %c0_511, %c896_512] : memref<1x8x1536xf32, #tpu.memory_space<vmem>>, vector<1x8x256xf32>
    %783 = vector.shape_cast %782 : vector<1x8x256xf32> to vector<8x256xf32>
    %c32_i32_513 = arith.constant 32 : i32
    %784 = tpu.dynamic_rotate %783 by %c32_i32_513 dim 1 : vector<8x256xf32>, i32 -> vector<8x256xf32>
    %cst_514 = arith.constant 0.000000e+00 : f32
    %785 = vector.shape_cast %685 : vector<1x256xi1> to vector<1x256xi1>
    %786 = vector.broadcast %785 : vector<1x256xi1> to vector<8x256xi1>
    %787 = vector.broadcast %cst_514 : f32 to vector<8x256xf32>
    %788 = arith.select %786, %784, %787 : vector<8x256xi1>, vector<8x256xf32>
    %c120_515 = arith.constant 120 : index
    %c0_516 = arith.constant 0 : index
    %789 = vector.load %arg5[%c120_515, %c0_516] : memref<200x256xf32, #tpu.memory_space<vmem>>, vector<8x256xf32>
    tpu.vector_store %arg5[%c120_515, %c0_516], %788 {strides = array<i32>} : memref<200x256xf32, #tpu.memory_space<vmem>>, vector<8x256xf32>,
    %c16_i32_517 = arith.constant 16 : i32
    %790 = tpu.dynamic_rotate %783 by %c16_i32_517 dim 1 : vector<8x256xf32>, i32 -> vector<8x256xf32>
    %cst_518 = arith.constant 0.000000e+00 : f32
    %791 = vector.shape_cast %690 : vector<1x256xi1> to vector<1x256xi1>
    %792 = vector.broadcast %791 : vector<1x256xi1> to vector<8x256xi1>
    %793 = vector.broadcast %cst_518 : f32 to vector<8x256xf32>
    %794 = arith.select %792, %790, %793 : vector<8x256xi1>, vector<8x256xf32>
    %c128_519 = arith.constant 128 : index
    %c0_520 = arith.constant 0 : index
    %795 = vector.load %arg5[%c128_519, %c0_520] : memref<200x256xf32, #tpu.memory_space<vmem>>, vector<8x256xf32>
    tpu.vector_store %arg5[%c128_519, %c0_520], %794 {strides = array<i32>} : memref<200x256xf32, #tpu.memory_space<vmem>>, vector<8x256xf32>,
    %c136_521 = arith.constant 136 : index
    %c0_522 = arith.constant 0 : index
    %796 = vector.load %arg5[%c136_521, %c0_522] : memref<200x256xf32, #tpu.memory_space<vmem>>, vector<8x256xf32>
    tpu.vector_store %arg5[%c136_521, %c0_522], %783 {strides = array<i32>} : memref<200x256xf32, #tpu.memory_space<vmem>>, vector<8x256xf32>,
    %c240_i32_523 = arith.constant 240 : i32
    %797 = tpu.dynamic_rotate %783 by %c240_i32_523 dim 1 : vector<8x256xf32>, i32 -> vector<8x256xf32>
    %cst_524 = arith.constant 0.000000e+00 : f32
    %798 = vector.shape_cast %695 : vector<1x256xi1> to vector<1x256xi1>
    %799 = vector.broadcast %798 : vector<1x256xi1> to vector<8x256xi1>
    %800 = vector.broadcast %cst_524 : f32 to vector<8x256xf32>
    %801 = arith.select %799, %797, %800 : vector<8x256xi1>, vector<8x256xf32>
    %c144_525 = arith.constant 144 : index
    %c0_526 = arith.constant 0 : index
    %802 = vector.load %arg5[%c144_525, %c0_526] : memref<200x256xf32, #tpu.memory_space<vmem>>, vector<8x256xf32>
    tpu.vector_store %arg5[%c144_525, %c0_526], %801 {strides = array<i32>} : memref<200x256xf32, #tpu.memory_space<vmem>>, vector<8x256xf32>,
    %c224_i32_527 = arith.constant 224 : i32
    %803 = tpu.dynamic_rotate %783 by %c224_i32_527 dim 1 : vector<8x256xf32>, i32 -> vector<8x256xf32>
    %cst_528 = arith.constant 0.000000e+00 : f32
    %804 = vector.shape_cast %700 : vector<1x256xi1> to vector<1x256xi1>
    %805 = vector.broadcast %804 : vector<1x256xi1> to vector<8x256xi1>
    %806 = vector.broadcast %cst_528 : f32 to vector<8x256xf32>
    %807 = arith.select %805, %803, %806 : vector<8x256xi1>, vector<8x256xf32>
    %c152_529 = arith.constant 152 : index
    %c0_530 = arith.constant 0 : index
    %808 = vector.load %arg5[%c152_529, %c0_530] : memref<200x256xf32, #tpu.memory_space<vmem>>, vector<8x256xf32>
    tpu.vector_store %arg5[%c152_529, %c0_530], %807 {strides = array<i32>} : memref<200x256xf32, #tpu.memory_space<vmem>>, vector<8x256xf32>,
    %c0_531 = arith.constant 0 : index
    %c0_532 = arith.constant 0 : index
    %c1152 = arith.constant 1152 : index
    %809 = vector.load %arg1[%c0_531, %c0_532, %c1152] : memref<1x8x1536xf32, #tpu.memory_space<vmem>>, vector<1x8x256xf32>
    %810 = vector.shape_cast %809 : vector<1x8x256xf32> to vector<8x256xf32>
    %c32_i32_533 = arith.constant 32 : i32
    %811 = tpu.dynamic_rotate %810 by %c32_i32_533 dim 1 : vector<8x256xf32>, i32 -> vector<8x256xf32>
    %cst_534 = arith.constant 0.000000e+00 : f32
    %812 = vector.shape_cast %685 : vector<1x256xi1> to vector<1x256xi1>
    %813 = vector.broadcast %812 : vector<1x256xi1> to vector<8x256xi1>
    %814 = vector.broadcast %cst_534 : f32 to vector<8x256xf32>
    %815 = arith.select %813, %811, %814 : vector<8x256xi1>, vector<8x256xf32>
    %c160_535 = arith.constant 160 : index
    %c0_536 = arith.constant 0 : index
    %816 = vector.load %arg5[%c160_535, %c0_536] : memref<200x256xf32, #tpu.memory_space<vmem>>, vector<8x256xf32>
    tpu.vector_store %arg5[%c160_535, %c0_536], %815 {strides = array<i32>} : memref<200x256xf32, #tpu.memory_space<vmem>>, vector<8x256xf32>,
    %c16_i32_537 = arith.constant 16 : i32
    %817 = tpu.dynamic_rotate %810 by %c16_i32_537 dim 1 : vector<8x256xf32>, i32 -> vector<8x256xf32>
    %cst_538 = arith.constant 0.000000e+00 : f32
    %818 = vector.shape_cast %690 : vector<1x256xi1> to vector<1x256xi1>
    %819 = vector.broadcast %818 : vector<1x256xi1> to vector<8x256xi1>
    %820 = vector.broadcast %cst_538 : f32 to vector<8x256xf32>
    %821 = arith.select %819, %817, %820 : vector<8x256xi1>, vector<8x256xf32>
    %c168_539 = arith.constant 168 : index
    %c0_540 = arith.constant 0 : index
    %822 = vector.load %arg5[%c168_539, %c0_540] : memref<200x256xf32, #tpu.memory_space<vmem>>, vector<8x256xf32>
    tpu.vector_store %arg5[%c168_539, %c0_540], %821 {strides = array<i32>} : memref<200x256xf32, #tpu.memory_space<vmem>>, vector<8x256xf32>,
    %c176_541 = arith.constant 176 : index
    %c0_542 = arith.constant 0 : index
    %823 = vector.load %arg5[%c176_541, %c0_542] : memref<200x256xf32, #tpu.memory_space<vmem>>, vector<8x256xf32>
    tpu.vector_store %arg5[%c176_541, %c0_542], %810 {strides = array<i32>} : memref<200x256xf32, #tpu.memory_space<vmem>>, vector<8x256xf32>,
    %c240_i32_543 = arith.constant 240 : i32
    %824 = tpu.dynamic_rotate %810 by %c240_i32_543 dim 1 : vector<8x256xf32>, i32 -> vector<8x256xf32>
    %cst_544 = arith.constant 0.000000e+00 : f32
    %825 = vector.shape_cast %695 : vector<1x256xi1> to vector<1x256xi1>
    %826 = vector.broadcast %825 : vector<1x256xi1> to vector<8x256xi1>
    %827 = vector.broadcast %cst_544 : f32 to vector<8x256xf32>
    %828 = arith.select %826, %824, %827 : vector<8x256xi1>, vector<8x256xf32>
    %c184_545 = arith.constant 184 : index
    %c0_546 = arith.constant 0 : index
    %829 = vector.load %arg5[%c184_545, %c0_546] : memref<200x256xf32, #tpu.memory_space<vmem>>, vector<8x256xf32>
    tpu.vector_store %arg5[%c184_545, %c0_546], %828 {strides = array<i32>} : memref<200x256xf32, #tpu.memory_space<vmem>>, vector<8x256xf32>,
    %c224_i32_547 = arith.constant 224 : i32
    %830 = tpu.dynamic_rotate %810 by %c224_i32_547 dim 1 : vector<8x256xf32>, i32 -> vector<8x256xf32>
    %cst_548 = arith.constant 0.000000e+00 : f32
    %831 = vector.shape_cast %700 : vector<1x256xi1> to vector<1x256xi1>
    %832 = vector.broadcast %831 : vector<1x256xi1> to vector<8x256xi1>
    %833 = vector.broadcast %cst_548 : f32 to vector<8x256xf32>
    %834 = arith.select %832, %830, %833 : vector<8x256xi1>, vector<8x256xf32>
    %c192_549 = arith.constant 192 : index
    %c0_550 = arith.constant 0 : index
    %835 = vector.load %arg5[%c192_549, %c0_550] : memref<200x256xf32, #tpu.memory_space<vmem>>, vector<8x256xf32>
    tpu.vector_store %arg5[%c192_549, %c0_550], %834 {strides = array<i32>} : memref<200x256xf32, #tpu.memory_space<vmem>>, vector<8x256xf32>,
    %c4 = arith.constant 4 : index
    %c0_551 = arith.constant 0 : index
    %c0_552 = arith.constant 0 : index
    %836 = vector.load %arg2[%c4, %c0_551, %c0_552] : memref<5x8x200xf32, #tpu.memory_space<vmem>>, vector<1x8x200xf32>
    %837 = vector.shape_cast %836 : vector<1x8x200xf32> to vector<8x200xf32>
    %c0_553 = arith.constant 0 : index
    %c0_554 = arith.constant 0 : index
    %838 = vector.load %arg5[%c0_553, %c0_554] : memref<200x256xf32, #tpu.memory_space<vmem>>, vector<200x256xf32>
    %cst_555 = arith.constant dense<0.000000e+00> : vector<8x256xf32>
    %839 = tpu.matmul %837, %838, %cst_555 {dimension_numbers = #tpu.dot_dimension_numbers<[1], [0], [0], [1], [0, 0, 1, 1], [], []>} : vector<8x200xf32>, vector<200x256xf32>, vector<8x256xf32> -> vector<8x256xf32>
    %c4_556 = arith.constant 4 : index
    %c0_557 = arith.constant 0 : index
    %c0_558 = arith.constant 0 : index
    %840 = vector.load %arg3[%c4_556, %c0_557, %c0_558] : memref<5x8x1xf32, #tpu.memory_space<vmem>>, vector<1x8x1xf32>
    %841 = vector.shape_cast %840 : vector<1x8x1xf32> to vector<8x1xf32>
    %842 = vector.broadcast %841 : vector<8x1xf32> to vector<8x256xf32>
    %843 = arith.addf %839, %842 : vector<8x256xf32>
    %c0_559 = arith.constant 0 : index
    %c32_560 = arith.constant 32 : index
    %c0_561 = arith.constant 0 : index
    %844 = vector.load %arg4[%c0_559, %c32_560, %c0_561] : memref<1x40x256xf32, #tpu.memory_space<vmem>>, vector<1x8x256xf32>
    %845 = vector.shape_cast %844 : vector<1x8x256xf32> to vector<8x256xf32>
    %846 = vector.shape_cast %843 : vector<8x256xf32> to vector<1x8x256xf32>
    tpu.vector_store %arg4[%c0_559, %c32_560, %c0_561], %846 {strides = array<i32>} : memref<1x40x256xf32, #tpu.memory_space<vmem>>, vector<1x8x256xf32>,
    return
  }
  func.func @transform_0(%arg0: i32) -> (i32, i32, i32) {
    %c0_i32 = arith.constant 0 : i32
    %c0_i32_0 = arith.constant 0 : i32
    %c0_i32_1 = arith.constant 0 : i32
    return %arg0, %c0_i32, %c0_i32_0 : i32, i32, i32
  }
  func.func @transform_1(%arg0: i32) -> (i32, i32, i32) {
    %c0_i32 = arith.constant 0 : i32
    %c0_i32_0 = arith.constant 0 : i32
    %c0_i32_1 = arith.constant 0 : i32
    %c0_i32_2 = arith.constant 0 : i32
    return %c0_i32, %c0_i32_0, %c0_i32_1 : i32, i32, i32
  }
  func.func @transform_2(%arg0: i32) -> (i32, i32, i32) {
    %c0_i32 = arith.constant 0 : i32
    %c0_i32_0 = arith.constant 0 : i32
    %c0_i32_1 = arith.constant 0 : i32
    %c0_i32_2 = arith.constant 0 : i32
    return %c0_i32, %c0_i32_0, %c0_i32_1 : i32, i32, i32
  }
  func.func @transform_3(%arg0: i32) -> (i32, i32, i32) {
    %c0_i32 = arith.constant 0 : i32
    %c0_i32_0 = arith.constant 0 : i32
    %c0_i32_1 = arith.constant 0 : i32
    return %arg0, %c0_i32, %c0_i32_0 : i32, i32, i32
  }
}

</mosaic_0001>

<bundles_post_ra>
// kernel: sdc_forward.1
= control target key start
LH: loop header
LB: loop body
LE: loop exit
PB: predicated region body
PF: predicated region fallthrough
CT: control target
= control target key end

     0   :  { %s3248_s12 = smov 0   ;;  %s4551_s0 = inlined_call_operand.vmem [shape: f32[2,8,1536], index: 0, kind: input, shape index: {}]   ;;  %s4552_s1 = inlined_call_operand.vmem [shape: f32[5,8,200], index: 1, kind: input, shape index: {}]   ;;  %s4553_s2 = inlined_call_operand.vmem [shape: f32[5,8,1], index: 2, kind: input, shape index: {}]   ;;  %s4554_s3 = inlined_call_operand.vmem [shape: f32[2,40,256], index: 3, kind: output, shape index: {}]  }
   0x1 LB: > { %s2309_s13 = sadd.s32 4294967295, %s3209_s12   ;;  %p2313_p0 = scmp.ge.s32.totalorder %s3209_s12, 1  ;;  %s3209_s12 = sphi %s3248_s12, %s13_s12  }
   0x2   : > { %p137_p1 = scmp.lt.s32.totalorder %s3209_s12, 3 }
   0x4   : > { %p138_p2 = pnand %p2313_p0, %p137_p1 }
   0x5   : > { %p161_p3 = scmp.lt.s32.totalorder (!%p138_p2), %s2309_s13, 1  ;;  %s3211_s18 = smov (!%p138_p2), 32   ;;  %vm681_vm0 = vcmask (!%p138_p2), 523264   ;;  %vm234_vm1 = vcmask (!%p138_p2), 261120   ;;  %v171_v32 = vlaneseq (!%p138_p2)  ;;  %vm475_vm2 = vcmask (!%p138_p2), 785408  }
   0x6   : > { %141 = sbr.rel (%p138_p2) target bundleno = 640 (0x280), region = 32  ;;  %s3212_s19 = smov (!%p138_p2), 64   ;;  %vm313_vm5 = vcmask (!%p138_p2), 130048   ;;  %vm4555_vm6 = vcmask (!%p138_p2), 588800   ;;  %vm416_vm7 = vcmask (!%p138_p2), 916480  }
   0x7   : > { %s3213_s20 = smov (!%p138_p2), 96   ;;  %s3214_s21 = smov (!%p138_p2), 16   ;;  %v3359_v35 = vand.u32 (!%p138_p2), 127, %v171_v32  ;;  %v523_v32 = vld [vmem:[%s4552_s1 + $0x8] sm:$0xff] (!%p138_p2) }
   0x8   : > { %s3215_s22 = smov (!%p138_p2), 112   ;;  %s3216_s23 = smov (!%p138_p2), 2   ;;  %2316 = vmatprep.mubr.msk.f32.mxu0 (!%p138_p2), %vm4555_vm6, %v523_v32 }
   0x9   : > { %s3217_s24 = smov (!%p138_p2), 4   ;;  %s3218_s25 = smov (!%p138_p2), 126   ;;  %vm4566_vm3 = vcmp.lt.s32.totalorder (!%p138_p2), %v3359_v35, 2  ;;  %vm4559_vm4 = vcmp.lt.s32.totalorder (!%p138_p2), %v3359_v35, 4 }
   0xa   : > { %s3219_s26 = smov (!%p138_p2), 124   ;;  %s3220_s27 = smov (!%p138_p2), 8  }
   0xb   : > { %s3221_s28 = smov (!%p138_p2), 120   ;;  %s3222_s29 = smov (!%p138_p2), 1  }
   0xc   : > { %s3223_s5 = smov (!%p138_p2), 127  }
   0xd   : > { %s4827_s13 = smov (!%p161_p3, %s2309_s13), 1 }
   0xe   : > { %s2785_s14 = smul.u32 96, %s4827_s13 }
   0xf   : > { %s2786_s9 = smul.u32 80, %s4827_s13 }
  0x10   : > { %s3262_s17 = scalar_lea.vmem %s4551_s0, %s2785_s14 }
  0x11   : > { %v3265_v0 = vld [vmem:[%s3262_s17 + $0x20] sm:$0xff]  ;;  %v3268_v1 = vld [vmem:[%s3262_s17 + $0x28] sm:$0xff]  ;;  %v3271_v2 = vld [vmem:[%s3262_s17 + $0x30] sm:$0xff]  ;;  %s4536_s14 = scalar_lea.vmem %s4554_s3, %s2786_s9 }
  0x12   : > { %v3275_v3 = vpack.i.bf16 %v3268_v1, %v3265_v0  ;;  %v2817_v4 = vpack.i.bf16 %v3265_v0, %v3271_v2  ;;  %v3284_v5 = vld [vmem:[%s3262_s17 + $0x38] sm:$0xff]  ;;  %v3288_v6 = vpack.i.bf16 %v3271_v2, %v3268_v1 }
  0x13   : > { %v3313_v7 = vld [vmem:[%s3262_s17 + $0x18] sm:$0xff] }
  0x14   : > { %2823 = vrot.lane.b32.xlu1 %v3275_v3, %s3211_s18  ;;  %2813 = vrot.lane.b32.xlu0 %v3275_v3, %s3212_s19  ;;  %v2877_v8 = vpack.i.bf16 %v3265_v0, %v3313_v7 }
  0x18   : > { %2818 = vrot.lane.b32.xlu0 %v2817_v4, %s3212_s19  ;;  %2828 = vrot.lane.b32.xlu1 %v2817_v4, %s3211_s18 }
  0x1c   : > { %850 = vrot.lane.b32.xlu1 %v3284_v5, %s3213_s20  ;;  %2833 = vrot.lane.b32.xlu0 %v3288_v6, %s3213_s20 }
  0x20   : > { %906 = vrot.lane.b32.xlu1 %v3271_v2, %s3212_s19  ;;  %904 = vrot.lane.b32.xlu0 %v3268_v1, %s3212_s19 }
  0x24   : > { %2838 = vrot.lane.b32.xlu1 %v3288_v6, %s3211_s18  ;;  %908 = vrot.lane.b32.xlu0 %v3284_v5, %s3212_s19 }
  0x28   : > { %311 = vrot.lane.b32.xlu1 %v3271_v2, %s3214_s21  ;;  %2843 = vrot.lane.b32.xlu0 %v3275_v3, %s3214_s21 }
  0x2c   : > { %414 = vrot.lane.b32.xlu1 %v3284_v5, %s3215_s22  ;;  %2848 = vrot.lane.b32.xlu0 %v3288_v6, %s3215_s22 }
  0x30   : > { %2858 = vrot.lane.b32.xlu1 %v3288_v6, %s3216_s23  ;;  %2853 = vrot.lane.b32.xlu0 %v3288_v6, %s3217_s24 }
  0x34   : > { %469 = vrot.lane.b32.xlu1 %v3268_v1, %s3213_s20  ;;  %2863 = vrot.lane.b32.xlu0 %v3288_v6, %s3218_s25 }
  0x38   : > { %473 = vrot.lane.b32.xlu1 %v3284_v5, %s3213_s20  ;;  %471 = vrot.lane.b32.xlu0 %v3271_v2, %s3213_s20 }
  0x3c   : > { %2873 = vrot.lane.b32.xlu1 %v3288_v6, %s3212_s19  ;;  %2868 = vrot.lane.b32.xlu0 %v3288_v6, %s3219_s26 }
  0x40   : > { %2878 = vrot.lane.b32.xlu0 %v2877_v8, %s3220_s27  ;;  %2883 = vrot.lane.b32.xlu1 %v2877_v8, %s3221_s28  ;;  %v2318_v8 = vld [vmem:[%s4552_s1 + $0x18] sm:$0xff] }
  0x41   : > { %2320 = vmatprep.mubr.msk.f32.mxu1 %vm4555_vm6, %v2318_v8 }
  0x86   : > { %v2824_v9 = vpop.permute.xlu1 %2823  ;;  %v2814_v10 = vpop.permute.xlu0 %2813 }
  0x87   : > { %v2816_v11 = vunpack.i.h.bf16 %v2814_v10  ;;  %v2815_v12 = vunpack.i.l.bf16 %v2814_v10  ;;  %v2826_v16 = vunpack.i.h.bf16 %v2824_v9  ;;  %v2825_v17 = vunpack.i.l.bf16 %v2824_v9 }
  0x89   : > { %v3329_v18 = vsel %vm681_vm0, %v2815_v12, %v2816_v11  ;;  %v3340_v24 = vsel %vm234_vm1, %v2825_v17, %v2826_v16 }
  0x8a   : > { %v3323_v13 = vpop.permute.xlu0 %2818  ;;  %v3325_v14 = vpop.permute.xlu1 %2828 }
  0x8b   : > { %v2820_v15 = vunpack.i.l.bf16 %v3323_v13  ;;  %v2830_v20 = vunpack.i.l.bf16 %v3325_v14  ;;  %v2831_v56 = vunpack.i.h.bf16 %v3325_v14 }
  0x8d   : > { %v3332_v19 = vsel %vm681_vm0, %v2816_v11, %v2820_v15  ;;  %v3343_v25 = vsel %vm234_vm1, %v2826_v16, %v2830_v20 }
  0x8e   : > { %v851_v21 = vpop.permute.xlu1 %850  ;;  %v2887_v22 = vpack.i.bf16 %v3332_v19, %v3329_v18  ;;  %v2834_v23 = vpop.permute.xlu0 %2833  ;;  %v2912_v28 = vpack.i.bf16 %v3343_v25, %v3340_v24 }
  0x8f   : > { %v2836_v37 = vunpack.i.h.bf16 %v2834_v23  ;;  %v2835_v38 = vunpack.i.l.bf16 %v2834_v23 }
  0x90   : > { %2888 = vrot.lane.b32.xlu0 %v2887_v22, %s3217_s24  ;;  %2893 = vrot.lane.b32.xlu1 %v2887_v22, %s3216_s23 }
  0x91   : > { %v3372_v45 = vsel %vm475_vm2, %v2835_v38, %v2836_v37  ;;  %v3375_v46 = vsel %vm475_vm2, %v2836_v37, %v851_v21  ;;  %v2821_v37 = vunpack.i.h.bf16 %v3323_v13  ;;  %v173_v13 = vadd.s32 128, %v3359_v35 }
  0x92   : > { %v907_v26 = vpop.permute.xlu1 %906  ;;  %v905_v27 = vpop.permute.xlu0 %904  ;;  %v2952_v53 = vpack.i.bf16 %v3375_v46, %v3372_v45 }
  0x93   : > { %v3406_v54 = vsel %vm681_vm0, %v905_v27, %v907_v26 }
  0x94   : > { %2903 = vrot.lane.b32.xlu0 %v2887_v22, %s3218_s25  ;;  %2898 = vrot.lane.b32.xlu1 %v3275_v3, %s3220_s27 }
  0x96   : > { %v2839_v29 = vpop.permute.xlu1 %2838  ;;  %v909_v30 = vpop.permute.xlu0 %908 }
  0x97   : > { %v3409_v55 = vsel %vm681_vm0, %v907_v26, %v909_v30  ;;  %v2841_v57 = vunpack.i.h.bf16 %v2839_v29  ;;  %v2840_v58 = vunpack.i.l.bf16 %v2839_v29  ;;  %v3490_v30 = vld [vmem:[%s3262_s17 + $0x40] sm:$0xff] }
  0x98   : > { %2908 = vrot.lane.b32.xlu1 %v2887_v22, %s3219_s26  ;;  %2913 = vrot.lane.b32.xlu0 %v2912_v28, %s3217_s24  ;;  %v2972_v59 = vpack.i.bf16 %v3409_v55, %v3406_v54  ;;  %v3472_v22 = vpack.i.bf16 %v3284_v5, %v3271_v2 }
  0x99   : > { %v3417_v60 = vsel %vm234_vm1, %v2831_v56, %v2840_v58  ;;  %v3420_v61 = vsel %vm234_vm1, %v2840_v58, %v2841_v57  ;;  %vm4557_vm1 = vcmp.lt.s32.totalorder %v3359_v35, 126 }
  0x9a   : > { %v3352_v31 = vpop.permute.xlu1 %311  ;;  %v2844_v33 = vpop.permute.xlu0 %2843  ;;  %v2987_v62 = vpack.i.bf16 %v3420_v61, %v3417_v60 }
  0x9b   : > { %v2846_v63 = vunpack.i.h.bf16 %v2844_v33  ;;  %v2845_v4 = vunpack.i.l.bf16 %v2844_v33 }
  0x9c   : > { %2923 = vrot.lane.b32.xlu1 %v2912_v28, %s3216_s23  ;;  %2918 = vrot.lane.b32.xlu0 %v3288_v6, %s3212_s19 }
  0x9d   : > { %v3434_v9 = vsel %vm313_vm5, %v2845_v4, %v2846_v63  ;;  %v3437_v10 = vsel %vm313_vm5, %v2846_v63, %v3352_v31  ;;  %v3092_v31 = vpack.i.bf16 %v3490_v30, %v3284_v5 }
  0x9e   : > { %v3357_v34 = vpop.permute.xlu1 %414  ;;  %v3361_v36 = vpop.permute.xlu0 %2848  ;;  %v3012_v11 = vpack.i.bf16 %v3437_v10, %v3434_v9 }
  0x9f   : > { %v2851_v12 = vunpack.i.h.bf16 %v3361_v36  ;;  %v2850_v14 = vunpack.i.l.bf16 %v3361_v36 }
  0xa0   : > { %2933 = vrot.lane.b32.xlu1 %v2912_v28, %s3219_s26  ;;  %2928 = vrot.lane.b32.xlu0 %v2912_v28, %s3218_s25 }
  0xa1   : > { %v3454_v15 = vsel %vm416_vm7, %v2850_v14, %v2851_v12  ;;  %v3457_v16 = vsel %vm416_vm7, %v2851_v12, %v3357_v34 }
  0xa2   : > { %v2859_v39 = vpop.permute.xlu1 %2858  ;;  %v2854_v40 = vpop.permute.xlu0 %2853  ;;  %v3052_v17 = vpack.i.bf16 %v3457_v16, %v3454_v15 }
  0xa3   : > { %v2861_v41 = vunpack.i.h.bf16 %v2859_v39  ;;  %v2860_v42 = vunpack.i.l.bf16 %v2859_v39  ;;  %v2856_v43 = vunpack.i.h.bf16 %v2854_v40  ;;  %v2855_v44 = vunpack.i.l.bf16 %v2854_v40 }
  0xa4   : > { %1270 = vrot.lane.b32.xlu1 %v3284_v5, %s3212_s19  ;;  %2938 = vrot.lane.b32.xlu0 %v3288_v6, %s3216_s23 }
  0xa5   : > { %v3379_v47 = vsel %vm4566_vm3, %v2860_v42, %v2861_v41  ;;  %v3383_v48 = vsel %vm4566_vm3, %v2861_v41, %v2860_v42  ;;  %v3387_v49 = vsel %vm4559_vm4, %v2855_v44, %v2856_v43  ;;  %v3391_v50 = vsel %vm4559_vm4, %v2856_v43, %v2855_v44 }
  0xa6   : > { %v2577_v51 = vpack.c.bf16 %v3379_v47, %v3387_v49  ;;  %v2580_v52 = vpack.c.bf16 %v3383_v48, %v3391_v50  ;;  %v3465_v20 = vpop.permute.xlu0 %2863  ;;  %v470_v21 = vpop.permute.xlu1 %469  ;;  %v3538_v44 = vand.u32 15, %v3359_v35 }
  0xa8   : > { %2943 = vrot.lane.b32.xlu1 %v3288_v6, %s3222_s29  ;;  %2948 = vrot.lane.b32.xlu0 %v3275_v3, %s3221_s28  ;;  %vm4564_vm10 = vcmp.ge.s32.totalorder %v3538_v44, 2  ;;  %vm4560_vm11 = vcmp.ge.s32.totalorder %v3538_v44, 4  ;;  %vm4558_vm15 = vcmp.lt.s32.totalorder %v3538_v44, 14 }
  0xa9   : > { %vm3574_vm13 = vmpackc.low %vm4564_vm10, %vm4560_vm11 }
  0xaa   : > { %v472_v23 = vpop.permute.xlu0 %471  ;;  %v474_v26 = vpop.permute.xlu1 %473 }
  0xab   : > { %v3478_v27 = vsel %vm475_vm2, %v470_v21, %v472_v23  ;;  %v3481_v28 = vsel %vm475_vm2, %v472_v23, %v474_v26  ;;  %vm4562_vm2 = vmmov 1  }
  0xac   : > { %2953 = vrot.lane.b32.xlu1 %v2952_v53, %s3217_s24  ;;  %2958 = vrot.lane.b32.xlu0 %v2952_v53, %s3216_s23  ;;  %v3077_v29 = vpack.i.bf16 %v3481_v28, %v3478_v27  ;;  %vm3601_vm7 = vmpackc.low %vm4558_vm15, %vm4562_vm2 }
  0xae   : > { %v2874_v33 = vpop.permute.xlu1 %2873  ;;  %v3524_v41 = vpop.permute.xlu0 %2868 }
  0xaf   : > { %v2876_v34 = vunpack.i.h.bf16 %v2874_v33  ;;  %v2875_v36 = vunpack.i.l.bf16 %v2874_v33 }
  0xb0   : > { %2963 = vrot.lane.b32.xlu1 %v2952_v53, %s3218_s25  ;;  %2968 = vrot.lane.b32.xlu0 %v2952_v53, %s3219_s26 }
  0xb1   : > { %v3513_v38 = vsel %vm681_vm0, %v2821_v37, %v2875_v36  ;;  %v3516_v39 = vsel %vm681_vm0, %v2875_v36, %v2876_v34 }
  0xb2   : > { %v3127_v40 = vpack.i.bf16 %v3516_v39, %v3513_v38  ;;  %v3531_v42 = vpop.permute.xlu0 %2878  ;;  %v3533_v43 = vpop.permute.xlu1 %2883 }
  0xb3   : > { %v2881_v8 = vunpack.i.h.bf16 %v3531_v42 }
  0xb4   : > { %2973 = vrot.lane.b32.xlu1 %v2972_v59, %s3217_s24  ;;  %2978 = vrot.lane.b32.xlu0 %v2972_v59, %s3216_s23 }
  0xb8   : > { %2988 = vrot.lane.b32.xlu1 %v2987_v62, %s3222_s29  ;;  %2983 = vrot.lane.b32.xlu0 %v2987_v62, %s3216_s23 }
  0xbc   : > { %2998 = vrot.lane.b32.xlu1 %v2987_v62, %s3223_s5  ;;  %2993 = vrot.lane.b32.xlu0 %v2972_v59, %s3218_s25 }
  0xc0   : > { %948 = vrot.lane.b32.xlu1 %v3409_v55, %s3219_s26  ;;  %946 = vrot.lane.b32.xlu0 %v3406_v54, %s3219_s26 }
  0xc4   : > { %3003 = vrot.lane.b32.xlu1 %v2987_v62, %s3218_s25  ;;  %3013 = vrot.lane.b32.xlu0 %v3012_v11, %s3216_s23 }
  0xc8   : > { %3008 = vrot.lane.b32.xlu1 %v3288_v6, %s3223_s5  ;;  %3018 = vrot.lane.b32.xlu0 %v3012_v11, %s3222_s29 }
  0xcc   : > { %3023 = vrot.lane.b32.xlu1 %v3012_v11, %s3223_s5  ;;  %3028 = vrot.lane.b32.xlu0 %v3012_v11, %s3218_s25 }
  0xd0   : > { %3038 = vrot.lane.b32.xlu1 %v3288_v6, %s3218_s25  ;;  %3033 = vrot.lane.b32.xlu0 %v3288_v6, %s3220_s27 }
  0xd4   : > { %3043 = vrot.lane.b32.xlu1 %v3288_v6, %s3221_s28  ;;  %3053 = vrot.lane.b32.xlu0 %v3052_v17, %s3216_s23 }
  0xd8   : > { %3048 = vrot.lane.b32.xlu1 %v3472_v22, %s3220_s27  ;;  %3058 = vrot.lane.b32.xlu0 %v3052_v17, %s3222_s29 }
  0xdc   : > { %3063 = vrot.lane.b32.xlu1 %v3052_v17, %s3223_s5  ;;  %3068 = vrot.lane.b32.xlu0 %v3052_v17, %s3218_s25 }
  0xe0   : > { %3078 = vrot.lane.b32.xlu1 %v3077_v29, %s3222_s29  ;;  %3073 = vrot.lane.b32.xlu0 %v3077_v29, %s3216_s23 }
  0xe4   : > { %3088 = vrot.lane.b32.xlu1 %v3077_v29, %s3223_s5  ;;  %3083 = vrot.lane.b32.xlu0 %v3472_v22, %s3221_s28 }
  0xe8   : > { %512 = vrot.lane.b32.xlu1 %v3478_v27, %s3218_s25  ;;  %3093 = vrot.lane.b32.xlu0 %v3092_v31, %s3220_s27 }
  0xec   : > { %3098 = vrot.lane.b32.xlu1 %v3275_v3, %s3220_s27  ;;  %514 = vrot.lane.b32.xlu0 %v3481_v28, %s3218_s25 }
  0xf0   : > { %3108 = vrot.lane.b32.xlu1 %v3092_v31, %s3221_s28  ;;  %3103 = vrot.lane.b32.xlu0 %v3275_v3, %s3217_s24 }
  0xf4   : > { %3118 = vrot.lane.b32.xlu1 %v3275_v3, %s3221_s28  ;;  %3113 = vrot.lane.b32.xlu0 %v3275_v3, %s3219_s26  ;;  %v3535_v3 = vand.u32 15, %v173_v13  ;;  %v3226_v13 = vmov 0.0  }
  0xf6   : > { %vm4565_vm8 = vcmp.ge.s32.totalorder %v3535_v3, 2  ;;  %vm4561_vm9 = vcmp.ge.s32.totalorder %v3535_v3, 4  ;;  %vm4556_vm14 = vcmp.lt.s32.totalorder %v3535_v3, 14  ;;  %vm4568_vm6 = vcmp.lt.s32.totalorder %v3535_v3, 12 }
  0xf7   : > { %vm3560_vm12 = vmpackc.low %vm4565_vm8, %vm4561_vm9 }
  0xf8   : > { %3128 = vrot.lane.b32.xlu1 %v3127_v40, %s3217_s24  ;;  %3123 = vrot.lane.b32.xlu0 %v3127_v40, %s3220_s27  ;;  %vm3592_vm5 = vmpackc.low %vm4556_vm14, %vm4562_vm2  ;;  %vm4567_vm14 = vcmp.lt.s32.totalorder %v3538_v44, 12 }
  0xf9   : > { %vm3624_vm15 = vmpackc.low %vm4561_vm9, %vm4568_vm6 }
  0xfa   : > { %vm3656_vm9 = vmpackc.low %vm4562_vm2, %vm4564_vm10 }
  0xfc   : > { %3138 = vrot.lane.b32.xlu1 %v3127_v40, %s3221_s28  ;;  %3133 = vrot.lane.b32.xlu0 %v3127_v40, %s3219_s26 }
 0x100   : > { %3148 = vrot.lane.b32.xlu1 %v3288_v6, %s3217_s24  ;;  %3143 = vrot.lane.b32.xlu0 %v3288_v6, %s3220_s27 }
 0x102   : > { %v2889_v53 = vpop.permute.xlu0 %2888  ;;  %v2894_v56 = vpop.permute.xlu1 %2893 }
 0x103   : > { %v2891_v57 = vunpack.i.h.bf16 %v2889_v53  ;;  %v2890_v58 = vunpack.i.l.bf16 %v2889_v53  ;;  %v2896_v59 = vunpack.i.h.bf16 %v2894_v56  ;;  %v2895_v62 = vunpack.i.l.bf16 %v2894_v56 }
 0x104   : > { %3153 = vrot.lane.b32.xlu0 %v3288_v6, %s3219_s26  ;;  %3158 = vrot.lane.b32.xlu1 %v3288_v6, %s3221_s28 }
 0x105   : > { %v691_v63 = vsel %vm4559_vm4, %v2890_v58, %v2891_v57  ;;  %v705_v4 = vsel %vm4566_vm3, %v2895_v62, %v2896_v59  ;;  %v692_v11 = vsel %vm4559_vm4, %v2891_v57, %v2890_v58  ;;  %v706_v6 = vsel %vm4566_vm3, %v2896_v59, %v2895_v62 }
 0x106   : > { %v2904_v12 = vpop.permute.xlu0 %2903  ;;  %v3568_v14 = vpop.permute.xlu1 %2898  ;;  %v2547_v17 = vpack.c.bf16 %v705_v4, %v691_v63  ;;  %v2550_v21 = vpack.c.bf16 %v706_v6, %v692_v11 }
 0x107   : > { %v2906_v26 = vunpack.i.h.bf16 %v2904_v12  ;;  %v2905_v29 = vunpack.i.l.bf16 %v2904_v12  ;;  %v2901_v23 = vunpack.i.h.bf16 %v3568_v14  ;;  %v2900_v33 = vunpack.i.l.bf16 %v3568_v14 }
 0x108   : > { %2549 = vmatprep.subr.msk.bf16.mxu1 %vm3560_vm12, %v2547_v17 }
 0x109   : > { %v717_v31 = vsel %vm4557_vm1, %v2905_v29, %v2906_v26  ;;  %v718_v32 = vsel %vm4557_vm1, %v2906_v26, %v2905_v29  ;;  %2552 = vmatpush1.bf16.msk.msra.mxu1 %vm3574_vm13, %v2550_v21  ;;  %vm4569_vm1 = vcmp.lt.s32.totalorder %v3359_v35, 124 }
 0x10a   : > { %v2553_v34 = vpack.c.bf16 %v718_v32, %v3332_v19  ;;  %v2556_v36 = vpack.c.bf16 %v717_v31, %v3329_v18  ;;  %v2909_v37 = vpop.permute.xlu1 %2908  ;;  %v2914_v40 = vpop.permute.xlu0 %2913 }
 0x10b   : > { %v2911_v53 = vunpack.i.h.bf16 %v2909_v37  ;;  %v2910_v56 = vunpack.i.l.bf16 %v2909_v37  ;;  %v2916_v57 = vunpack.i.h.bf16 %v2914_v40  ;;  %v2915_v58 = vunpack.i.l.bf16 %v2914_v40 }
 0x10c   : > { %2555 = vmatprep.subr.msk.bf16.mxu1 %vm3592_vm5, %v2553_v34 }
 0x10d   : > { %v728_v18 = vsel %vm4569_vm1, %v2910_v56, %v2911_v53  ;;  %v729_v19 = vsel %vm4569_vm1, %v2911_v53, %v2910_v56  ;;  %v758_v59 = vsel %vm4559_vm4, %v2915_v58, %v2916_v57  ;;  %v759_v62 = vsel %vm4559_vm4, %v2916_v57, %v2915_v58  ;;  %2558 = vmatpush1.bf16.msk.msra.mxu1 %vm3601_vm7, %v2556_v36  ;;  %vm3632_vm4 = vmpackc.low %vm4560_vm11, %vm4567_vm14 }
 0x10e   : > { %v2559_v4 = vpack.c.bf16 %v758_v59, %v729_v19  ;;  %v2562_v11 = vpack.c.bf16 %v759_v62, %v728_v18  ;;  %v2924_v6 = vpop.permute.xlu1 %2923  ;;  %v2919_v12 = vpop.permute.xlu0 %2918  ;;  %vm3647_vm11 = vmpackc.low %vm4562_vm2, %vm4565_vm8  ;;  %vm4609_vm2 = vcmp.lt.s32.totalorder %v3359_v35, 126  ;;  %vm4611_vm8 = vcmp.lt.s32.totalorder %v3535_v3, 14 }
 0x10f   : > { %v2926_v21 = vunpack.i.h.bf16 %v2924_v6  ;;  %v2925_v26 = vunpack.i.l.bf16 %v2924_v6  ;;  %v2921_v29 = vunpack.i.h.bf16 %v2919_v12  ;;  %v2920_v31 = vunpack.i.l.bf16 %v2919_v12  ;;  %vm4610_vm10 = vmmov %vm4609_vm2  ;;  %v2319_v6 = vld [vmem:[%s4553_s2 + $0x8] sm:$0xff] }
 0x110   : > { %2561 = vmatprep.subr.msk.bf16.mxu1 %vm3624_vm15, %v2559_v4  ;;  %v2866_v12 = vunpack.i.h.bf16 %v3465_v20 }
 0x111   : > { %v768_v32 = vsel %vm4566_vm3, %v2925_v26, %v2926_v21  ;;  %v769_v34 = vsel %vm4566_vm3, %v2926_v21, %v2925_v26  ;;  %2564 = vmatpush1.bf16.msk.msra.mxu1 %vm3632_vm4, %v2562_v11  ;;  %v3661_v62 = vsel %vm681_vm0, %v2920_v31, %v2921_v29  ;;  %vm3679_vm3 = vmpackc.low %vm4568_vm6, %vm4611_vm8  ;;  %v2865_v21 = vunpack.i.l.bf16 %v3465_v20 }
 0x112   : > { %v2565_v37 = vpack.c.bf16 %v3343_v25, %v768_v32  ;;  %v2568_v40 = vpack.c.bf16 %v3340_v24, %v769_v34  ;;  %v2934_v53 = vpop.permute.xlu1 %2933  ;;  %v2929_v56 = vpop.permute.xlu0 %2928  ;;  %vm4617_vm8 = vcmp.lt.s32.totalorder %v3359_v35, 126 }
 0x113   : > { %v2936_v58 = vunpack.i.h.bf16 %v2934_v53  ;;  %v2935_v18 = vunpack.i.l.bf16 %v2934_v53  ;;  %v2931_v19 = vunpack.i.h.bf16 %v2929_v56  ;;  %v2930_v59 = vunpack.i.l.bf16 %v2929_v56 }
 0x114   : > { %2567 = vmatprep.subr.msk.bf16.mxu1 %vm3647_vm11, %v2565_v37  ;;  %v825_v53 = vsel %vm4617_vm8, %v2866_v12, %v2865_v21 }
 0x115   : > { %v790_v24 = vsel %vm4569_vm1, %v2935_v18, %v2936_v58  ;;  %v791_v25 = vsel %vm4569_vm1, %v2936_v58, %v2935_v18  ;;  %v780_v4 = vsel %vm4609_vm2, %v2930_v59, %v2931_v19  ;;  %v781_v11 = vsel %vm4610_vm10, %v2931_v19, %v2930_v59  ;;  %2570 = vmatpush1.bf16.msk.msra.mxu1 %vm3656_vm9, %v2568_v40 }
 0x116   : > { %v2571_v26 = vpack.c.bf16 %v791_v25, %v781_v11  ;;  %v2574_v31 = vpack.c.bf16 %v790_v24, %v780_v4  ;;  %v1271_v32 = vpop.permute.xlu1 %1270  ;;  %v3685_v34 = vpop.permute.xlu0 %2938  ;;  %vm4614_vm10 = vcmp.lt.s32.totalorder %v3538_v44, 14  ;;  %v2871_v18 = vunpack.i.h.bf16 %v3524_v41 }
 0x117   : > { %vm3691_vm2 = vmpackc.low %vm4567_vm14, %vm4614_vm10  ;;  %v3696_v40 = vsel %vm681_vm0, %v2921_v29, %v1271_v32  ;;  %v2870_v19 = vunpack.i.l.bf16 %v3524_v41  ;;  %v2583_v59 = vpack.c.bf16 %v825_v53, %v3271_v2  ;;  %vm4619_vm10 = vcmp.lt.s32.totalorder %v3359_v35, 4 }
 0x118   : > { %2573 = vmatprep.subr.msk.bf16.mxu1 %vm3679_vm3, %v2571_v26  ;;  %v3167_v20 = vpack.i.bf16 %v3696_v40, %v3661_v62  ;;  %vm4618_vm0 = vmmov %vm4617_vm8 }
 0x119   : > { %2576 = vmatpush1.bf16.msk.msra.mxu1 %vm3691_vm2, %v2574_v31  ;;  %v824_v29 = vsel %vm4618_vm0, %v2865_v21, %v2866_v12  ;;  %v834_v48 = vsel %vm4569_vm1, %v2870_v19, %v2871_v18  ;;  %v835_v50 = vsel %vm4569_vm1, %v2871_v18, %v2870_v19  ;;  %vm4620_vm8 = vmmov %vm4619_vm10  ;;  %vm4621_vm0 = vcmp.lt.s32.totalorder %v3359_v35, 2 }
 0x11a   : > { %v3706_v56 = vpop.permute.xlu1 %2943  ;;  %v3708_v58 = vpop.permute.xlu0 %2948  ;;  %3168 = vrot.lane.b32.xlu1 %v3167_v20, %s3217_s24  ;;  %3163 = vrot.lane.b32.xlu0 %v3167_v20, %s3220_s27  ;;  %v2586_v24 = vpack.c.bf16 %v824_v29, %v3268_v1  ;;  %vm4622_vm14 = vmmov %vm4621_vm0 }
 0x11b   : > { %2579 = vmatprep.subr.msk.bf16.mxu1 %vm3560_vm12, %v2577_v51 }
 0x11d   : > { %2582 = vmatpush1.bf16.msk.msra.mxu1 %vm3574_vm13, %v2580_v52 }
 0x11e   : > { %v2954_v25 = vpop.permute.xlu1 %2953  ;;  %v2959_v4 = vpop.permute.xlu0 %2958  ;;  %3178 = vrot.lane.b32.xlu1 %v3167_v20, %s3221_s28  ;;  %3173 = vrot.lane.b32.xlu0 %v3167_v20, %s3219_s26 }
 0x11f   : > { %v2956_v47 = vunpack.i.h.bf16 %v2954_v25  ;;  %v2955_v49 = vunpack.i.l.bf16 %v2954_v25  ;;  %v2961_v51 = vunpack.i.h.bf16 %v2959_v4  ;;  %v2960_v11 = vunpack.i.l.bf16 %v2959_v4  ;;  %2585 = vmatprep.subr.msk.bf16.mxu1 %vm3592_vm5, %v2583_v59 }
 0x120   : > { %v3225_v59 = vmov 0  }
 0x121   : > { %v860_v52 = vsel %vm4619_vm10, %v2955_v49, %v2956_v47  ;;  %v861_v41 = vsel %vm4620_vm8, %v2956_v47, %v2955_v49  ;;  %v870_v12 = vsel %vm4621_vm0, %v2960_v11, %v2961_v51  ;;  %2588 = vmatpush1.bf16.msk.msra.mxu1 %vm3601_vm7, %v2586_v24  ;;  %v871_v31 = vsel %vm4622_vm14, %v2961_v51, %v2960_v11 }
 0x122   : > { %v2589_v21 = vpack.c.bf16 %v860_v52, %v835_v50  ;;  %v2592_v26 = vpack.c.bf16 %v861_v41, %v834_v48  ;;  %v2964_v32 = vpop.permute.xlu1 %2963  ;;  %v2969_v20 = vpop.permute.xlu0 %2968  ;;  %3188 = vrot.lane.b32.xlu1 %v3472_v22, %s3217_s24  ;;  %3183 = vrot.lane.b32.xlu0 %v3472_v22, %s3220_s27  ;;  %v2595_v24 = vpack.c.bf16 %v3375_v46, %v870_v12  ;;  %vm4623_vm14 = vcmp.lt.s32.totalorder %v3359_v35, 126  ;;  %v574_v52 = vld [vmem:[%s4553_s2] sm:$0xff] }
 0x123   : > { %v2966_v53 = vunpack.i.h.bf16 %v2964_v32  ;;  %v2965_v29 = vunpack.i.l.bf16 %v2964_v32  ;;  %v2971_v18 = vunpack.i.h.bf16 %v2969_v20  ;;  %v2970_v19 = vunpack.i.l.bf16 %v2969_v20  ;;  %3197 = vset.pattern.permute.xlu1 %v3225_v59  ;;  %3198 = vset.pattern.permute.xlu0 %v3225_v59  ;;  %vm4624_vm10 = vmmov %vm4623_vm14 }
 0x124   : > { %2591 = vmatprep.subr.msk.bf16.mxu1 %vm3624_vm15, %v2589_v21  ;;  %v2598_v25 = vpack.c.bf16 %v3372_v45, %v871_v31  ;;  %vm4625_vm15 = vmmov %vm4620_vm8  ;;  %vm4576_vm8 = vcmp.ge.s32.totalorder %v3535_v3, 1 }
 0x125   : > { %v883_v4 = vsel %vm4623_vm14, %v2966_v53, %v2965_v29  ;;  %v893_v47 = vsel %vm4569_vm1, %v2971_v18, %v2970_v19  ;;  %2594 = vmatpush1.bf16.msk.msra.mxu1 %vm3632_vm4, %v2592_v26  ;;  %v882_v49 = vsel %vm4624_vm10, %v2965_v29, %v2966_v53  ;;  %v892_v46 = vsel %vm4569_vm1, %v2970_v19, %v2971_v18  ;;  %v2323_v29 = vld [vmem:[%s4553_s2 + $0x10] sm:$0xff] }
 0x126   : > { %v2601_v63 = vpack.c.bf16 %v893_v47, %v883_v4  ;;  %v2974_v51 = vpop.permute.xlu1 %2973  ;;  %v2979_v11 = vpop.permute.xlu0 %2978  ;;  %2597 = vmatprep.subr.msk.bf16.mxu1 %vm3647_vm11, %v2595_v24  ;;  %1352 = vrot.lane.b32.xlu1 %v3271_v2, %s3221_s28  ;;  %vm4579_vm4 = vcmp.lt.s32.totalorder %v3359_v35, 8  ;;  %v2604_v41 = vpack.c.bf16 %v892_v46, %v882_v49  ;;  %vm4626_vm11 = vmmov %vm4621_vm0  ;;  %vm4570_vm10 = vcmp.ge.s32.totalorder %v3538_v44, 1 }
 0x127   : > { %v2976_v45 = vunpack.i.h.bf16 %v2974_v51  ;;  %v2975_v48 = vunpack.i.l.bf16 %v2974_v51  ;;  %v2981_v50 = vunpack.i.h.bf16 %v2979_v11  ;;  %v2980_v17 = vunpack.i.l.bf16 %v2979_v11  ;;  %3193 = vrot.lane.b32.xlu0 %v3472_v22, %s3219_s26  ;;  %vm4627_vm0 = vmmov %vm4625_vm15 }
 0x128   : > { %vm4628_vm14 = vmmov %vm4626_vm11  ;;  %v4631_v19 = vmov 0 }
 0x129   : > { %v918_v36 = vsel %vm4625_vm15, %v2975_v48, %v2976_v45  ;;  %v928_v2 = vsel %vm4626_vm11, %v2980_v17, %v2981_v50  ;;  %2600 = vmatpush1.bf16.msk.msra.mxu1 %vm3656_vm9, %v2598_v25  ;;  %v919_v22 = vsel %vm4627_vm0, %v2976_v45, %v2975_v48  ;;  %v929_v12 = vsel %vm4628_vm14, %v2981_v50, %v2980_v17  ;;  %vm4629_vm0 = vmmov %vm4628_vm14 }
 0x12a   : > { %v2607_v21 = vpack.c.bf16 %v928_v2, %v918_v36  ;;  %v2989_v26 = vpop.permute.xlu1 %2988  ;;  %v2984_v31 = vpop.permute.xlu0 %2983  ;;  %2603 = vmatprep.subr.msk.bf16.mxu1 %vm3679_vm3, %v2601_v63  ;;  %577 = vperm.xlu1 %3197, %v574_v52   ;;  %vm4572_vm9 = vcmp.lt.s32.totalorder %v3359_v35, 120  ;;  %vm4577_vm15 = vcmp.lt.s32.totalorder %v3359_v35, 1  ;;  %vm4575_vm3 = vcmp.lt.s32.totalorder %v3359_v35, 127  ;;  %vm4633_vm1 = vmmov %vm4629_vm0  ;;  %v2327_v52 = vld [vmem:[%s4553_s2 + $0x18] sm:$0xff] }
 0x12b   : > { %v2991_v32 = vunpack.i.h.bf16 %v2989_v26  ;;  %v2990_v57 = vunpack.i.l.bf16 %v2989_v26  ;;  %v2986_v20 = vunpack.i.h.bf16 %v2984_v31  ;;  %v2985_v53 = vunpack.i.l.bf16 %v2984_v31  ;;  %1354 = vrot.lane.b32.xlu0 %v3284_v5, %s3221_s28 }
 0x12c   : > { %vm4573_vm11 = vcmp.lt.s32.totalorder %v3535_v3, 15  ;;  %vm4630_vm14 = vcmp.ge.s32.totalorder %v3535_v3, 2  ;;  %v2610_v24 = vpack.c.bf16 %v929_v12, %v919_v22  ;;  %v2880_v48 = vunpack.i.l.bf16 %v3531_v42 }
 0x12d   : > { %2606 = vmatpush1.bf16.msk.msra.mxu1 %vm3691_vm2, %v2604_v41  ;;  %v244_v5 = vsel %vm4629_vm0, %v2985_v53, %v2986_v20  ;;  %v259_v18 = vsel %vm4577_vm15, %v2990_v57, %v2991_v32  ;;  %vm3810_vm6 = vmpackc.low %vm4576_vm8, %vm4630_vm14  ;;  %v245_v59 = vsel %vm4633_vm1, %v2986_v20, %v2985_v53  ;;  %v260_v37 = vsel %vm4577_vm15, %v2991_v32, %v2990_v57  ;;  %v2331_v41 = vld [vmem:[%s4553_s2 + $0x20] sm:$0xff] }
 0x12e   : > { %v4632_v19 = vsel %vm3810_vm6, 4294967295, %v4631_v19  ;;  %v2999_v25 = vpop.permute.xlu1 %2998  ;;  %v2994_v4 = vpop.permute.xlu0 %2993  ;;  %v2475_v47 = vpack.c.bf16 %v259_v18, %v244_v5  ;;  %2609 = vmatprep.subr.msk.bf16.mxu1 %vm3560_vm12, %v2607_v21  ;;  %v2478_v49 = vpack.c.bf16 %v260_v37, %v245_v59  ;;  %vm4634_vm2 = vcmp.ge.s32.totalorder %v3538_v44, 2  ;;  %1419 = vperm.xlu1 %3197, %v2323_v29  }
 0x12f   : > { %vm3824_vm0 = vmpackc.low %vm4570_vm10, %vm4634_vm2  ;;  %vm4571_vm1 = vcmp.lt.s32.totalorder %v3538_v44, 15  ;;  %v3001_v63 = vunpack.i.h.bf16 %v2999_v25  ;;  %v3000_v51 = vunpack.i.l.bf16 %v2999_v25  ;;  %v2996_v11 = vunpack.i.h.bf16 %v2994_v4  ;;  %1013 = vperm.xlu0 %3198, %v2319_v6  }
 0x130   : > { %v2995_v45 = vunpack.i.l.bf16 %v2994_v4  ;;  %v2886_v50 = vunpack.i.h.bf16 %v3533_v43  ;;  %v2885_v17 = vunpack.i.l.bf16 %v3533_v43  ;;  %2477 = vmatprep.subr.msk.bf16.mxu0 %vm3810_vm6, %v2475_v47  ;;  %vm4637_vm12 = vcmp.lt.s32.totalorder %v3359_v35, 126 }
 0x131   : > { %v276_v36 = vsel %vm4575_vm3, %v3000_v51, %v3001_v63  ;;  %v277_v42 = vsel %vm4575_vm3, %v3001_v63, %v3000_v51  ;;  %vm4638_vm14 = vmmov %vm4637_vm12  ;;  %2480 = vmatpush1.bf16.msk.msra.mxu0 %vm3824_vm0, %v2478_v49  ;;  %vm4639_vm2 = vmmov 1   ;;  %2612 = vmatpush1.bf16.msk.msra.mxu1 %vm3574_vm13, %v2610_v24  ;;  %vm4574_vm13 = vcmp.ge.s32.totalorder %v3535_v3, 8  ;;  %v2317_v49 = vld [vmem:[%s4552_s1 + $0x10] sm:$0xff] }
 0x132   : > { %v940_v43 = vsel %vm4637_vm12, %v2995_v45, %v2996_v11  ;;  %v941_v2 = vsel %vm4638_vm14, %v2996_v11, %v2995_v45  ;;  %vm3854_vm10 = vmpackc.low %vm4573_vm11, %vm4639_vm2  ;;  %v2481_v12 = vpack.c.bf16 %v277_v42, %v3420_v61  ;;  %v2484_v21 = vpack.c.bf16 %v276_v36, %v3417_v60  ;;  %v949_v32 = vpop.permute.xlu1 %948  ;;  %v947_v57 = vpop.permute.xlu0 %946  ;;  %1797 = vperm.xlu1 %3197, %v2327_v52  }
 0x133   : > { %v2613_v26 = vpack.c.bf16 %v941_v2, %v3409_v55  ;;  %v2616_v31 = vpack.c.bf16 %v940_v43, %v3406_v54  ;;  %vm3867_vm12 = vmpackc.low %vm4571_vm1, %vm4639_vm2  ;;  %2175 = vperm.xlu0 %3198, %v2331_v41   ;;  %v1531_v60 = vsel %vm4579_vm4, %v2880_v48, %v2881_v8  ;;  %v1532_v54 = vsel %vm4579_vm4, %v2881_v8, %v2880_v48 }
 0x134   : > { %2483 = vmatprep.subr.msk.bf16.mxu0 %vm3854_vm10, %v2481_v12  ;;  %v3882_v55 = vsel %vm4572_vm9, %v2885_v17, %v2886_v50  ;;  %v1544_v61 = vsel %vm4572_vm9, %v2886_v50, %v2885_v17  ;;  %vm4578_vm14 = vcmp.ge.s32.totalorder %v3538_v44, 8  ;;  %vm4581_vm1 = vcmp.lt.s32.totalorder %v3535_v3, 8  ;;  %vm3901_vm11 = vmpackc.low %vm4574_vm13, %vm4639_vm2 }
 0x135   : > { %2615 = vmatprep.subr.msk.bf16.mxu1 %vm3592_vm5, %v2613_v26  ;;  %2486 = vmatpush1.bf16.msk.msra.mxu0 %vm3867_vm12, %v2484_v21  ;;  %vm4644_vm5 = vcmp.lt.s32.totalorder %v3359_v35, 124  ;;  %vm4645_vm9 = vcmp.lt.s32.totalorder %v3535_v3, 12  ;;  %v2691_v25 = vpack.c.bf16 %v1531_v60, %v3226_v13  ;;  %v2694_v4 = vpack.c.bf16 %v1532_v54, %v3226_v13 }
 0x136   : > { %v951_v53 = vsel %vm4644_vm5, %v949_v32, %v947_v57  ;;  %2618 = vmatpush1.bf16.msk.msra.mxu1 %vm3601_vm7, %v2616_v31  ;;  %v3004_v29 = vpop.permute.xlu1 %3003  ;;  %v3014_v6 = vpop.permute.xlu0 %3013  ;;  %vm4648_vm7 = vmmov %vm4644_vm5  ;;  %v4649_v63 = vmov 0  ;;  %vm4580_vm5 = vcmp.lt.s32.totalorder %v3538_v44, 8  ;;  %vm4651_vm13 = vcmp.lt.s32.totalorder %v3359_v35, 126 }
 0x137   : > { %v3006_v5 = vunpack.i.h.bf16 %v3004_v29  ;;  %v3005_v18 = vunpack.i.l.bf16 %v3004_v29  ;;  %v3016_v59 = vunpack.i.h.bf16 %v3014_v6  ;;  %v3015_v37 = vunpack.i.l.bf16 %v3014_v6  ;;  %2413 = vmatprep.subr.msk.mxu1 %vm4645_vm9, %v951_v53  ;;  %vm3915_vm9 = vmpackc.low %vm4578_vm14, %vm4639_vm2 }
 0x138   : > { %v950_v47 = vsel %vm4648_vm7, %v947_v57, %v949_v32  ;;  %v4650_v63 = vsel %vm3915_vm9, 4294967295, %v4649_v63  ;;  %vm4652_vm3 = vmmov %vm4651_vm13  ;;  %vm4653_vm7 = vcmp.lt.s32.totalorder %v3359_v35, 2  ;;  %vm4655_vm15 = vcmp.lt.s32.totalorder %v3535_v3, 14 }
 0x139   : > { %v291_v51 = vsel %vm4651_vm13, %v3005_v18, %v3006_v5  ;;  %v292_v11 = vsel %vm4652_vm3, %v3006_v5, %v3005_v18  ;;  %v322_v45 = vsel %vm4653_vm7, %v3015_v37, %v3016_v59  ;;  %vm4654_vm8 = vmmov %vm4653_vm7  ;;  %vm4656_vm14 = vcmp.ge.s32.totalorder %v3535_v3, 2 }
 0x13a   : > { %v323_v8 = vsel %vm4654_vm8, %v3016_v59, %v3015_v37  ;;  %vm3932_vm4 = vmpackc.low %vm4656_vm14, %vm4655_vm15  ;;  %v2697_v50 = vpack.c.bf16 %v1544_v61, %v3265_v0  ;;  %v2700_v17 = vpack.c.bf16 %v3882_v55, %v3313_v7  ;;  %v2487_v52 = vpack.c.bf16 %v322_v45, %v292_v11  ;;  %v3941_v36 = vpop.permute.xlu1 %3008  ;;  %v3019_v42 = vpop.permute.xlu0 %3018 }
 0x13b   : > { %v2490_v41 = vpack.c.bf16 %v323_v8, %v291_v51  ;;  %vm4659_vm3 = vcmp.lt.s32.totalorder %v3538_v44, 12  ;;  %vm3946_vm8 = vmpackc.low %vm4581_vm1, %vm4639_vm2  ;;  %v4660_v43 = vmov 0  ;;  %vm4662_vm15 = vcmp.lt.s32.totalorder %v3359_v35, 8 }
 0x13c   : > { %2414 = vmatpush1.msk.msra.mxu1 %vm4659_vm3, %v950_v47  ;;  %v4661_v43 = vsel %vm3946_vm8, 4294967295, %v4660_v43  ;;  %v3956_v0 = vsel %vm4662_vm15, %v2900_v33, %v2901_v23  ;;  %v3021_v7 = vunpack.i.h.bf16 %v3019_v42  ;;  %v3020_v2 = vunpack.i.l.bf16 %v3019_v42  ;;  %2489 = vmatprep.subr.msk.bf16.mxu0 %vm3932_vm4, %v2487_v52  ;;  %vm3979_vm3 = vmpackc.low %vm4580_vm5, %vm4639_vm2 }
 0x13d   : > { %2693 = vmatprep.subr.msk.bf16.mxu1 %vm3901_vm11, %v2691_v25  ;;  %1084 = vmatmul.mubr.f32.vlgmr.msra.gmra.mrb[0].mxu1 %v2317_v49  ;;  %vm4663_vm13 = vcmp.lt.s32.totalorder %v3538_v44, 14  ;;  %vm4664_vm14 = vcmp.ge.s32.totalorder %v3538_v44, 2  ;;  %v4665_v12 = vmov 0  ;;  %v2941_v21 = vunpack.i.h.bf16 %v3685_v34 }
 0x13e   : > { %vm3964_vm7 = vmpackc.low %vm4664_vm14, %vm4663_vm13  ;;  %v2940_v26 = vunpack.i.l.bf16 %v3685_v34  ;;  %v2946_v31 = vunpack.i.h.bf16 %v3706_v56  ;;  %v2945_v32 = vunpack.i.l.bf16 %v3706_v56  ;;  %2696 = vmatpush1.bf16.msk.msra.mxu1 %vm3915_vm9, %v2694_v4  ;;  %v4667_v57 = vmov 0  ;;  %v2326_v34 = vld [vmem:[%s4552_s1 + $0x38] sm:$0xff]  ;;  %v3024_v5 = vpop.permute.xlu1 %3023  ;;  %v3029_v18 = vpop.permute.xlu0 %3028 }
 0x13f   : > { %v4666_v12 = vsel %vm3964_vm7, 4294967295, %v4665_v12  ;;  %v4668_v57 = vsel %vm3979_vm3, 4294967295, %v4667_v57  ;;  %v2951_v60 = vunpack.i.h.bf16 %v3708_v58  ;;  %v2950_v56 = vunpack.i.l.bf16 %v3708_v58  ;;  %2699 = vmatprep.subr.msk.bf16.mxu1 %vm3946_vm8, %v2697_v50  ;;  %2492 = vmatpush1.bf16.msk.msra.mxu0 %vm3964_vm7, %v2490_v41 }
 0x140   : > { %vm4669_vm15 = vcmp.lt.s32.totalorder %v3359_v35, 1  ;;  %vm4671_vm14 = vcmp.ge.s32.totalorder %v3535_v3, 1  ;;  %v4672_v61 = vmov 0  ;;  %v3011_v53 = vunpack.i.h.bf16 %v3941_v36 }
 0x141   : > { %v332_v54 = vsel %vm4669_vm15, %v3020_v2, %v3021_v7  ;;  %vm4670_vm13 = vmmov %vm4669_vm15  ;;  %v3010_v58 = vunpack.i.l.bf16 %v3941_v36  ;;  %v3026_v59 = vunpack.i.h.bf16 %v3024_v5  ;;  %v3025_v37 = vunpack.i.l.bf16 %v3024_v5 }
 0x142   : > { %v333_v55 = vsel %vm4670_vm13, %v3021_v7, %v3020_v2  ;;  %vm3997_vm5 = vmpackc.low %vm4639_vm2, %vm4671_vm14  ;;  %v2493_v29 = vpack.c.bf16 %v3437_v10, %v332_v54  ;;  %v3031_v25 = vunpack.i.h.bf16 %v3029_v18  ;;  %v3030_v4 = vunpack.i.l.bf16 %v3029_v18  ;;  %2702 = vmatpush1.bf16.msk.msra.mxu1 %vm3979_vm3, %v2700_v17  ;;  %v3039_v17 = vpop.permute.xlu1 %3038  ;;  %v3034_v52 = vpop.permute.xlu0 %3033 }
 0x143   : > { %v4673_v61 = vsel %vm3997_vm5, 4294967295, %v4672_v61  ;;  %v2496_v6 = vpack.c.bf16 %v3434_v9, %v333_v55  ;;  %vm4674_vm15 = vcmp.ge.s32.totalorder %v3538_v44, 1  ;;  %v4675_v47 = vmov 0 }
 0x144   : > { %vm4010_vm13 = vmpackc.low %vm4639_vm2, %vm4674_vm15  ;;  %vm4677_vm14 = vcmask 588800   ;;  %vm4678_vm1 = vcmp.lt.s32.totalorder %v3359_v35, 8  ;;  %v2705_v10 = vpack.c.bf16 %v3268_v1, %v3956_v0  ;;  %2495 = vmatprep.subr.msk.bf16.mxu0 %vm3997_vm5, %v2493_v29  ;;  %vm4679_vm15 = vcmp.lt.s32.totalorder %v3359_v35, 127 }
 0x145   : > { %v4676_v47 = vsel %vm4010_vm13, 4294967295, %v4675_v47  ;;  %2328 = vmatprep.mubr.msk.f32.mxu1 %vm4677_vm14, %v2326_v34  ;;  %v1581_v9 = vsel %vm4678_vm1, %v2901_v23, %v2900_v33  ;;  %v344_v49 = vsel %vm4679_vm15, %v3025_v37, %v3026_v59  ;;  %vm4680_vm14 = vmmov %vm4679_vm15  ;;  %vm4681_vm7 = vcmp.lt.s32.totalorder %v3359_v35, 126  ;;  %2498 = vmatpush1.bf16.msk.msra.mxu0 %vm4010_vm13, %v2496_v6  ;;  %v4070_v34 = vld [vmem:[%s3262_s17 + $0x20] sm:$0xff] }
 0x146   : > { %v345_v51 = vsel %vm4680_vm14, %v3026_v59, %v3025_v37  ;;  %v354_v14 = vsel %vm4681_vm7, %v3030_v4, %v3031_v25  ;;  %vm4682_vm1 = vmmov %vm4681_vm7  ;;  %v3227_v33 = vmov 0.0|0.0   ;;  %vm4683_vm3 = vcmp.lt.s32.totalorder %v3535_v3, 15 }
 0x147   : > { %v355_v23 = vsel %vm4682_vm1, %v3031_v25, %v3030_v4  ;;  %2703 = vmatprep.subr.bf16.mxu1 %v3227_v33  ;;  %vm4684_vm5 = vcmp.lt.s32.totalorder %v3535_v3, 14  ;;  %vm4687_vm15 = vcmp.lt.s32.totalorder %v3359_v35, 2  ;;  %vm4688_vm7 = vcmp.lt.s32.totalorder %v3359_v35, 1 }
 0x148   : > { %vm4040_vm8 = vmpackc.low %vm4684_vm5, %vm4683_vm3  ;;  %v366_v11 = vsel %vm4687_vm15, %v2940_v26, %v2941_v21  ;;  %v376_v45 = vsel %vm4688_vm7, %v2945_v32, %v2946_v31  ;;  %v2499_v8 = vpack.c.bf16 %v355_v23, %v345_v51  ;;  %v2502_v50 = vpack.c.bf16 %v354_v14, %v344_v49  ;;  %2704 = vmatpush1.bf16.msra.mxu1 %v3227_v33 }
 0x149   : > { %vm4689_vm14 = vcmp.ge.s32.totalorder %v3535_v3, 8  ;;  %vm4692_vm3 = vcmp.lt.s32.totalorder %v3359_v35, 120  ;;  %vm4693_vm1 = vcmp.lt.s32.totalorder %v3359_v35, 127  ;;  %v3036_v0 = vunpack.i.h.bf16 %v3034_v52 }
 0x14a   : > { %vm4053_vm5 = vmpackc.low %vm4639_vm2, %vm4689_vm14  ;;  %v1593_v36 = vsel %vm4692_vm3, %v2951_v60, %v2950_v56  ;;  %v389_v42 = vsel %vm4693_vm1, %v3011_v53, %v3010_v58  ;;  %v3035_v7 = vunpack.i.l.bf16 %v3034_v52  ;;  %vm4694_vm15 = vcmp.lt.s32.totalorder %v3538_v44, 15  ;;  %2501 = vmatprep.subr.msk.bf16.mxu0 %vm4040_vm8, %v2499_v8 }
 0x14b   : > { %vm4695_vm7 = vcmp.lt.s32.totalorder %v3538_v44, 14  ;;  %v4696_v2 = vmov 0  ;;  %v2708_v54 = vpack.c.bf16 %v4070_v34, %v1581_v9  ;;  %v3041_v55 = vunpack.i.h.bf16 %v3039_v17  ;;  %2707 = vmatprep.subr.msk.bf16.mxu1 %vm4053_vm5, %v2705_v10 }
 0x14c   : > { %vm4065_vm13 = vmpackc.low %vm4695_vm7, %vm4694_vm15  ;;  %v3040_v29 = vunpack.i.l.bf16 %v3039_v17  ;;  %vm4698_vm14 = vcmp.lt.s32.totalorder %v3359_v35, 2  ;;  %vm4699_vm3 = vcmp.lt.s32.totalorder %v3359_v35, 1  ;;  %v2505_v18 = vpack.c.bf16 %v376_v45, %v366_v11 }
 0x14d   : > { %v4697_v2 = vsel %vm4065_vm13, 4294967295, %v4696_v2  ;;  %v367_v6 = vsel %vm4698_vm14, %v2941_v21, %v2940_v26  ;;  %v377_v5 = vsel %vm4699_vm3, %v2946_v31, %v2945_v32  ;;  %vm4700_vm1 = vcmp.lt.s32.totalorder %v3359_v35, 120  ;;  %v4095_v26 = vld [vmem:[%s3262_s17 + $0x30] sm:$0xff]  ;;  %2504 = vmatpush1.bf16.msk.msra.mxu0 %vm4065_vm13, %v2502_v50  ;;  %v4131_v50 = vld [vmem:[%s3262_s17 + $0x28] sm:$0xff] }
 0x14e   : > { %v1592_v59 = vsel %vm4700_vm1, %v2950_v56, %v2951_v60  ;;  %vm4701_vm15 = vcmp.ge.s32.totalorder %v3538_v44, 8  ;;  %v2711_v25 = vpack.c.bf16 %v3226_v13, %v1593_v36  ;;  %vm4704_vm14 = vcmp.lt.s32.totalorder %v3359_v35, 127  ;;  %v3044_v60 = vpop.permute.xlu1 %3043  ;;  %v3054_v56 = vpop.permute.xlu0 %3053  ;;  %2507 = vmatprep.subr.msk.bf16.mxu0 %vm3810_vm6, %v2505_v18 }
 0x14f   : > { %vm4087_vm7 = vmpackc.low %vm4639_vm2, %vm4701_vm15  ;;  %v388_v21 = vsel %vm4704_vm14, %v3010_v58, %v3011_v53  ;;  %v2511_v31 = vpack.c.bf16 %v389_v42, %v4095_v26  ;;  %vm4705_vm3 = vcmp.lt.s32.totalorder %v3359_v35, 8  ;;  %vm4706_vm1 = vcmp.lt.s32.totalorder %v3535_v3, 8 }
 0x150   : > { %v1624_v32 = vsel %vm4705_vm3, %v3035_v7, %v3036_v0  ;;  %vm4105_vm15 = vmpackc.low %vm4639_vm2, %vm4706_vm1  ;;  %v3046_v53 = vunpack.i.h.bf16 %v3044_v60  ;;  %v3045_v58 = vunpack.i.l.bf16 %v3044_v60  ;;  %v3056_v9 = vunpack.i.h.bf16 %v3054_v56  ;;  %2710 = vmatpush1.bf16.msk.msra.mxu1 %vm4087_vm7, %v2708_v54 }
 0x151   : > { %v3055_v10 = vunpack.i.l.bf16 %v3054_v56  ;;  %v2508_v49 = vpack.c.bf16 %v377_v5, %v367_v6  ;;  %vm4709_vm14 = vcmp.lt.s32.totalorder %v3359_v35, 126  ;;  %v1625_v14 = vsel %vm4705_vm3, %v3036_v0, %v3035_v7  ;;  %2713 = vmatprep.subr.msk.bf16.mxu1 %vm4105_vm15, %v2711_v25 }
 0x152   : > { %v399_v51 = vsel %vm4709_vm14, %v3041_v55, %v3040_v29  ;;  %v2717_v23 = vpack.c.bf16 %v1624_v32, %v3226_v13  ;;  %vm4710_vm1 = vcmp.lt.s32.totalorder %v3359_v35, 2  ;;  %vm4711_vm6 = vcmp.lt.s32.totalorder %v3538_v44, 8  ;;  %v3049_v42 = vpop.permute.xlu1 %3048  ;;  %v3059_v0 = vpop.permute.xlu0 %3058 }
 0x153   : > { %v425_v11 = vsel %vm4710_vm1, %v3055_v10, %v3056_v9  ;;  %vm4125_vm13 = vmpackc.low %vm4639_vm2, %vm4711_vm6  ;;  %v2714_v8 = vpack.c.bf16 %v3226_v13, %v1592_v59  ;;  %v2514_v17 = vpack.c.bf16 %v388_v21, %v4131_v50  ;;  %v398_v52 = vsel %vm4709_vm14, %v3040_v29, %v3041_v55  ;;  %2510 = vmatpush1.bf16.msk.msra.mxu0 %vm3824_vm0, %v2508_v49 }
 0x154   : > { %vm4714_vm3 = vcmp.lt.s32.totalorder %v3359_v35, 120  ;;  %vm4715_vm6 = vmmov %vm4710_vm1  ;;  %v2517_v54 = vpack.c.bf16 %v425_v11, %v399_v51  ;;  %v3061_v6 = vunpack.i.h.bf16 %v3059_v0  ;;  %v3060_v5 = vunpack.i.l.bf16 %v3059_v0  ;;  %2513 = vmatprep.subr.msk.bf16.mxu0 %vm3854_vm10, %v2511_v31 }
 0x155   : > { %v1637_v36 = vsel %vm4714_vm3, %v3046_v53, %v3045_v58  ;;  %v426_v7 = vsel %vm4715_vm6, %v3056_v9, %v3055_v10  ;;  %v2720_v18 = vpack.c.bf16 %v1625_v14, %v3226_v13  ;;  %2716 = vmatpush1.bf16.msk.msra.mxu1 %vm4125_vm13, %v2714_v8  ;;  %vm4716_vm1 = vmmov %vm4714_vm3  ;;  %v3051_v25 = vunpack.i.h.bf16 %v3049_v42 }
 0x156   : > { %v1636_v55 = vsel %vm4716_vm1, %v3045_v58, %v3046_v53  ;;  %v2723_v29 = vpack.c.bf16 %v1637_v36, %v4095_v26  ;;  %2719 = vmatprep.subr.msk.bf16.mxu1 %vm3901_vm11, %v2717_v23  ;;  %v2520_v59 = vpack.c.bf16 %v426_v7, %v398_v52  ;;  %v3050_v21 = vunpack.i.l.bf16 %v3049_v42  ;;  %v3064_v31 = vpop.permute.xlu1 %3063  ;;  %v3069_v60 = vpop.permute.xlu0 %3068 }
 0x157   : > { %vm4717_vm14 = vcmp.lt.s32.totalorder %v3359_v35, 1  ;;  %2516 = vmatpush1.bf16.msk.msra.mxu0 %vm3867_vm12, %v2514_v17  ;;  %v3066_v56 = vunpack.i.h.bf16 %v3064_v31  ;;  %v3065_v9 = vunpack.i.l.bf16 %v3064_v31  ;;  %v3071_v10 = vunpack.i.h.bf16 %v3069_v60 }
 0x158   : > { %v435_v32 = vsel %vm4717_vm14, %v3060_v5, %v3061_v6  ;;  %v3070_v53 = vunpack.i.l.bf16 %v3069_v60  ;;  %2519 = vmatprep.subr.msk.bf16.mxu0 %vm3932_vm4, %v2517_v54  ;;  %v2726_v58 = vpack.c.bf16 %v1636_v55, %v4131_v50  ;;  %vm4718_vm3 = vmmov %vm4717_vm14  ;;  %vm4719_vm6 = vcmp.lt.s32.totalorder %v3359_v35, 127 }
 0x159   : > { %2722 = vmatpush1.bf16.msk.msra.mxu1 %vm3915_vm9, %v2720_v18  ;;  %v436_v49 = vsel %vm4718_vm3, %v3061_v6, %v3060_v5  ;;  %v2523_v51 = vpack.c.bf16 %v3457_v16, %v435_v32  ;;  %v448_v14 = vsel %vm4719_vm6, %v3066_v56, %v3065_v9  ;;  %vm4720_vm1 = vcmp.lt.s32.totalorder %v3359_v35, 126  ;;  %vm4723_vm2 = vmmov %vm4719_vm6  ;;  %v4186_v5 = vld [vmem:[%s3262_s17 + $0x38] sm:$0xff] }
 0x15a   : > { %v458_v23 = vsel %vm4720_vm1, %v3071_v10, %v3070_v53  ;;  %vm4721_vm14 = vnez %v4661_v43  ;;  %vm4722_vm4 = vcmp.lt.s32.totalorder %v3359_v35, 8  ;;  %v447_v11 = vsel %vm4723_vm2, %v3065_v9, %v3066_v56  ;;  %vm4724_vm3 = vmmov %vm4720_vm1  ;;  %v3079_v17 = vpop.permute.xlu1 %3078  ;;  %v3074_v52 = vpop.permute.xlu0 %3073  ;;  %v1889_v43 = vld [vmem:[%s3262_s17 + $0x10] sm:$0xff] }
 0x15b   : > { %2725 = vmatprep.subr.msk.bf16.mxu1 %vm4721_vm14, %v2723_v29  ;;  %v1668_v48 = vsel %vm4722_vm4, %v3050_v21, %v3051_v25  ;;  %v457_v8 = vsel %vm4724_vm3, %v3070_v53, %v3071_v10  ;;  %v2529_v16 = vpack.c.bf16 %v458_v23, %v448_v14  ;;  %vm4725_vm9 = vnez %v4666_v12  ;;  %vm4728_vm1 = vmmov %vm4722_vm4 }
 0x15c   : > { %2522 = vmatpush1.bf16.msk.msra.mxu0 %vm4725_vm9, %v2520_v59  ;;  %v3081_v36 = vunpack.i.h.bf16 %v3079_v17  ;;  %v3080_v42 = vunpack.i.l.bf16 %v3079_v17  ;;  %v3076_v0 = vunpack.i.h.bf16 %v3074_v52  ;;  %v3075_v7 = vunpack.i.l.bf16 %v3074_v52 }
 0x15d   : > { %vm4726_vm6 = vnez %v4673_v61  ;;  %v2526_v54 = vpack.c.bf16 %v3454_v15, %v436_v49  ;;  %vm4727_vm2 = vnez %v4668_v57  ;;  %v1669_v6 = vsel %vm4728_vm1, %v3051_v25, %v3050_v21  ;;  %v2330_v57 = vld [vmem:[%s4552_s1 + $0x48] sm:$0xff] }
 0x15e   : > { %2525 = vmatprep.subr.msk.bf16.mxu0 %vm4726_vm6, %v2523_v51  ;;  %2728 = vmatpush1.bf16.msk.msra.mxu1 %vm4727_vm2, %v2726_v58  ;;  %v2731_v12 = vpack.c.bf16 %v4186_v5, %v1668_v48  ;;  %vm4729_vm9 = vcmp.lt.s32.totalorder %v3359_v35, 1  ;;  %vm4730_vm4 = vcmp.lt.s32.totalorder %v3359_v35, 2  ;;  %v2532_v61 = vpack.c.bf16 %v457_v8, %v447_v11  ;;  %v3089_v25 = vpop.permute.xlu1 %3088  ;;  %v3084_v21 = vpop.permute.xlu0 %3083 }
 0x15f   : > { %v494_v18 = vsel %vm4729_vm9, %v3080_v42, %v3081_v36  ;;  %v484_v55 = vsel %vm4730_vm4, %v3075_v7, %v3076_v0  ;;  %2729 = vmatprep.subr.bf16.mxu1 %v3227_v33  ;;  %vm4731_vm3 = vmmov %vm4729_vm9  ;;  %vm4733_vm1 = vnez %v4676_v47  ;;  %v3091_v32 = vunpack.i.h.bf16 %v3089_v25 }
 0x160   : > { %v495_v15 = vsel %vm4731_vm3, %v3081_v36, %v3080_v42  ;;  %vm4732_vm6 = vmmov %vm4730_vm4  ;;  %v2535_v59 = vpack.c.bf16 %v494_v18, %v484_v55  ;;  %2528 = vmatpush1.bf16.msk.msra.mxu0 %vm4733_vm1, %v2526_v54  ;;  %v3090_v31 = vunpack.i.l.bf16 %v3089_v25  ;;  %v3086_v60 = vunpack.i.h.bf16 %v3084_v21 }
 0x161   : > { %v485_v29 = vsel %vm4732_vm6, %v3076_v0, %v3075_v7  ;;  %v3085_v56 = vunpack.i.l.bf16 %v3084_v21  ;;  %2531 = vmatprep.subr.msk.bf16.mxu0 %vm4040_vm8, %v2529_v16  ;;  %v2734_v9 = vpack.c.bf16 %v4095_v26, %v1669_v6  ;;  %vm4734_vm9 = vcmp.lt.s32.totalorder %v3359_v35, 120  ;;  %v522_v6 = vld [vmem:[%s4552_s1] sm:$0xff] }
 0x162   : > { %2730 = vmatpush1.bf16.msra.mxu1 %v3227_v33  ;;  %vm4735_vm4 = vmmov %vm4734_vm9  ;;  %v2538_v53 = vpack.c.bf16 %v495_v15, %v485_v29  ;;  %vm4736_vm3 = vcmp.lt.s32.totalorder %v3359_v35, 127  ;;  %vm4737_vm8 = vnez %v4697_v2  ;;  %v513_v49 = vpop.permute.xlu1 %512  ;;  %v3094_v51 = vpop.permute.xlu0 %3093  ;;  %vm4738_vm6 = vnez %v4632_v19 }
 0x163   : > { %v1680_v10 = vsel %vm4734_vm9, %v3085_v56, %v3086_v60  ;;  %v1681_v47 = vsel %vm4735_vm4, %v3086_v60, %v3085_v56  ;;  %2733 = vmatprep.subr.msk.bf16.mxu1 %vm4053_vm5, %v2731_v12  ;;  %v507_v58 = vsel %vm4736_vm3, %v3091_v32, %v3090_v31  ;;  %v3096_v14 = vunpack.i.h.bf16 %v3094_v51  ;;  %vm4739_vm5 = vmmov %vm4736_vm3 }
 0x164   : > { %v2737_v1 = vpack.c.bf16 %v3226_v13, %v1681_v47  ;;  %2534 = vmatpush1.bf16.msk.msra.mxu0 %vm4737_vm8, %v2532_v61  ;;  %v3095_v23 = vunpack.i.l.bf16 %v3094_v51  ;;  %v2740_v48 = vpack.c.bf16 %v3226_v13, %v1680_v10  ;;  %v506_v41 = vsel %vm4739_vm5, %v3090_v31, %v3091_v32 }
 0x165   : > { %2537 = vmatprep.subr.msk.bf16.mxu0 %vm4738_vm6, %v2535_v59  ;;  %v2541_v11 = vpack.c.bf16 %v507_v58, %v3481_v28  ;;  %vm4740_vm1 = vcmp.lt.s32.totalorder %v3359_v35, 8  ;;  %v2544_v28 = vpack.c.bf16 %v506_v41, %v3478_v27  ;;  %vm4749_vm3 = vcmp.lt.s32.totalorder %v3359_v35, 4 }
 0x166   : > { %2736 = vmatpush1.bf16.msk.msra.mxu1 %vm4087_vm7, %v2734_v9  ;;  %v1712_v2 = vsel %vm4740_vm1, %v3095_v23, %v3096_v14  ;;  %vm4741_vm9 = vmmov %vm4740_vm1  ;;  %v3099_v37 = vpop.permute.xlu1 %3098  ;;  %v515_v16 = vpop.permute.xlu0 %514  ;;  %vm4751_vm6 = vcmp.ge.s32.totalorder %v3535_v3, 8  ;;  %vm4752_vm5 = vcmp.ge.s32.totalorder %v3535_v3, 4  ;;  %v2322_v9 = vld [vmem:[%s4552_s1 + $0x28] sm:$0xff] }
 0x167   : > { %v1713_v8 = vsel %vm4741_vm9, %v3096_v14, %v3095_v23  ;;  %2739 = vmatprep.subr.msk.bf16.mxu1 %vm4105_vm15, %v2737_v1  ;;  %v2743_v19 = vpack.c.bf16 %v1712_v2, %v3226_v13  ;;  %v3101_v17 = vunpack.i.h.bf16 %v3099_v37  ;;  %v3100_v52 = vunpack.i.l.bf16 %v3099_v37  ;;  %vm4742_vm7 = vmmov %vm4740_vm1 }
 0x168   : > { %2540 = vmatpush1.bf16.msk.msra.mxu0 %vm3824_vm0, %v2538_v53  ;;  %v2746_v36 = vpack.c.bf16 %v1713_v8, %v3226_v13  ;;  %vm4743_vm0 = vmmov %vm4740_vm1  ;;  %vm4744_vm15 = vcmp.lt.s32.totalorder %v3359_v35, 126  ;;  %vm4755_vm9 = vcmp.lt.s32.totalorder %v3538_v44, 14  ;;  %v2757_v37 = vpack.c.bf16 %v3226_v13, %v1889_v43 }
 0x169   : > { %2543 = vmatprep.subr.msk.bf16.mxu0 %vm3854_vm10, %v2541_v11  ;;  %v1111_v46 = vsel %vm4742_vm7, %v3100_v52, %v3101_v17  ;;  %v1112_v4 = vsel %vm4743_vm0, %v3101_v17, %v3100_v52  ;;  %v517_v22 = vsel %vm4744_vm15, %v515_v16, %v513_v49  ;;  %vm4745_vm10 = vcmp.lt.s32.totalorder %v3535_v3, 14  ;;  %vm4750_vm8 = vmmov %vm4749_vm3 }
 0x16a   : > { %2742 = vmatpush1.bf16.msk.msra.mxu1 %vm4125_vm13, %v2740_v48  ;;  %v3109_v27 = vpop.permute.xlu1 %3108  ;;  %v3104_v42 = vpop.permute.xlu0 %3103  ;;  %vm4747_vm13 = vnez %v4650_v63  ;;  %vm4269_vm1 = vmpackc.low %vm4752_vm5, %vm4751_vm6  ;;  %vm4756_vm7 = vcmp.ge.s32.totalorder %v3538_v44, 8  ;;  %vm4757_vm0 = vcmp.ge.s32.totalorder %v3538_v44, 4  ;;  %vm4771_vm5 = vcmask 588800  }
 0x16b   : > { %2745 = vmatprep.subr.msk.bf16.mxu1 %vm3901_vm11, %v2743_v19  ;;  %v3111_v0 = vunpack.i.h.bf16 %v3109_v27  ;;  %v3110_v45 = vunpack.i.l.bf16 %v3109_v27  ;;  %v3106_v7 = vunpack.i.h.bf16 %v3104_v42  ;;  %v3105_v54 = vunpack.i.l.bf16 %v3104_v42  ;;  %vm4746_vm11 = vmmov %vm4744_vm15  ;;  %v1888_v19 = vld [vmem:[%s3262_s17 + $0x8] sm:$0xff] }
 0x16c   : > { %2546 = vmatpush1.bf16.msk.msra.mxu0 %vm3867_vm12, %v2544_v28  ;;  %v516_v24 = vsel %vm4746_vm11, %v513_v49, %v515_v16  ;;  %vm4748_vm12 = vmmov %vm4735_vm4  ;;  %vm4761_vm11 = vcmp.lt.s32.totalorder %v3359_v35, 124 }
 0x16d   : > { %2373 = vmatprep.subr.msk.mxu0 %vm4745_vm10, %v517_v22  ;;  %v1724_v20 = vsel %vm4748_vm12, %v3110_v45, %v3111_v0  ;;  %v1725_v12 = vsel %vm4735_vm4, %v3111_v0, %v3110_v45  ;;  %v1125_v18 = vsel %vm4749_vm3, %v3105_v54, %v3106_v7  ;;  %v1126_v55 = vsel %vm4750_vm8, %v3106_v7, %v3105_v54  ;;  %vm4281_vm15 = vmpackc.low %vm4757_vm0, %vm4756_vm7 }
 0x16e   : > { %2748 = vmatpush1.bf16.msk.msra.mxu1 %vm4747_vm13, %v2746_v36  ;;  %v2749_v63 = vpack.c.bf16 %v1725_v12, %v3490_v30  ;;  %v2752_v15 = vpack.c.bf16 %v1724_v20, %v4186_v5  ;;  %v2619_v29 = vpack.c.bf16 %v1125_v18, %v1111_v46  ;;  %v2622_v59 = vpack.c.bf16 %v1126_v55, %v1112_v4  ;;  %v3119_v25 = vpop.permute.xlu1 %3118  ;;  %v3114_v21 = vpop.permute.xlu0 %3113  ;;  %vm4760_vm10 = vmmov %vm4735_vm4  ;;  %v1943_v55 = vld [vmem:[%s3262_s17 + $0x20] sm:$0xff] }
 0x16f   : > { %v3121_v31 = vunpack.i.h.bf16 %v3119_v25  ;;  %v3120_v30 = vunpack.i.l.bf16 %v3119_v25  ;;  %v3116_v60 = vunpack.i.h.bf16 %v3114_v21  ;;  %v3115_v56 = vunpack.i.l.bf16 %v3114_v21  ;;  %vm4762_vm13 = vmmov %vm4761_vm11 }
 0x170   : > { %2374 = vmatpush1.msk.msra.mxu0 %vm4755_vm9, %v516_v24  ;;  %2751 = vmatprep.subr.msk.bf16.mxu1 %vm4721_vm14, %v2749_v63  ;;  %vm4763_vm12 = vmmov 1   ;;  %vm4764_vm4 = vcmp.lt.s32.totalorder %v3535_v3, 12  ;;  %vm4767_vm14 = vmmov %vm4760_vm10  ;;  %vm4768_vm8 = vcmp.lt.s32.totalorder %v3538_v44, 12  ;;  %vm4773_vm9 = vcmp.lt.s32.totalorder %v3359_v35, 8 }
 0x171   : > { %649 = vmatmul.mubr.f32.vlgmr.msra.gmra.mrb[0].mxu0 %v522_v6  ;;  %2621 = vmatprep.subr.msk.bf16.mxu0 %vm4269_vm1, %v2619_v29  ;;  %v1148_v10 = vsel %vm4760_vm10, %v3120_v30, %v3121_v31  ;;  %v1137_v47 = vsel %vm4761_vm11, %v3115_v56, %v3116_v60  ;;  %v1138_v53 = vsel %vm4762_vm13, %v3116_v60, %v3115_v56  ;;  %vm4303_vm3 = vmpackc.low %vm4764_vm4, %vm4763_vm12  ;;  %vm4775_vm0 = vcmp.lt.s32.totalorder %v3535_v3, 8 }
 0x172   : > { %2624 = vmatpush1.bf16.msk.msra.mxu0 %vm4281_vm15, %v2622_v59  ;;  %v1149_v1 = vsel %vm4767_vm14, %v3121_v31, %v3120_v30  ;;  %v2625_v49 = vpack.c.bf16 %v1138_v53, %v4131_v50  ;;  %v2628_v51 = vpack.c.bf16 %v1137_v47, %v4070_v34  ;;  %v3129_v14 = vpop.permute.xlu1 %3128  ;;  %v3124_v23 = vpop.permute.xlu0 %3123  ;;  %vm4315_vm6 = vmpackc.low %vm4768_vm8, %vm4763_vm12  ;;  %2754 = vmatpush1.bf16.msk.msra.mxu1 %vm4727_vm2, %v2752_v15  ;;  %v2325_v34 = vld [vmem:[%s4552_s1 + $0x30] sm:$0xff]  ;;  %vm4772_vm2 = vcmp.lt.s32.totalorder %v3359_v35, 4 }
 0x173   : > { %2324 = vmatprep.mubr.msk.f32.mxu0 %vm4771_vm5, %v2322_v9  ;;  %v3131_v41 = vunpack.i.h.bf16 %v3129_v14  ;;  %v3130_v11 = vunpack.i.l.bf16 %v3129_v14  ;;  %v3126_v2 = vunpack.i.h.bf16 %v3124_v23  ;;  %v3125_v8 = vunpack.i.l.bf16 %v3124_v23  ;;  %2755 = vmatprep.subr.bf16.mxu1 %v3227_v33  ;;  %vm4774_vm7 = vmmov %vm4773_vm9 }
 0x174   : > { %2627 = vmatprep.subr.msk.bf16.mxu0 %vm4303_vm3, %v2625_v49  ;;  %vm4776_vm10 = vcmp.ge.s32.totalorder %v3535_v3, 8  ;;  %vm4779_vm13 = vmmov %vm4772_vm2  ;;  %vm4780_vm4 = vcmp.lt.s32.totalorder %v3538_v44, 8  ;;  %vm4781_vm14 = vcmp.ge.s32.totalorder %v3538_v44, 8  ;;  %v2759_v0 = vpack.c.bf16 %v3226_v13, %v1888_v19 }
 0x175   : > { %v1188_v16 = vsel %vm4772_vm2, %v3130_v11, %v3131_v41  ;;  %v1178_v17 = vsel %vm4773_vm9, %v3125_v8, %v3126_v2  ;;  %v1179_v52 = vsel %vm4774_vm7, %v3126_v2, %v3125_v8  ;;  %vm4345_vm11 = vmpackc.low %vm4776_vm10, %vm4775_vm0  ;;  %v1189_v36 = vsel %vm4779_vm13, %v3131_v41, %v3130_v11  ;;  %1868 = vmatmul.mubr.f32.vlgmr.msra.gmra.mrb[2].mxu1 %v2325_v34 }
 0x176   : > { %2630 = vmatpush1.bf16.msk.msra.mxu0 %vm4315_vm6, %v2628_v51  ;;  %v2631_v46 = vpack.c.bf16 %v1178_v17, %v1149_v1  ;;  %v2634_v4 = vpack.c.bf16 %v1179_v52, %v1148_v10  ;;  %v3139_v22 = vpop.permute.xlu1 %3138  ;;  %v3134_v27 = vpop.permute.xlu0 %3133  ;;  %vm4355_vm8 = vmpackc.low %vm4781_vm14, %vm4780_vm4  ;;  %vm4784_vm5 = vcmp.ge.s32.totalorder %v3535_v3, 4  ;;  %2756 = vmatpush1.bf16.msra.mxu1 %v3227_v33  ;;  %vm4787_vm9 = vcmask 588800   ;;  %v1942_v10 = vld [vmem:[%s3262_s17 + $0x18] sm:$0xff]  ;;  %v1986_v52 = vld [vmem:[%s3262_s17 + $0x28] sm:$0xff] }
 0x177   : > { %v3141_v45 = vunpack.i.h.bf16 %v3139_v22  ;;  %v3140_v7 = vunpack.i.l.bf16 %v3139_v22  ;;  %v3136_v54 = vunpack.i.h.bf16 %v3134_v27  ;;  %v3135_v24 = vunpack.i.l.bf16 %v3134_v27  ;;  %vm4363_vm2 = vmpackc.low %vm4763_vm12, %vm4784_vm5  ;;  %2332 = vmatprep.mubr.msk.f32.mxu1 %vm4787_vm9, %v2330_v57  ;;  %2758 = vmatprep.subr.bf16.mxu1 %v2757_v37 }
 0x178   : > { %v2637_v20 = vpack.c.bf16 %v3516_v39, %v1188_v16  ;;  %2633 = vmatprep.subr.msk.bf16.mxu0 %vm4345_vm11, %v2631_v46  ;;  %vm4788_vm7 = vcmp.lt.s32.totalorder %v3359_v35, 120  ;;  %vm4789_vm0 = vcmp.lt.s32.totalorder %v3359_v35, 124  ;;  %v2640_v63 = vpack.c.bf16 %v3513_v38, %v1189_v36  ;;  %v1987_v16 = vld [vmem:[%s3262_s17 + $0x30] sm:$0xff]  ;;  %v2031_v36 = vld [vmem:[%s3262_s17 + $0x40] sm:$0xff]  ;;  %v2074_v39 = vld [vmem:[%s3262_s17 + $0x48] sm:$0xff] }
 0x179   : > { %v1211_v12 = vsel %vm4788_vm7, %v3141_v45, %v3140_v7  ;;  %v1201_v18 = vsel %vm4789_vm0, %v3136_v54, %v3135_v24  ;;  %vm4790_vm10 = vcmp.ge.s32.totalorder %v3538_v44, 4  ;;  %vm4793_vm4 = vcmp.lt.s32.totalorder %v3535_v3, 12  ;;  %vm4798_vm9 = vmmov %vm4789_vm0 }
 0x17a   : > { %2636 = vmatpush1.bf16.msk.msra.mxu0 %vm4355_vm8, %v2634_v4  ;;  %vm4385_vm13 = vmpackc.low %vm4763_vm12, %vm4790_vm10  ;;  %v3149_v15 = vpop.permute.xlu1 %3148  ;;  %v3144_v29 = vpop.permute.xlu0 %3143  ;;  %vm4794_vm14 = vcmp.lt.s32.totalorder %v3535_v3, 8  ;;  %2760 = vmatpush1.bf16.msra.mxu1 %v2759_v0  ;;  %v1200_v60 = vsel %vm4798_vm9, %v3135_v24, %v3136_v54  ;;  %v2643_v56 = vpack.c.bf16 %v1211_v12, %v1201_v18  ;;  %v2763_v9 = vpack.c.bf16 %v1943_v55, %v3226_v13  ;;  %v2030_v0 = vld [vmem:[%s3262_s17 + $0x38] sm:$0xff] }
 0x17b   : > { %2639 = vmatprep.subr.msk.bf16.mxu0 %vm4363_vm2, %v2637_v20  ;;  %vm4393_vm5 = vmpackc.low %vm4794_vm14, %vm4793_vm4  ;;  %v3151_v38 = vunpack.i.h.bf16 %v3149_v15  ;;  %v3150_v25 = vunpack.i.l.bf16 %v3149_v15  ;;  %v3146_v21 = vunpack.i.h.bf16 %v3144_v29  ;;  %v3145_v31 = vunpack.i.l.bf16 %v3144_v29  ;;  %2761 = vmatprep.subr.bf16.mxu1 %v3227_v33 }
 0x17c   : > { %vm4797_vm12 = vmmov %vm4788_vm7  ;;  %vm4799_vm7 = vcmp.lt.s32.totalorder %v3359_v35, 4  ;;  %vm4800_vm0 = vcmp.lt.s32.totalorder %v3359_v35, 8  ;;  %vm4801_vm10 = vcmp.lt.s32.totalorder %v3538_v44, 12  ;;  %vm4802_vm4 = vcmp.lt.s32.totalorder %v3538_v44, 8 }
 0x17d   : > { %v1210_v30 = vsel %vm4797_vm12, %v3140_v7, %v3141_v45  ;;  %v1232_v47 = vsel %vm4799_vm7, %v3150_v25, %v3151_v38  ;;  %v1222_v53 = vsel %vm4800_vm0, %v3145_v31, %v3146_v21  ;;  %vm4416_vm14 = vmpackc.low %vm4802_vm4, %vm4801_vm10  ;;  %v2765_v41 = vpack.c.bf16 %v1942_v10, %v3226_v13 }
 0x17e   : > { %2642 = vmatpush1.bf16.msk.msra.mxu0 %vm4385_vm13, %v2640_v63  ;;  %vm4805_vm12 = vmmov %vm4799_vm7  ;;  %v2649_v51 = vpack.c.bf16 %v1232_v47, %v1222_v53  ;;  %v3154_v14 = vpop.permute.xlu0 %3153  ;;  %v2646_v23 = vpack.c.bf16 %v1210_v30, %v1200_v60  ;;  %2762 = vmatpush1.bf16.msra.mxu1 %v3227_v33  ;;  %vm4807_vm7 = vcmp.lt.s32.totalorder %v3359_v35, 124  ;;  %v2771_v17 = vpack.c.bf16 %v3226_v13, %v1987_v16  ;;  %v3159_v46 = vpop.permute.xlu1 %3158 }
 0x17f   : > { %2645 = vmatprep.subr.msk.bf16.mxu0 %vm4393_vm5, %v2643_v56  ;;  %v1233_v1 = vsel %vm4805_vm12, %v3151_v38, %v3150_v25  ;;  %vm4806_vm9 = vmmov %vm4800_vm0  ;;  %v3156_v11 = vunpack.i.h.bf16 %v3154_v14  ;;  %v3155_v2 = vunpack.i.l.bf16 %v3154_v14  ;;  %2764 = vmatprep.subr.bf16.mxu1 %v2763_v9  ;;  %v3161_v4 = vunpack.i.h.bf16 %v3159_v46 }
 0x180   : > { %v1223_v49 = vsel %vm4806_vm9, %v3146_v21, %v3145_v31  ;;  %vm4808_vm0 = vmmov %vm4807_vm7  ;;  %v3160_v22 = vunpack.i.l.bf16 %v3159_v46  ;;  %v2777_v27 = vpack.c.bf16 %v2031_v36, %v3226_v13  ;;  %v2779_v45 = vpack.c.bf16 %v2030_v0, %v3226_v13 }
 0x181   : > { %v2652_v8 = vpack.c.bf16 %v1233_v1, %v1223_v49  ;;  %v1245_v34 = vsel %vm4807_vm7, %v3156_v11, %v3155_v2  ;;  %v1244_v19 = vsel %vm4808_vm0, %v3155_v2, %v3156_v11  ;;  %vm4809_vm10 = vcmp.lt.s32.totalorder %v3359_v35, 120  ;;  %vm4811_vm7 = vmmov %vm4806_vm9 }
 0x182   : > { %2648 = vmatpush1.bf16.msk.msra.mxu0 %vm4416_vm14, %v2646_v23  ;;  %v2655_v37 = vpack.c.bf16 %v1245_v34, %v4095_v26  ;;  %2766 = vmatpush1.bf16.msra.mxu1 %v2765_v41  ;;  %v2658_v57 = vpack.c.bf16 %v1244_v19, %v4131_v50  ;;  %v2773_v50 = vpack.c.bf16 %v3226_v13, %v1986_v52  ;;  %vm4810_vm4 = vmmov %vm4809_vm10  ;;  %v2075_v23 = vld [vmem:[%s3262_s17 + $0x50] sm:$0xff] }
 0x183   : > { %2651 = vmatprep.subr.msk.bf16.mxu0 %vm4269_vm1, %v2649_v51  ;;  %2767 = vmatprep.subr.bf16.mxu1 %v3227_v33  ;;  %v1254_v7 = vsel %vm4809_vm10, %v3160_v22, %v3161_v4  ;;  %v1255_v54 = vsel %vm4810_vm4, %v3161_v4, %v3160_v22  ;;  %vm4812_vm0 = vmmov %vm4805_vm12 }
 0x184   : > { %vm4813_vm10 = vmmov %vm4810_vm4  ;;  %vm4814_vm4 = vcmp.lt.s32.totalorder %v3359_v35, 124 }
 0x186   : > { %2654 = vmatpush1.bf16.msk.msra.mxu0 %vm4281_vm15, %v2652_v8  ;;  %2768 = vmatpush1.bf16.msra.mxu1 %v3227_v33 }
 0x187   : > { %2657 = vmatprep.subr.msk.bf16.mxu0 %vm4303_vm3, %v2655_v37  ;;  %2769 = vmatprep.subr.bf16.mxu1 %v3227_v33 }
 0x18a   : > { %2660 = vmatpush1.bf16.msk.msra.mxu0 %vm4315_vm6, %v2658_v57  ;;  %2770 = vmatpush1.bf16.msra.mxu1 %v3227_v33 }
 0x18b   : > { %2772 = vmatprep.subr.bf16.mxu1 %v2771_v17 }
 0x18c   : > { %v3169_v24 = vpop.permute.xlu1 %3168  ;;  %v3164_v20 = vpop.permute.xlu0 %3163 }
 0x18d   : > { %v3171_v12 = vunpack.i.h.bf16 %v3169_v24  ;;  %v3170_v18 = vunpack.i.l.bf16 %v3169_v24  ;;  %v3166_v55 = vunpack.i.h.bf16 %v3164_v20  ;;  %v3165_v63 = vunpack.i.l.bf16 %v3164_v20 }
 0x18e   : > { %2774 = vmatpush1.bf16.msra.mxu1 %v2773_v50 }
 0x18f   : > { %2775 = vmatprep.subr.bf16.mxu1 %v3227_v33  ;;  %v1290_v15 = vsel %vm4805_vm12, %v3170_v18, %v3171_v12  ;;  %v1280_v29 = vsel %vm4806_vm9, %v3165_v63, %v3166_v55  ;;  %v1281_v13 = vsel %vm4811_vm7, %v3166_v55, %v3165_v63  ;;  %v1291_v56 = vsel %vm4812_vm0, %v3171_v12, %v3170_v18  ;;  %vm4818_vm12 = vmmov %vm4812_vm0 }
 0x190   : > { %v2661_v38 = vpack.c.bf16 %v1280_v29, %v1255_v54  ;;  %v2664_v25 = vpack.c.bf16 %v1281_v13, %v1254_v7  ;;  %v3179_v21 = vpop.permute.xlu1 %3178  ;;  %v3174_v60 = vpop.permute.xlu0 %3173  ;;  %v2667_v9 = vpack.c.bf16 %v3696_v40, %v1290_v15  ;;  %v2670_v28 = vpack.c.bf16 %v3661_v62, %v1291_v56  ;;  %vm4819_vm9 = vmmov %vm4811_vm7 }
 0x191   : > { %v3181_v31 = vunpack.i.h.bf16 %v3179_v21  ;;  %v3180_v30 = vunpack.i.l.bf16 %v3179_v21  ;;  %v3176_v10 = vunpack.i.h.bf16 %v3174_v60  ;;  %v3175_v47 = vunpack.i.l.bf16 %v3174_v60 }
 0x192   : > { %2776 = vmatpush1.bf16.msra.mxu1 %v3227_v33  ;;  %2663 = vmatprep.subr.msk.bf16.mxu0 %vm4345_vm11, %v2661_v38  ;;  %vm4815_vm11 = vmmov %vm4813_vm10 }
 0x193   : > { %2778 = vmatprep.subr.bf16.mxu1 %v2777_v27  ;;  %v1313_v53 = vsel %vm4813_vm10, %v3181_v31, %v3180_v30  ;;  %2666 = vmatpush1.bf16.msk.msra.mxu0 %vm4355_vm8, %v2664_v25  ;;  %v1303_v1 = vsel %vm4814_vm4, %v3176_v10, %v3175_v47  ;;  %v1312_v49 = vsel %vm4815_vm11, %v3180_v30, %v3181_v31  ;;  %vm4816_vm8 = vmmov %vm4814_vm4 }
 0x194   : > { %2669 = vmatprep.subr.msk.bf16.mxu0 %vm4363_vm2, %v2667_v9  ;;  %v3189_v40 = vpop.permute.xlu1 %3188  ;;  %v3184_v14 = vpop.permute.xlu0 %3183  ;;  %v1302_v41 = vsel %vm4816_vm8, %v3175_v47, %v3176_v10  ;;  %v2673_v11 = vpack.c.bf16 %v1313_v53, %v1303_v1  ;;  %vm4817_vm2 = vmmov %vm4812_vm0  ;;  %vm4824_vm0 = vcmp.lt.s32.totalorder %v3535_v3, 8 }
 0x195   : > { %v3191_v51 = vunpack.i.h.bf16 %v3189_v40  ;;  %v3190_v42 = vunpack.i.l.bf16 %v3189_v40  ;;  %v3186_v2 = vunpack.i.h.bf16 %v3184_v14  ;;  %v3185_v6 = vunpack.i.l.bf16 %v3184_v14 }
 0x196   : > { %2780 = vmatpush1.bf16.msra.mxu1 %v2779_v45  ;;  %v2676_v37 = vpack.c.bf16 %v1312_v49, %v1302_v41 }
 0x197   : > { %2781 = vmatprep.subr.bf16.mxu1 %v3227_v33  ;;  %2672 = vmatpush1.bf16.msk.msra.mxu0 %vm4385_vm13, %v2670_v28  ;;  %v1334_v62 = vsel %vm4817_vm2, %v3190_v42, %v3191_v51  ;;  %v1335_v8 = vsel %vm4818_vm12, %v3191_v51, %v3190_v42  ;;  %v1324_v34 = vsel %vm4819_vm9, %v3185_v6, %v3186_v2  ;;  %vm4820_vm13 = vmmov %vm4814_vm4 }
 0x198   : > { %v1325_v19 = vsel %vm4811_vm7, %v3186_v2, %v3185_v6  ;;  %2675 = vmatprep.subr.msk.bf16.mxu0 %vm4393_vm5, %v2673_v11  ;;  %v2679_v57 = vpack.c.bf16 %v1334_v62, %v1324_v34  ;;  %vm4821_vm5 = vmmov %vm4814_vm4  ;;  %v1353_v4 = vpop.permute.xlu1 %1352 }
 0x199   : > { %v3194_v16 = vpop.permute.xlu0 %3193  ;;  %v2682_v50 = vpack.c.bf16 %v1335_v8, %v1325_v19 }
 0x19a   : > { %2782 = vmatpush1.bf16.msra.mxu1 %v3227_v33  ;;  %v3196_v17 = vunpack.i.h.bf16 %v3194_v16  ;;  %v3195_v52 = vunpack.i.l.bf16 %v3194_v16 }
 0x19b   : > { %2783 = vmatprep.subr.bf16.mxu1 %v3227_v33  ;;  %2678 = vmatpush1.bf16.msk.msra.mxu0 %vm4416_vm14, %v2676_v37  ;;  %vm4822_vm14 = vmmov %vm4813_vm10 }
 0x19c   : > { %v1346_v59 = vsel %vm4820_vm13, %v3195_v52, %v3196_v17  ;;  %v1347_v36 = vsel %vm4821_vm5, %v3196_v17, %v3195_v52  ;;  %2681 = vmatprep.subr.msk.bf16.mxu0 %vm4269_vm1, %v2679_v57  ;;  %vm4823_vm1 = vmmov %vm4813_vm10 }
 0x19d   : > { %v2685_v46 = vpack.c.bf16 %v1347_v36, %v4186_v5  ;;  %v1355_v22 = vpop.permute.xlu0 %1354  ;;  %v2688_v27 = vpack.c.bf16 %v1346_v59, %v4095_v26  ;;  %v2321_v26 = vld [vmem:[%s4552_s1 + $0x20] sm:$0xff] }
 0x19e   : > { %2784 = vmatpush1.bf16.msra.mxu1 %v3227_v33  ;;  %v2329_v33 = vld [vmem:[%s4552_s1 + $0x40] sm:$0xff]  ;;  %v1357_v43 = vsel %vm4822_vm14, %v1355_v22, %v1353_v4  ;;  %v1356_v61 = vsel %vm4823_vm1, %v1353_v4, %v1355_v22 }
 0x19f   : > { %2225 = vmatprep.subr.mxu1 %v2075_v23  ;;  %2684 = vmatpush1.bf16.msk.msra.mxu0 %vm4281_vm15, %v2682_v50  ;;  %vm4825_vm15 = vcmp.lt.s32.totalorder %v3538_v44, 8 }
 0x1a0   : > { %2687 = vmatprep.subr.msk.bf16.mxu0 %vm4303_vm3, %v2685_v46 }
 0x1a2   : > { %2226 = vmatpush1.msra.mxu1 %v2074_v39 }
 0x1a3   : > { %2246 = vmatmul.mubr.f32.vlgmr.msra.gmra.mrb[4].mxu1 %v2329_v33  ;;  %2690 = vmatpush1.bf16.msk.msra.mxu0 %vm4315_vm6, %v2688_v27 }
 0x1a4   : > { %2453 = vmatprep.subr.msk.mxu0 %vm4824_vm0, %v1357_v43 }
 0x1a7   : > { %2454 = vmatpush1.msk.msra.mxu0 %vm4825_vm15, %v1356_v61 }
 0x1a8   : > { %1490 = vmatmul.mubr.f32.vlgmr.msra.gmra.mrb[2].mxu0 %v2321_v26 }
 0x1a9   : > { %v578_v44 = vpop.permute.xlu1 %577 }
 0x1ad   : > { %v1420_v48 = vpop.permute.xlu1 %1419 }
 0x1ae   : > { %v1014_v5 = vpop.permute.xlu0 %1013 }
 0x1b1   : > { %v1798_v24 = vpop.permute.xlu1 %1797 }
 0x1b2   : > { %v2176_v63 = vpop.permute.xlu0 %2175 }
 0x210   : > { %v1085_v32 = vpop.f32.mrb[0].mxu1 }
 0x211   : > { %v1086_v35 = vadd.f32 %v1085_v32, %v1014_v5  ;;  %v1087_v3 = vpop.f32.mrb[1].mxu1 }
 0x212   : > { %v1088_v58 = vadd.f32 %v1087_v3, %v1014_v5 }
 0x213   : > { %1090 = vst [vmem:[%s4536_s14 + $0x10] sm:$0xff] %v1086_v35 }
 0x214   : > { %1091 = vst [vmem:[%s4536_s14 + $0x18] sm:$0xff] %v1088_v58 }
 0x244   : > { %v650_v0 = vpop.f32.mrb[0].mxu0 }
 0x245   : > { %v651_v45 = vadd.f32 %v650_v0, %v578_v44  ;;  %v652_v7 = vpop.f32.mrb[1].mxu0 }
 0x246   : > { %v653_v54 = vadd.f32 %v652_v7, %v578_v44 }
 0x247   : > { %655 = vst [vmem:[%s4536_s14] sm:$0xff] %v651_v45 }
 0x248   : > { %656 = vst [vmem:[%s4536_s14 + $0x8] sm:$0xff] %v653_v54  ;;  %v1869_v20 = vpop.f32.mrb[2].mxu1 }
 0x249   : > { %v1870_v12 = vadd.f32 %v1869_v20, %v1798_v24  ;;  %v1871_v18 = vpop.f32.mrb[3].mxu1 }
 0x24a   : > { %v1872_v55 = vadd.f32 %v1871_v18, %v1798_v24 }
 0x24b   : > { %1874 = vst [vmem:[%s4536_s14 + $0x30] sm:$0xff] %v1870_v12 }
 0x24c   : > { %1875 = vst [vmem:[%s4536_s14 + $0x38] sm:$0xff] %v1872_v55 }
 0x276   : > { %v2247_v15 = vpop.f32.mrb[4].mxu1 }
 0x277   : > { %v2248_v29 = vadd.f32 %v2247_v15, %v2176_v63  ;;  %v2249_v13 = vpop.f32.mrb[5].mxu1 }
 0x278   : > { %v2250_v38 = vadd.f32 %v2249_v13, %v2176_v63 }
 0x279   : > { %2252 = vst [vmem:[%s4536_s14 + $0x40] sm:$0xff] %v2248_v29 }
 0x27a   : > { %2253 = vst [vmem:[%s4536_s14 + $0x48] sm:$0xff] %v2250_v38 }
 0x27b   : > { %v1491_v25 = vpop.f32.mrb[2].mxu0 }
 0x27c   : > { %v1492_v21 = vadd.f32 %v1491_v25, %v1420_v48  ;;  %v1493_v31 = vpop.f32.mrb[3].mxu0 }
 0x27d   : > { %v1494_v30 = vadd.f32 %v1493_v31, %v1420_v48 }
 0x27e   : > { %1496 = vst [vmem:[%s4536_s14 + $0x20] sm:$0xff] %v1492_v21 }
 0x27f   : > { %1497 = vst [vmem:[%s4536_s14 + $0x28] sm:$0xff] %v1494_v30 }
 0x280 PF: > { %s13_s12 = sadd.s32 1, %s3209_s12  }
 0x281   : > { %p10_p4 = scmp.ge.s32.totalorder %s13_s12, 4  }
 0x283   :  { %12 = sbr.rel (!%p10_p4) target bundleno = 1 (0x1), region = 70 }

</bundles_post_ra>
